<compile_context>
chip_gen: v7x
topology: tpu7x:2x2x1
jax: 0.10.0
libtpu: 0.0.40
codegen_flags: <defaults>
</compile_context>

<pallas_src>
import functools
import math

import jax
import jax.numpy as jnp
from jax import lax
from jax.experimental import pallas as pl
from jax.experimental.pallas import tpu as pltpu


# ----------------------------------------------------------------------------
# small in-kernel helpers (traced, not kernels themselves)
# ----------------------------------------------------------------------------
def _recip(x):
    # EUP-seeded reciprocal + one Newton step (keeps ~f32 accuracy).
    r = pl.reciprocal(x, approx=True)
    return r * (2.0 - x * r)


def _layer_norm(y, g, b, eps):
    m = jnp.mean(y, axis=-1, keepdims=True)
    v = jnp.mean((y - m) ** 2, axis=-1, keepdims=True)
    return (y - m) * lax.rsqrt(v + eps) * g + b


def _group_norm_row(h, P, g, b, eps):
    # Per-row GroupNorm using a precomputed block-diagonal averaging matrix P.
    mean = jnp.dot(h, P, preferred_element_type=jnp.float32)
    d = h - mean
    var = jnp.dot(d * d, P, preferred_element_type=jnp.float32)
    return d * lax.rsqrt(var + eps) * g + b


# vc (width-C vector stack) row indices
_SQU_B, _SQU_G, _SQU_BETA = 0, 1, 2
_GF_B2, _GF_G2, _GF_BETA2 = 3, 4, 5
_GA_B = 6
_EP_B2, _EP_G, _EP_BETA = 7, 8, 9
_BNE1_G, _BNE1_B, _BNV1_G, _BNV1_B = 10, 11, 12, 13
_BNE2_G, _BNE2_B, _BNV2_G, _BNV2_B = 14, 15, 16, 17
_FFM_B2, _FFM_G, _FFM_BETA = 18, 19, 20
# vh (width-4C vector stack) row indices
_GF_B1, _GF_G1, _GF_BETA1, _EP_B1, _FFM_B1 = 0, 1, 2, 3, 4


# ----------------------------------------------------------------------------
# Fused kernel: squ + GFEM + GEM(collapsed) + 2x GNN_EDGE + residual + FFM
# ----------------------------------------------------------------------------
def _graphsep_kernel(x_ref, squ_wt_ref, gfw1_ref, gfp1_ref, gfw2_ref, gfp2_ref,
                     gaw_ref, epw1_ref, epw2_ref, wn1_ref, wn2_ref, e1t_ref, e2t_ref,
                     fw1_ref, fw2_ref, vc_ref, vh_ref,
                     sep_ref, noi_ref, rep_scr, agg_scr, *, num_nodes, eps):
    N = num_nodes
    C = squ_wt_ref.shape[1]
    dot = functools.partial(jnp.dot, preferred_element_type=jnp.float32)

    def rc(i):           # (1, C) vector row
        return vc_ref[i:i + 1, :]

    def rh(i):           # (1, 4C) vector row
        return vh_ref[i:i + 1, :]

    # ---- squ: Linear + LN + ReLU ----
    x = x_ref[0].astype(jnp.float32)                                   # (N, Din)
    xs = jnp.maximum(
        _layer_norm(dot(x, squ_wt_ref[...]) + rc(_SQU_B), rc(_SQU_G), rc(_SQU_BETA), eps),
        0.0)                                                           # (N, C)

    # ---- GFEM: Conv1d(kernel=N) as per-node partial matmuls (no activation relayout) ----
    h1 = rh(_GF_B1)                                                    # (1, 4C)
    for n in range(N):
        h1 = h1 + dot(xs[n:n + 1, :], gfw1_ref[n * C:(n + 1) * C, :])
    h1 = jnp.maximum(_group_norm_row(h1, gfp1_ref[...], rh(_GF_G1), rh(_GF_BETA1), eps), 0.0)
    h2 = dot(h1, gfw2_ref[...]) + rc(_GF_B2)
    gfeat = jnp.maximum(_group_norm_row(h2, gfp2_ref[...], rc(_GF_G2), rc(_GF_BETA2), eps), 0.0)

    # ---- GEM collapsed (exact): FAM/ARM softmax is uniform (row-constant K/V) ----
    arm = dot(gfeat, gaw_ref[...]) + rc(_GA_B)                         # (1, C)
    eh = jnp.maximum(dot(arm, epw1_ref[...]) + rh(_EP_B1), 0.0)
    e_row = _layer_norm(arm + dot(eh, epw2_ref[...]) + rc(_EP_B2), rc(_EP_G), rc(_EP_BETA), eps)

    # ---- GNN_EDGE (2 layers), edge kept 2D (N*N, C), no incidence matmuls ----
    edge = jnp.broadcast_to(e_row, (N * N, C))                         # all rows identical

    def gnn_layer(xv, edge, wn_ref, et_ref, ge, be, gv, bv):
        proj = dot(xv, wn_ref[...])                                    # (N, 4C) = [A|B|U|V]x
        vix = proj[:, 0:C]
        vjx = proj[:, C:2 * C]
        uix = proj[:, 2 * C:3 * C]
        vjU = proj[:, 3 * C:4 * C]
        # end@Vix + start@Vjx  ==  per-i broadcast + per-j tile
        for i in range(N):
            rep_scr[i * N:(i + 1) * N, :] = jnp.broadcast_to(vix[i:i + 1, :], (N, C)) + vjx
        upd = rep_scr[...] + dot(edge, et_ref[...])
        edge = edge + jnp.maximum(_layer_norm(upd, ge, be, eps), 0.0)
        # gated softmax over the start-node index within each block of N rows
        pe = jnp.exp(1.0 / (1.0 + jnp.exp(-edge)))                     # sigmoid in (0,1): safe
        for i in range(N):
            pe_i = pe[i * N:(i + 1) * N, :]
            p_i = pe_i * _recip(jnp.sum(pe_i, axis=0, keepdims=True))
            agg_scr[i:i + 1, :] = jnp.sum(p_i * vjU, axis=0, keepdims=True)
        xv = jnp.maximum(xv + _layer_norm(uix + agg_scr[...] * (1.0 / N), gv, bv, eps), 0.0)
        return xv, edge

    xv, edge = gnn_layer(xs, edge, wn1_ref, e1t_ref,
                         rc(_BNE1_G), rc(_BNE1_B), rc(_BNV1_G), rc(_BNV1_B))
    xv, edge = gnn_layer(xv, edge, wn2_ref, e2t_ref,
                         rc(_BNE2_G), rc(_BNE2_B), rc(_BNV2_G), rc(_BNV2_B))

    # ---- encoder residual + final FFM ----
    fv = xv + xs
    fh = jnp.maximum(dot(fv, fw1_ref[...]) + rh(_FFM_B1), 0.0)
    sep = _layer_norm(fv + dot(fh, fw2_ref[...]) + rc(_FFM_B2), rc(_FFM_G), rc(_FFM_BETA), eps)
    sep_ref[0] = sep.astype(sep_ref.dtype)
    noi_ref[0] = (xs - sep).astype(noi_ref.dtype)


def _group_avg_matrix(channels, num_groups):
    gs = channels // num_groups
    g = jnp.arange(channels) // gs
    return (g[:, None] == g[None, :]).astype(jnp.float32) * (1.0 / gs)


def graphsep_forward(x, params, *, num_groups=8, eps=1e-5):
    B, N, Din = x.shape
    sp, gp = params["squ"], params["gfem"]
    fam, arm, ep = params["FAM"], params["ARM"], params["edge_proj"]
    gnn, fp = params["gnn"], params["ffm"]
    C = sp["fc_w"].shape[0]
    H = gp["w1"].shape[0]                                  # 4C

    # --- one-time, grid-invariant weight prep (all pre-transposed / stacked) ---
    squ_wt = sp["fc_w"].T                                  # (Din, C)
    gfw1 = jnp.transpose(gp["w1"], (2, 1, 0)).reshape(N * C, H)   # (N*C, H), n-major
    gfw2 = gp["w2"][:, :, 0].T                             # (H, C)
    gfp1 = _group_avg_matrix(H, num_groups)
    gfp2 = _group_avg_matrix(C, num_groups)

    # Exact collapse of FAM + ARM: K/V rows are identical -> uniform softmax, so
    # MHA(q, kv, kv) == kv_row @ Wv.T @ Wo.T + (bv @ Wo.T + bo), independent of q.
    w_f = fam["wv"].T @ fam["wo"].T
    b_f = fam["bv"] @ fam["wo"].T + fam["bo"]
    w_a = arm["wv"].T @ arm["wo"].T
    b_a = arm["bv"] @ arm["wo"].T + arm["bo"]
    gaw = w_f @ w_a                                        # (C, C)
    gab = b_f @ w_a + b_a                                  # (C,)

    epw1, epw2 = ep["w1"].T, ep["w2"].T
    wn1 = jnp.concatenate([gnn["A1"].T, gnn["B1"].T, gnn["U1"].T, gnn["V1"].T], axis=1)  # (C,4C)
    wn2 = jnp.concatenate([gnn["A2"].T, gnn["B2"].T, gnn["U2"].T, gnn["V2"].T], axis=1)
    e1t, e2t = gnn["E1"].T, gnn["E2"].T
    fw1, fw2 = fp["w1"].T, fp["w2"].T

    vc = jnp.stack([
        sp["fc_b"], sp["ln_g"], sp["ln_b"],
        gp["b2"], gp["gn2_g"], gp["gn2_b"],
        gab, ep["b2"], ep["g"], ep["b"],
        gnn["bne1_g"], gnn["bne1_b"], gnn["bnv1_g"], gnn["bnv1_b"],
        gnn["bne2_g"], gnn["bne2_b"], gnn["bnv2_g"], gnn["bnv2_b"],
        fp["b2"], fp["g"], fp["b"],
    ], axis=0)                                             # (21, C)
    vh = jnp.stack([gp["b1"], gp["gn1_g"], gp["gn1_b"], ep["b1"], fp["b1"]], axis=0)  # (5, 4C)

    operands = (x, squ_wt, gfw1, gfp1, gfw2, gfp2, gaw, epw1, epw2,
                wn1, wn2, e1t, e2t, fw1, fw2, vc, vh)

    def const_spec(a):
        return pl.BlockSpec(a.shape, lambda b, _nd=a.ndim: (0,) * _nd)

    in_specs = [pl.BlockSpec((1, N, Din), lambda b: (b, 0, 0))]
    in_specs += [const_spec(a) for a in operands[1:]]

    kernel = functools.partial(_graphsep_kernel, num_nodes=N, eps=eps)
    sep, noi = pl.pallas_call(
        kernel,
        out_shape=(jax.ShapeDtypeStruct((B, N, C), x.dtype),
                   jax.ShapeDtypeStruct((B, N, C), x.dtype)),
        grid=(B,),
        in_specs=in_specs,
        out_specs=(pl.BlockSpec((1, N, C), lambda b: (b, 0, 0)),
                   pl.BlockSpec((1, N, C), lambda b: (b, 0, 0))),
        scratch_shapes=[pltpu.VMEM((N * N, C), jnp.float32),   # per-edge repeat buffer
                        pltpu.VMEM((N, C), jnp.float32)],      # per-node aggregation buffer
        compiler_params=pltpu.CompilerParams(dimension_semantics=("parallel",)),
    )(*operands)
    return dict(sep_node=sep, noi_node=noi)


# ----------------------------------------------------------------------------
# Pure-JAX reference (literal port of the PyTorch forward, full N^2 edge tensor)
# ----------------------------------------------------------------------------
def _ln_np(x, g, b, eps=1e-5):
    m = x.mean(-1, keepdims=True)
    v = ((x - m) ** 2).mean(-1, keepdims=True)
    return (x - m) * lax.rsqrt(v + eps) * g + b


def _gn_np(x, num_groups, g, b, eps=1e-5):
    B, C = x.shape
    gs = C // num_groups
    xr = x.reshape(B, num_groups, gs)
    m = xr.mean(-1, keepdims=True)
    v = ((xr - m) ** 2).mean(-1, keepdims=True)
    return ((xr - m) * lax.rsqrt(v + eps)).reshape(B, C) * g + b


def _mha_np(q, k, v, p, num_heads=8):
    B, Lq, D = q.shape
    Lk = k.shape[1]
    hd = D // num_heads
    qq = (q @ p["wq"].T + p["bq"]).reshape(B, Lq, num_heads, hd).transpose(0, 2, 1, 3)
    kk = (k @ p["wk"].T + p["bk"]).reshape(B, Lk, num_heads, hd).transpose(0, 2, 1, 3)
    vv = (v @ p["wv"].T + p["bv"]).reshape(B, Lk, num_heads, hd).transpose(0, 2, 1, 3)
    s = jnp.einsum("bhqd,bhkd->bhqk", qq / math.sqrt(hd), kk)
    a = jax.nn.softmax(s, axis=-1)
    o = jnp.einsum("bhqk,bhkd->bhqd", a, vv).transpose(0, 2, 1, 3).reshape(B, Lq, D)
    return o @ p["wo"].T + p["bo"]


def _ffm_np(x, p, eps=1e-5):
    h = jnp.maximum(x @ p["w1"].T + p["b1"], 0.0)
    return _ln_np(x + h @ p["w2"].T + p["b2"], p["g"], p["b"], eps)


def _graphsep_ref(x, params, num_heads=8, num_groups=8, eps=1e-5):
    B, N, _ = x.shape
    sp = params["squ"]
    xs = jnp.maximum(_ln_np(x @ sp["fc_w"].T + sp["fc_b"], sp["ln_g"], sp["ln_b"], eps), 0.0)
    C = xs.shape[-1]

    gp = params["gfem"]
    xperm = jnp.transpose(xs, (0, 2, 1))
    h1 = jnp.einsum("bcn,ocn->bo", xperm, gp["w1"]) + gp["b1"]
    h1 = jnp.maximum(_gn_np(h1, num_groups, gp["gn1_g"], gp["gn1_b"], eps), 0.0)
    h2 = h1 @ gp["w2"][:, :, 0].T + gp["b2"]
    h2 = jnp.maximum(_gn_np(h2, num_groups, gp["gn2_g"], gp["gn2_b"], eps), 0.0)
    gf = h2[:, None, :]

    gf_rep = jnp.broadcast_to(gf, (B, N, C))
    feat = _mha_np(xs, gf_rep, gf_rep, params["FAM"], num_heads)
    feat_end = jnp.repeat(feat, N, axis=1)
    feat_start = jnp.tile(feat, (1, N, 1))
    feat2 = _mha_np(feat_start, feat_end, feat_end, params["ARM"], num_heads)
    edge = _ffm_np(feat2, params["edge_proj"], eps)

    gnn = params["gnn"]
    idx = jnp.arange(N * N)
    start = (idx[:, None] % N == jnp.arange(N)[None, :]).astype(xs.dtype)
    end = (idx[:, None] // N == jnp.arange(N)[None, :]).astype(xs.dtype)

    def gnn_layer(xv, edge, A, Bm, E, U, V, ge, be, gv, bv):
        res = xv
        Vix = xv @ A.T
        Vjx = xv @ Bm.T
        e = edge @ E.T
        upd = (jnp.einsum("ev,bvc->bec", end, Vix)
               + jnp.einsum("ev,bvc->bec", start, Vjx) + e)
        edge = edge + jnp.maximum(_ln_np(upd, ge, be, eps), 0.0)
        es_ = jax.nn.sigmoid(edge)
        es_ = jax.nn.softmax(es_.reshape(B, N, N, C), axis=2).reshape(B, N * N, C)
        Ujx = jnp.einsum("ev,bvc->bec", start, xv @ V.T)
        Uix = xv @ U.T
        xv = Uix + jnp.einsum("ve,bec->bvc", end.T, es_ * Ujx) / N
        xv = jnp.maximum(res + _ln_np(xv, gv, bv, eps), 0.0)
        return xv, edge

    xv, edge = gnn_layer(xs, edge, gnn["A1"], gnn["B1"], gnn["E1"], gnn["U1"], gnn["V1"],
                         gnn["bne1_g"], gnn["bne1_b"], gnn["bnv1_g"], gnn["bnv1_b"])
    xv, edge = gnn_layer(xv, edge, gnn["A2"], gnn["B2"], gnn["E2"], gnn["U2"], gnn["V2"],
                         gnn["bne2_g"], gnn["bne2_b"], gnn["bnv2_g"], gnn["bnv2_b"])
    fv = xv + xs
    sep = _ffm_np(fv, params["ffm"], eps)
    return dict(sep_node=sep, noi_node=xs - sep)


# ----------------------------------------------------------------------------
# Deterministic parameter construction (PyTorch weight conventions)
# ----------------------------------------------------------------------------
def make_params(key, in_dim, hidden, num_nodes, expansion_rate=4):
    C = hidden
    keys = iter(jax.random.split(key, 64))

    def nrm(shape, s=0.1):
        return jax.random.normal(next(keys), shape, jnp.float32) * s

    def mha():
        return dict(wq=nrm((C, C)), wk=nrm((C, C)), wv=nrm((C, C)), wo=nrm((C, C)),
                    bq=nrm((C,), 0.02), bk=nrm((C,), 0.02),
                    bv=nrm((C,), 0.02), bo=nrm((C,), 0.02))

    def ffm():
        H = C * expansion_rate
        return dict(w1=nrm((H, C)), b1=nrm((H,), 0.02), w2=nrm((C, H)), b2=nrm((C,), 0.02),
                    g=1.0 + nrm((C,), 0.05), b=nrm((C,), 0.05))

    H4 = 4 * C
    return dict(
        squ=dict(fc_w=nrm((C, in_dim)), fc_b=nrm((C,), 0.02),
                 ln_g=1.0 + nrm((C,), 0.05), ln_b=nrm((C,), 0.05)),
        gfem=dict(w1=nrm((H4, C, num_nodes)), b1=nrm((H4,), 0.02),
                  gn1_g=1.0 + nrm((H4,), 0.05), gn1_b=nrm((H4,), 0.05),
                  w2=nrm((C, H4, 1)), b2=nrm((C,), 0.02),
                  gn2_g=1.0 + nrm((C,), 0.05), gn2_b=nrm((C,), 0.05)),
        FAM=mha(),
        ARM=mha(),
        edge_proj=ffm(),
        gnn=dict(A1=nrm((C, C)), B1=nrm((C, C)), E1=nrm((C, C)), U1=nrm((C, C)), V1=nrm((C, C)),
                 A2=nrm((C, C)), B2=nrm((C, C)), E2=nrm((C, C)), U2=nrm((C, C)), V2=nrm((C, C)),
                 bne1_g=jnp.ones((C,), jnp.float32), bne1_b=jnp.zeros((C,), jnp.float32),
                 bnv1_g=jnp.ones((C,), jnp.float32), bnv1_b=jnp.zeros((C,), jnp.float32),
                 bne2_g=jnp.ones((C,), jnp.float32), bne2_b=jnp.zeros((C,), jnp.float32),
                 bnv2_g=jnp.ones((C,), jnp.float32), bnv2_b=jnp.zeros((C,), jnp.float32)),
        ffm=ffm(),
    )


if __name__ == "__main__":
    key = jax.random.PRNGKey(0)
    k_x, k_p = jax.random.split(key)

    B, N, Din, C = 2, 8, 64, 32        # batch, num_nodes, input dim, internal dim (squ -> 32)
    x = jax.random.normal(k_x, (B, N, Din), jnp.float32)
    params = make_params(k_p, Din, C, N)

    fwd = jax.jit(graphsep_forward)
    out = jax.block_until_ready(fwd(x, params))
    assert out["sep_node"].shape == (B, N, C)
    assert out["noi_node"].shape == (B, N, C)

    ref = _graphsep_ref(x, params)
    for name in ("sep_node", "noi_node"):
        a, b = out[name], ref[name]
        err = float(jnp.max(jnp.abs(a - b)))
        assert jnp.allclose(a, b, rtol=2e-3, atol=2e-3), (name, err)

    print("KERNEL_OK")
</pallas_src>

<mosaic_0001>
module attributes {stable_mosaic.version = 11 : i64} {
  func.func @_graphsep_kernel(%arg0: i32, %arg1: memref<1x8x64xf32, #tpu.memory_space<vmem>>, %arg2: memref<64x32xf32, #tpu.memory_space<vmem>>, %arg3: memref<256x128xf32, #tpu.memory_space<vmem>>, %arg4: memref<128x128xf32, #tpu.memory_space<vmem>>, %arg5: memref<128x32xf32, #tpu.memory_space<vmem>>, %arg6: memref<32x32xf32, #tpu.memory_space<vmem>>, %arg7: memref<32x32xf32, #tpu.memory_space<vmem>>, %arg8: memref<32x128xf32, #tpu.memory_space<vmem>>, %arg9: memref<128x32xf32, #tpu.memory_space<vmem>>, %arg10: memref<32x128xf32, #tpu.memory_space<vmem>>, %arg11: memref<32x128xf32, #tpu.memory_space<vmem>>, %arg12: memref<32x32xf32, #tpu.memory_space<vmem>>, %arg13: memref<32x32xf32, #tpu.memory_space<vmem>>, %arg14: memref<32x128xf32, #tpu.memory_space<vmem>>, %arg15: memref<128x32xf32, #tpu.memory_space<vmem>>, %arg16: memref<21x32xf32, #tpu.memory_space<vmem>>, %arg17: memref<5x128xf32, #tpu.memory_space<vmem>>, %arg18: memref<1x8x32xf32, #tpu.memory_space<vmem>>, %arg19: memref<1x8x32xf32, #tpu.memory_space<vmem>>, %arg20: memref<64x32xf32, #tpu.memory_space<vmem>>, %arg21: memref<8x32xf32, #tpu.memory_space<vmem>>) attributes {dimension_semantics = [#tpu.dimension_semantics<parallel>], iteration_bounds = array<i64: 2>, scalar_prefetch = 0 : i64, scratch_operands = 2 : i64, tpu.core_type = #tpu.core_type<tc>, window_params = [{transform_indices = @transform_0, window_bounds = array<i64: 1, 8, 64>}, {pipeline_mode = #tpu.pipeline_mode<synchronous>, transform_indices = @transform_1, window_bounds = array<i64: 64, 32>}, {pipeline_mode = #tpu.pipeline_mode<synchronous>, transform_indices = @transform_2, window_bounds = array<i64: 256, 128>}, {pipeline_mode = #tpu.pipeline_mode<synchronous>, transform_indices = @transform_3, window_bounds = array<i64: 128, 128>}, {pipeline_mode = #tpu.pipeline_mode<synchronous>, transform_indices = @transform_4, window_bounds = array<i64: 128, 32>}, {pipeline_mode = #tpu.pipeline_mode<synchronous>, transform_indices = @transform_5, window_bounds = array<i64: 32, 32>}, {pipeline_mode = #tpu.pipeline_mode<synchronous>, transform_indices = @transform_6, window_bounds = array<i64: 32, 32>}, {pipeline_mode = #tpu.pipeline_mode<synchronous>, transform_indices = @transform_7, window_bounds = array<i64: 32, 128>}, {pipeline_mode = #tpu.pipeline_mode<synchronous>, transform_indices = @transform_8, window_bounds = array<i64: 128, 32>}, {pipeline_mode = #tpu.pipeline_mode<synchronous>, transform_indices = @transform_9, window_bounds = array<i64: 32, 128>}, {pipeline_mode = #tpu.pipeline_mode<synchronous>, transform_indices = @transform_10, window_bounds = array<i64: 32, 128>}, {pipeline_mode = #tpu.pipeline_mode<synchronous>, transform_indices = @transform_11, window_bounds = array<i64: 32, 32>}, {pipeline_mode = #tpu.pipeline_mode<synchronous>, transform_indices = @transform_12, window_bounds = array<i64: 32, 32>}, {pipeline_mode = #tpu.pipeline_mode<synchronous>, transform_indices = @transform_13, window_bounds = array<i64: 32, 128>}, {pipeline_mode = #tpu.pipeline_mode<synchronous>, transform_indices = @transform_14, window_bounds = array<i64: 128, 32>}, {pipeline_mode = #tpu.pipeline_mode<synchronous>, transform_indices = @transform_15, window_bounds = array<i64: 21, 32>}, {pipeline_mode = #tpu.pipeline_mode<synchronous>, transform_indices = @transform_16, window_bounds = array<i64: 5, 128>}, {transform_indices = @transform_17, window_bounds = array<i64: 1, 8, 32>}, {transform_indices = @transform_18, window_bounds = array<i64: 1, 8, 32>}]} {
    %c0 = arith.constant 0 : index
    %c0_0 = arith.constant 0 : index
    %c0_1 = arith.constant 0 : index
    %0 = vector.load %arg1[%c0, %c0_0, %c0_1] : memref<1x8x64xf32, #tpu.memory_space<vmem>>, vector<1x8x64xf32>
    %1 = vector.shape_cast %0 : vector<1x8x64xf32> to vector<8x64xf32>
    %c0_2 = arith.constant 0 : index
    %c0_3 = arith.constant 0 : index
    %2 = vector.load %arg2[%c0_2, %c0_3] : memref<64x32xf32, #tpu.memory_space<vmem>>, vector<64x32xf32>
    %cst = arith.constant dense<0.000000e+00> : vector<8x32xf32>
    %3 = tpu.matmul %1, %2, %cst {dimension_numbers = #tpu.dot_dimension_numbers<[1], [0], [0], [1], [0, 0, 1, 1], [], []>} : vector<8x64xf32>, vector<64x32xf32>, vector<8x32xf32> -> vector<8x32xf32>
    %c0_4 = arith.constant 0 : index
    %c0_5 = arith.constant 0 : index
    %4 = vector.load %arg16[%c0_4, %c0_5] : memref<21x32xf32, #tpu.memory_space<vmem>>, vector<1x32xf32>
    %5 = vector.broadcast %4 : vector<1x32xf32> to vector<8x32xf32>
    %6 = arith.addf %3, %5 : vector<8x32xf32>
    %c1 = arith.constant 1 : index
    %c0_6 = arith.constant 0 : index
    %7 = vector.load %arg16[%c1, %c0_6] : memref<21x32xf32, #tpu.memory_space<vmem>>, vector<1x32xf32>
    %c2 = arith.constant 2 : index
    %c0_7 = arith.constant 0 : index
    %8 = vector.load %arg16[%c2, %c0_7] : memref<21x32xf32, #tpu.memory_space<vmem>>, vector<1x32xf32>
    %cst_8 = arith.constant dense<0.000000e+00> : vector<8xf32>
    %9 = vector.multi_reduction <add>, %6, %cst_8 [1] : vector<8x32xf32> to vector<8xf32>
    %10 = vector.shape_cast %9 : vector<8xf32> to vector<8x1xf32>
    %cst_9 = arith.constant 3.200000e+01 : f32
    %11 = vector.broadcast %cst_9 : f32 to vector<8x1xf32>
    %12 = arith.divf %10, %11 : vector<8x1xf32>
    %13 = vector.broadcast %12 : vector<8x1xf32> to vector<8x32xf32>
    %14 = arith.subf %6, %13 : vector<8x32xf32>
    %15 = arith.mulf %14, %14 : vector<8x32xf32>
    %cst_10 = arith.constant dense<0.000000e+00> : vector<8xf32>
    %16 = vector.multi_reduction <add>, %15, %cst_10 [1] : vector<8x32xf32> to vector<8xf32>
    %17 = vector.shape_cast %16 : vector<8xf32> to vector<8x1xf32>
    %cst_11 = arith.constant 3.200000e+01 : f32
    %18 = vector.broadcast %cst_11 : f32 to vector<8x1xf32>
    %19 = arith.divf %17, %18 : vector<8x1xf32>
    %20 = vector.broadcast %12 : vector<8x1xf32> to vector<8x32xf32>
    %21 = arith.subf %6, %20 : vector<8x32xf32>
    %cst_12 = arith.constant 9.99999974E-6 : f32
    %22 = vector.broadcast %cst_12 : f32 to vector<8x1xf32>
    %23 = arith.addf %19, %22 : vector<8x1xf32>
    %24 = math.rsqrt %23 : vector<8x1xf32>
    %25 = vector.broadcast %24 : vector<8x1xf32> to vector<8x32xf32>
    %26 = arith.mulf %21, %25 : vector<8x32xf32>
    %27 = vector.broadcast %7 : vector<1x32xf32> to vector<8x32xf32>
    %28 = arith.mulf %26, %27 : vector<8x32xf32>
    %29 = vector.broadcast %8 : vector<1x32xf32> to vector<8x32xf32>
    %30 = arith.addf %28, %29 : vector<8x32xf32>
    %cst_13 = arith.constant 0.000000e+00 : f32
    %31 = vector.broadcast %cst_13 : f32 to vector<8x32xf32>
    %32 = arith.maximumf %30, %31 : vector<8x32xf32>
    %c0_14 = arith.constant 0 : index
    %c0_15 = arith.constant 0 : index
    %33 = vector.load %arg17[%c0_14, %c0_15] : memref<5x128xf32, #tpu.memory_space<vmem>>, vector<1x128xf32>
    %34 = vector.extract_strided_slice %32 {offsets = [0, 0], sizes = [1, 32], strides = [1, 1]} : vector<8x32xf32> to vector<1x32xf32>
    %c0_16 = arith.constant 0 : index
    %c0_17 = arith.constant 0 : index
    %35 = vector.load %arg3[%c0_16, %c0_17] : memref<256x128xf32, #tpu.memory_space<vmem>>, vector<32x128xf32>
    %cst_18 = arith.constant dense<0.000000e+00> : vector<1x128xf32>
    %36 = tpu.matmul %34, %35, %cst_18 {dimension_numbers = #tpu.dot_dimension_numbers<[1], [0], [0], [1], [0, 0, 1, 1], [], []>} : vector<1x32xf32>, vector<32x128xf32>, vector<1x128xf32> -> vector<1x128xf32>
    %37 = arith.addf %33, %36 : vector<1x128xf32>
    %38 = vector.extract_strided_slice %32 {offsets = [1, 0], sizes = [1, 32], strides = [1, 1]} : vector<8x32xf32> to vector<1x32xf32>
    %c32 = arith.constant 32 : index
    %c0_19 = arith.constant 0 : index
    %39 = vector.load %arg3[%c32, %c0_19] : memref<256x128xf32, #tpu.memory_space<vmem>>, vector<32x128xf32>
    %cst_20 = arith.constant dense<0.000000e+00> : vector<1x128xf32>
    %40 = tpu.matmul %38, %39, %cst_20 {dimension_numbers = #tpu.dot_dimension_numbers<[1], [0], [0], [1], [0, 0, 1, 1], [], []>} : vector<1x32xf32>, vector<32x128xf32>, vector<1x128xf32> -> vector<1x128xf32>
    %41 = arith.addf %37, %40 : vector<1x128xf32>
    %42 = vector.extract_strided_slice %32 {offsets = [2, 0], sizes = [1, 32], strides = [1, 1]} : vector<8x32xf32> to vector<1x32xf32>
    %c64 = arith.constant 64 : index
    %c0_21 = arith.constant 0 : index
    %43 = vector.load %arg3[%c64, %c0_21] : memref<256x128xf32, #tpu.memory_space<vmem>>, vector<32x128xf32>
    %cst_22 = arith.constant dense<0.000000e+00> : vector<1x128xf32>
    %44 = tpu.matmul %42, %43, %cst_22 {dimension_numbers = #tpu.dot_dimension_numbers<[1], [0], [0], [1], [0, 0, 1, 1], [], []>} : vector<1x32xf32>, vector<32x128xf32>, vector<1x128xf32> -> vector<1x128xf32>
    %45 = arith.addf %41, %44 : vector<1x128xf32>
    %46 = vector.extract_strided_slice %32 {offsets = [3, 0], sizes = [1, 32], strides = [1, 1]} : vector<8x32xf32> to vector<1x32xf32>
    %c96 = arith.constant 96 : index
    %c0_23 = arith.constant 0 : index
    %47 = vector.load %arg3[%c96, %c0_23] : memref<256x128xf32, #tpu.memory_space<vmem>>, vector<32x128xf32>
    %cst_24 = arith.constant dense<0.000000e+00> : vector<1x128xf32>
    %48 = tpu.matmul %46, %47, %cst_24 {dimension_numbers = #tpu.dot_dimension_numbers<[1], [0], [0], [1], [0, 0, 1, 1], [], []>} : vector<1x32xf32>, vector<32x128xf32>, vector<1x128xf32> -> vector<1x128xf32>
    %49 = arith.addf %45, %48 : vector<1x128xf32>
    %50 = vector.extract_strided_slice %32 {offsets = [4, 0], sizes = [1, 32], strides = [1, 1]} : vector<8x32xf32> to vector<1x32xf32>
    %c128 = arith.constant 128 : index
    %c0_25 = arith.constant 0 : index
    %51 = vector.load %arg3[%c128, %c0_25] : memref<256x128xf32, #tpu.memory_space<vmem>>, vector<32x128xf32>
    %cst_26 = arith.constant dense<0.000000e+00> : vector<1x128xf32>
    %52 = tpu.matmul %50, %51, %cst_26 {dimension_numbers = #tpu.dot_dimension_numbers<[1], [0], [0], [1], [0, 0, 1, 1], [], []>} : vector<1x32xf32>, vector<32x128xf32>, vector<1x128xf32> -> vector<1x128xf32>
    %53 = arith.addf %49, %52 : vector<1x128xf32>
    %54 = vector.extract_strided_slice %32 {offsets = [5, 0], sizes = [1, 32], strides = [1, 1]} : vector<8x32xf32> to vector<1x32xf32>
    %c160 = arith.constant 160 : index
    %c0_27 = arith.constant 0 : index
    %55 = vector.load %arg3[%c160, %c0_27] : memref<256x128xf32, #tpu.memory_space<vmem>>, vector<32x128xf32>
    %cst_28 = arith.constant dense<0.000000e+00> : vector<1x128xf32>
    %56 = tpu.matmul %54, %55, %cst_28 {dimension_numbers = #tpu.dot_dimension_numbers<[1], [0], [0], [1], [0, 0, 1, 1], [], []>} : vector<1x32xf32>, vector<32x128xf32>, vector<1x128xf32> -> vector<1x128xf32>
    %57 = arith.addf %53, %56 : vector<1x128xf32>
    %58 = vector.extract_strided_slice %32 {offsets = [6, 0], sizes = [1, 32], strides = [1, 1]} : vector<8x32xf32> to vector<1x32xf32>
    %c192 = arith.constant 192 : index
    %c0_29 = arith.constant 0 : index
    %59 = vector.load %arg3[%c192, %c0_29] : memref<256x128xf32, #tpu.memory_space<vmem>>, vector<32x128xf32>
    %cst_30 = arith.constant dense<0.000000e+00> : vector<1x128xf32>
    %60 = tpu.matmul %58, %59, %cst_30 {dimension_numbers = #tpu.dot_dimension_numbers<[1], [0], [0], [1], [0, 0, 1, 1], [], []>} : vector<1x32xf32>, vector<32x128xf32>, vector<1x128xf32> -> vector<1x128xf32>
    %61 = arith.addf %57, %60 : vector<1x128xf32>
    %62 = vector.extract_strided_slice %32 {offsets = [7, 0], sizes = [1, 32], strides = [1, 1]} : vector<8x32xf32> to vector<1x32xf32>
    %c224 = arith.constant 224 : index
    %c0_31 = arith.constant 0 : index
    %63 = vector.load %arg3[%c224, %c0_31] : memref<256x128xf32, #tpu.memory_space<vmem>>, vector<32x128xf32>
    %cst_32 = arith.constant dense<0.000000e+00> : vector<1x128xf32>
    %64 = tpu.matmul %62, %63, %cst_32 {dimension_numbers = #tpu.dot_dimension_numbers<[1], [0], [0], [1], [0, 0, 1, 1], [], []>} : vector<1x32xf32>, vector<32x128xf32>, vector<1x128xf32> -> vector<1x128xf32>
    %65 = arith.addf %61, %64 : vector<1x128xf32>
    %c0_33 = arith.constant 0 : index
    %c0_34 = arith.constant 0 : index
    %66 = vector.load %arg4[%c0_33, %c0_34] : memref<128x128xf32, #tpu.memory_space<vmem>>, vector<128x128xf32>
    %c1_35 = arith.constant 1 : index
    %c0_36 = arith.constant 0 : index
    %67 = vector.load %arg17[%c1_35, %c0_36] : memref<5x128xf32, #tpu.memory_space<vmem>>, vector<1x128xf32>
    %c2_37 = arith.constant 2 : index
    %c0_38 = arith.constant 0 : index
    %68 = vector.load %arg17[%c2_37, %c0_38] : memref<5x128xf32, #tpu.memory_space<vmem>>, vector<1x128xf32>
    %cst_39 = arith.constant dense<0.000000e+00> : vector<1x128xf32>
    %69 = tpu.matmul %65, %66, %cst_39 {dimension_numbers = #tpu.dot_dimension_numbers<[1], [0], [0], [1], [0, 0, 1, 1], [], []>} : vector<1x128xf32>, vector<128x128xf32>, vector<1x128xf32> -> vector<1x128xf32>
    %70 = arith.subf %65, %69 : vector<1x128xf32>
    %71 = arith.mulf %70, %70 : vector<1x128xf32>
    %cst_40 = arith.constant dense<0.000000e+00> : vector<1x128xf32>
    %72 = tpu.matmul %71, %66, %cst_40 {dimension_numbers = #tpu.dot_dimension_numbers<[1], [0], [0], [1], [0, 0, 1, 1], [], []>} : vector<1x128xf32>, vector<128x128xf32>, vector<1x128xf32> -> vector<1x128xf32>
    %cst_41 = arith.constant 9.99999974E-6 : f32
    %73 = vector.broadcast %cst_41 : f32 to vector<1x128xf32>
    %74 = arith.addf %72, %73 : vector<1x128xf32>
    %75 = math.rsqrt %74 : vector<1x128xf32>
    %76 = arith.mulf %70, %75 : vector<1x128xf32>
    %77 = arith.mulf %76, %67 : vector<1x128xf32>
    %78 = arith.addf %77, %68 : vector<1x128xf32>
    %cst_42 = arith.constant 0.000000e+00 : f32
    %79 = vector.broadcast %cst_42 : f32 to vector<1x128xf32>
    %80 = arith.maximumf %78, %79 : vector<1x128xf32>
    %c0_43 = arith.constant 0 : index
    %c0_44 = arith.constant 0 : index
    %81 = vector.load %arg5[%c0_43, %c0_44] : memref<128x32xf32, #tpu.memory_space<vmem>>, vector<128x32xf32>
    %cst_45 = arith.constant dense<0.000000e+00> : vector<1x32xf32>
    %82 = tpu.matmul %80, %81, %cst_45 {dimension_numbers = #tpu.dot_dimension_numbers<[1], [0], [0], [1], [0, 0, 1, 1], [], []>} : vector<1x128xf32>, vector<128x32xf32>, vector<1x32xf32> -> vector<1x32xf32>
    %c3 = arith.constant 3 : index
    %c0_46 = arith.constant 0 : index
    %83 = vector.load %arg16[%c3, %c0_46] : memref<21x32xf32, #tpu.memory_space<vmem>>, vector<1x32xf32>
    %84 = arith.addf %82, %83 : vector<1x32xf32>
    %c0_47 = arith.constant 0 : index
    %c0_48 = arith.constant 0 : index
    %85 = vector.load %arg6[%c0_47, %c0_48] : memref<32x32xf32, #tpu.memory_space<vmem>>, vector<32x32xf32>
    %c4 = arith.constant 4 : index
    %c0_49 = arith.constant 0 : index
    %86 = vector.load %arg16[%c4, %c0_49] : memref<21x32xf32, #tpu.memory_space<vmem>>, vector<1x32xf32>
    %c5 = arith.constant 5 : index
    %c0_50 = arith.constant 0 : index
    %87 = vector.load %arg16[%c5, %c0_50] : memref<21x32xf32, #tpu.memory_space<vmem>>, vector<1x32xf32>
    %cst_51 = arith.constant dense<0.000000e+00> : vector<1x32xf32>
    %88 = tpu.matmul %84, %85, %cst_51 {dimension_numbers = #tpu.dot_dimension_numbers<[1], [0], [0], [1], [0, 0, 1, 1], [], []>} : vector<1x32xf32>, vector<32x32xf32>, vector<1x32xf32> -> vector<1x32xf32>
    %89 = arith.subf %84, %88 : vector<1x32xf32>
    %90 = arith.mulf %89, %89 : vector<1x32xf32>
    %cst_52 = arith.constant dense<0.000000e+00> : vector<1x32xf32>
    %91 = tpu.matmul %90, %85, %cst_52 {dimension_numbers = #tpu.dot_dimension_numbers<[1], [0], [0], [1], [0, 0, 1, 1], [], []>} : vector<1x32xf32>, vector<32x32xf32>, vector<1x32xf32> -> vector<1x32xf32>
    %cst_53 = arith.constant 9.99999974E-6 : f32
    %92 = vector.broadcast %cst_53 : f32 to vector<1x32xf32>
    %93 = arith.addf %91, %92 : vector<1x32xf32>
    %94 = math.rsqrt %93 : vector<1x32xf32>
    %95 = arith.mulf %89, %94 : vector<1x32xf32>
    %96 = arith.mulf %95, %86 : vector<1x32xf32>
    %97 = arith.addf %96, %87 : vector<1x32xf32>
    %cst_54 = arith.constant 0.000000e+00 : f32
    %98 = vector.broadcast %cst_54 : f32 to vector<1x32xf32>
    %99 = arith.maximumf %97, %98 : vector<1x32xf32>
    %c0_55 = arith.constant 0 : index
    %c0_56 = arith.constant 0 : index
    %100 = vector.load %arg7[%c0_55, %c0_56] : memref<32x32xf32, #tpu.memory_space<vmem>>, vector<32x32xf32>
    %cst_57 = arith.constant dense<0.000000e+00> : vector<1x32xf32>
    %101 = tpu.matmul %99, %100, %cst_57 {dimension_numbers = #tpu.dot_dimension_numbers<[1], [0], [0], [1], [0, 0, 1, 1], [], []>} : vector<1x32xf32>, vector<32x32xf32>, vector<1x32xf32> -> vector<1x32xf32>
    %c6 = arith.constant 6 : index
    %c0_58 = arith.constant 0 : index
    %102 = vector.load %arg16[%c6, %c0_58] : memref<21x32xf32, #tpu.memory_space<vmem>>, vector<1x32xf32>
    %103 = arith.addf %101, %102 : vector<1x32xf32>
    %c0_59 = arith.constant 0 : index
    %c0_60 = arith.constant 0 : index
    %104 = vector.load %arg8[%c0_59, %c0_60] : memref<32x128xf32, #tpu.memory_space<vmem>>, vector<32x128xf32>
    %cst_61 = arith.constant dense<0.000000e+00> : vector<1x128xf32>
    %105 = tpu.matmul %103, %104, %cst_61 {dimension_numbers = #tpu.dot_dimension_numbers<[1], [0], [0], [1], [0, 0, 1, 1], [], []>} : vector<1x32xf32>, vector<32x128xf32>, vector<1x128xf32> -> vector<1x128xf32>
    %c3_62 = arith.constant 3 : index
    %c0_63 = arith.constant 0 : index
    %106 = vector.load %arg17[%c3_62, %c0_63] : memref<5x128xf32, #tpu.memory_space<vmem>>, vector<1x128xf32>
    %107 = arith.addf %105, %106 : vector<1x128xf32>
    %cst_64 = arith.constant 0.000000e+00 : f32
    %108 = vector.broadcast %cst_64 : f32 to vector<1x128xf32>
    %109 = arith.maximumf %107, %108 : vector<1x128xf32>
    %c0_65 = arith.constant 0 : index
    %c0_66 = arith.constant 0 : index
    %110 = vector.load %arg9[%c0_65, %c0_66] : memref<128x32xf32, #tpu.memory_space<vmem>>, vector<128x32xf32>
    %cst_67 = arith.constant dense<0.000000e+00> : vector<1x32xf32>
    %111 = tpu.matmul %109, %110, %cst_67 {dimension_numbers = #tpu.dot_dimension_numbers<[1], [0], [0], [1], [0, 0, 1, 1], [], []>} : vector<1x128xf32>, vector<128x32xf32>, vector<1x32xf32> -> vector<1x32xf32>
    %112 = arith.addf %103, %111 : vector<1x32xf32>
    %c7 = arith.constant 7 : index
    %c0_68 = arith.constant 0 : index
    %113 = vector.load %arg16[%c7, %c0_68] : memref<21x32xf32, #tpu.memory_space<vmem>>, vector<1x32xf32>
    %114 = arith.addf %112, %113 : vector<1x32xf32>
    %c8 = arith.constant 8 : index
    %c0_69 = arith.constant 0 : index
    %115 = vector.load %arg16[%c8, %c0_69] : memref<21x32xf32, #tpu.memory_space<vmem>>, vector<1x32xf32>
    %c9 = arith.constant 9 : index
    %c0_70 = arith.constant 0 : index
    %116 = vector.load %arg16[%c9, %c0_70] : memref<21x32xf32, #tpu.memory_space<vmem>>, vector<1x32xf32>
    %cst_71 = arith.constant dense<0.000000e+00> : vector<1xf32>
    %117 = vector.multi_reduction <add>, %114, %cst_71 [1] : vector<1x32xf32> to vector<1xf32>
    %118 = vector.shape_cast %117 : vector<1xf32> to vector<1x1xf32>
    %cst_72 = arith.constant 3.200000e+01 : f32
    %119 = vector.broadcast %cst_72 : f32 to vector<1x1xf32>
    %120 = arith.divf %118, %119 : vector<1x1xf32>
    %121 = vector.broadcast %120 : vector<1x1xf32> to vector<1x32xf32>
    %122 = arith.subf %114, %121 : vector<1x32xf32>
    %123 = arith.mulf %122, %122 : vector<1x32xf32>
    %cst_73 = arith.constant dense<0.000000e+00> : vector<1xf32>
    %124 = vector.multi_reduction <add>, %123, %cst_73 [1] : vector<1x32xf32> to vector<1xf32>
    %125 = vector.shape_cast %124 : vector<1xf32> to vector<1x1xf32>
    %cst_74 = arith.constant 3.200000e+01 : f32
    %126 = vector.broadcast %cst_74 : f32 to vector<1x1xf32>
    %127 = arith.divf %125, %126 : vector<1x1xf32>
    %128 = vector.broadcast %120 : vector<1x1xf32> to vector<1x32xf32>
    %129 = arith.subf %114, %128 : vector<1x32xf32>
    %cst_75 = arith.constant 9.99999974E-6 : f32
    %130 = vector.broadcast %cst_75 : f32 to vector<1x1xf32>
    %131 = arith.addf %127, %130 : vector<1x1xf32>
    %132 = math.rsqrt %131 : vector<1x1xf32>
    %133 = vector.broadcast %132 : vector<1x1xf32> to vector<1x32xf32>
    %134 = arith.mulf %129, %133 : vector<1x32xf32>
    %135 = arith.mulf %134, %115 : vector<1x32xf32>
    %136 = arith.addf %135, %116 : vector<1x32xf32>
    %137 = vector.shape_cast %136 : vector<1x32xf32> to vector<1x32xf32>
    %138 = vector.broadcast %137 : vector<1x32xf32> to vector<64x32xf32>
    %c10 = arith.constant 10 : index
    %c0_76 = arith.constant 0 : index
    %139 = vector.load %arg16[%c10, %c0_76] : memref<21x32xf32, #tpu.memory_space<vmem>>, vector<1x32xf32>
    %c11 = arith.constant 11 : index
    %c0_77 = arith.constant 0 : index
    %140 = vector.load %arg16[%c11, %c0_77] : memref<21x32xf32, #tpu.memory_space<vmem>>, vector<1x32xf32>
    %c12 = arith.constant 12 : index
    %c0_78 = arith.constant 0 : index
    %141 = vector.load %arg16[%c12, %c0_78] : memref<21x32xf32, #tpu.memory_space<vmem>>, vector<1x32xf32>
    %c13 = arith.constant 13 : index
    %c0_79 = arith.constant 0 : index
    %142 = vector.load %arg16[%c13, %c0_79] : memref<21x32xf32, #tpu.memory_space<vmem>>, vector<1x32xf32>
    %c0_80 = arith.constant 0 : index
    %c0_81 = arith.constant 0 : index
    %143 = vector.load %arg10[%c0_80, %c0_81] : memref<32x128xf32, #tpu.memory_space<vmem>>, vector<32x128xf32>
    %cst_82 = arith.constant dense<0.000000e+00> : vector<8x128xf32>
    %144 = tpu.matmul %32, %143, %cst_82 {dimension_numbers = #tpu.dot_dimension_numbers<[1], [0], [0], [1], [0, 0, 1, 1], [], []>} : vector<8x32xf32>, vector<32x128xf32>, vector<8x128xf32> -> vector<8x128xf32>
    %145 = vector.extract_strided_slice %144 {offsets = [0, 0], sizes = [8, 32], strides = [1, 1]} : vector<8x128xf32> to vector<8x32xf32>
    %146 = vector.extract_strided_slice %144 {offsets = [0, 32], sizes = [8, 32], strides = [1, 1]} : vector<8x128xf32> to vector<8x32xf32>
    %147 = vector.extract_strided_slice %144 {offsets = [0, 64], sizes = [8, 32], strides = [1, 1]} : vector<8x128xf32> to vector<8x32xf32>
    %148 = vector.extract_strided_slice %144 {offsets = [0, 96], sizes = [8, 32], strides = [1, 1]} : vector<8x128xf32> to vector<8x32xf32>
    %149 = vector.extract_strided_slice %145 {offsets = [0, 0], sizes = [1, 32], strides = [1, 1]} : vector<8x32xf32> to vector<1x32xf32>
    %150 = vector.shape_cast %149 : vector<1x32xf32> to vector<1x32xf32>
    %151 = vector.broadcast %150 : vector<1x32xf32> to vector<8x32xf32>
    %152 = arith.addf %151, %146 : vector<8x32xf32>
    %c0_83 = arith.constant 0 : index
    %c0_84 = arith.constant 0 : index
    %153 = vector.load %arg20[%c0_83, %c0_84] : memref<64x32xf32, #tpu.memory_space<vmem>>, vector<8x32xf32>
    tpu.vector_store %arg20[%c0_83, %c0_84], %152 {strides = array<i32>} : memref<64x32xf32, #tpu.memory_space<vmem>>, vector<8x32xf32>,
    %154 = vector.extract_strided_slice %145 {offsets = [1, 0], sizes = [1, 32], strides = [1, 1]} : vector<8x32xf32> to vector<1x32xf32>
    %155 = vector.shape_cast %154 : vector<1x32xf32> to vector<1x32xf32>
    %156 = vector.broadcast %155 : vector<1x32xf32> to vector<8x32xf32>
    %157 = arith.addf %156, %146 : vector<8x32xf32>
    %c8_85 = arith.constant 8 : index
    %c0_86 = arith.constant 0 : index
    %158 = vector.load %arg20[%c8_85, %c0_86] : memref<64x32xf32, #tpu.memory_space<vmem>>, vector<8x32xf32>
    tpu.vector_store %arg20[%c8_85, %c0_86], %157 {strides = array<i32>} : memref<64x32xf32, #tpu.memory_space<vmem>>, vector<8x32xf32>,
    %159 = vector.extract_strided_slice %145 {offsets = [2, 0], sizes = [1, 32], strides = [1, 1]} : vector<8x32xf32> to vector<1x32xf32>
    %160 = vector.shape_cast %159 : vector<1x32xf32> to vector<1x32xf32>
    %161 = vector.broadcast %160 : vector<1x32xf32> to vector<8x32xf32>
    %162 = arith.addf %161, %146 : vector<8x32xf32>
    %c16 = arith.constant 16 : index
    %c0_87 = arith.constant 0 : index
    %163 = vector.load %arg20[%c16, %c0_87] : memref<64x32xf32, #tpu.memory_space<vmem>>, vector<8x32xf32>
    tpu.vector_store %arg20[%c16, %c0_87], %162 {strides = array<i32>} : memref<64x32xf32, #tpu.memory_space<vmem>>, vector<8x32xf32>,
    %164 = vector.extract_strided_slice %145 {offsets = [3, 0], sizes = [1, 32], strides = [1, 1]} : vector<8x32xf32> to vector<1x32xf32>
    %165 = vector.shape_cast %164 : vector<1x32xf32> to vector<1x32xf32>
    %166 = vector.broadcast %165 : vector<1x32xf32> to vector<8x32xf32>
    %167 = arith.addf %166, %146 : vector<8x32xf32>
    %c24 = arith.constant 24 : index
    %c0_88 = arith.constant 0 : index
    %168 = vector.load %arg20[%c24, %c0_88] : memref<64x32xf32, #tpu.memory_space<vmem>>, vector<8x32xf32>
    tpu.vector_store %arg20[%c24, %c0_88], %167 {strides = array<i32>} : memref<64x32xf32, #tpu.memory_space<vmem>>, vector<8x32xf32>,
    %169 = vector.extract_strided_slice %145 {offsets = [4, 0], sizes = [1, 32], strides = [1, 1]} : vector<8x32xf32> to vector<1x32xf32>
    %170 = vector.shape_cast %169 : vector<1x32xf32> to vector<1x32xf32>
    %171 = vector.broadcast %170 : vector<1x32xf32> to vector<8x32xf32>
    %172 = arith.addf %171, %146 : vector<8x32xf32>
    %c32_89 = arith.constant 32 : index
    %c0_90 = arith.constant 0 : index
    %173 = vector.load %arg20[%c32_89, %c0_90] : memref<64x32xf32, #tpu.memory_space<vmem>>, vector<8x32xf32>
    tpu.vector_store %arg20[%c32_89, %c0_90], %172 {strides = array<i32>} : memref<64x32xf32, #tpu.memory_space<vmem>>, vector<8x32xf32>,
    %174 = vector.extract_strided_slice %145 {offsets = [5, 0], sizes = [1, 32], strides = [1, 1]} : vector<8x32xf32> to vector<1x32xf32>
    %175 = vector.shape_cast %174 : vector<1x32xf32> to vector<1x32xf32>
    %176 = vector.broadcast %175 : vector<1x32xf32> to vector<8x32xf32>
    %177 = arith.addf %176, %146 : vector<8x32xf32>
    %c40 = arith.constant 40 : index
    %c0_91 = arith.constant 0 : index
    %178 = vector.load %arg20[%c40, %c0_91] : memref<64x32xf32, #tpu.memory_space<vmem>>, vector<8x32xf32>
    tpu.vector_store %arg20[%c40, %c0_91], %177 {strides = array<i32>} : memref<64x32xf32, #tpu.memory_space<vmem>>, vector<8x32xf32>,
    %179 = vector.extract_strided_slice %145 {offsets = [6, 0], sizes = [1, 32], strides = [1, 1]} : vector<8x32xf32> to vector<1x32xf32>
    %180 = vector.shape_cast %179 : vector<1x32xf32> to vector<1x32xf32>
    %181 = vector.broadcast %180 : vector<1x32xf32> to vector<8x32xf32>
    %182 = arith.addf %181, %146 : vector<8x32xf32>
    %c48 = arith.constant 48 : index
    %c0_92 = arith.constant 0 : index
    %183 = vector.load %arg20[%c48, %c0_92] : memref<64x32xf32, #tpu.memory_space<vmem>>, vector<8x32xf32>
    tpu.vector_store %arg20[%c48, %c0_92], %182 {strides = array<i32>} : memref<64x32xf32, #tpu.memory_space<vmem>>, vector<8x32xf32>,
    %184 = vector.extract_strided_slice %145 {offsets = [7, 0], sizes = [1, 32], strides = [1, 1]} : vector<8x32xf32> to vector<1x32xf32>
    %185 = vector.shape_cast %184 : vector<1x32xf32> to vector<1x32xf32>
    %186 = vector.broadcast %185 : vector<1x32xf32> to vector<8x32xf32>
    %187 = arith.addf %186, %146 : vector<8x32xf32>
    %c56 = arith.constant 56 : index
    %c0_93 = arith.constant 0 : index
    %188 = vector.load %arg20[%c56, %c0_93] : memref<64x32xf32, #tpu.memory_space<vmem>>, vector<8x32xf32>
    tpu.vector_store %arg20[%c56, %c0_93], %187 {strides = array<i32>} : memref<64x32xf32, #tpu.memory_space<vmem>>, vector<8x32xf32>,
    %c0_94 = arith.constant 0 : index
    %c0_95 = arith.constant 0 : index
    %189 = vector.load %arg20[%c0_94, %c0_95] : memref<64x32xf32, #tpu.memory_space<vmem>>, vector<64x32xf32>
    %c0_96 = arith.constant 0 : index
    %c0_97 = arith.constant 0 : index
    %190 = vector.load %arg12[%c0_96, %c0_97] : memref<32x32xf32, #tpu.memory_space<vmem>>, vector<32x32xf32>
    %cst_98 = arith.constant dense<0.000000e+00> : vector<64x32xf32>
    %191 = tpu.matmul %138, %190, %cst_98 {dimension_numbers = #tpu.dot_dimension_numbers<[1], [0], [0], [1], [0, 0, 1, 1], [], []>} : vector<64x32xf32>, vector<32x32xf32>, vector<64x32xf32> -> vector<64x32xf32>
    %192 = arith.addf %189, %191 : vector<64x32xf32>
    %cst_99 = arith.constant dense<0.000000e+00> : vector<64xf32>
    %193 = vector.multi_reduction <add>, %192, %cst_99 [1] : vector<64x32xf32> to vector<64xf32>
    %194 = vector.shape_cast %193 : vector<64xf32> to vector<64x1xf32>
    %cst_100 = arith.constant 3.200000e+01 : f32
    %195 = vector.broadcast %cst_100 : f32 to vector<64x1xf32>
    %196 = arith.divf %194, %195 : vector<64x1xf32>
    %197 = vector.broadcast %196 : vector<64x1xf32> to vector<64x32xf32>
    %198 = arith.subf %192, %197 : vector<64x32xf32>
    %199 = arith.mulf %198, %198 : vector<64x32xf32>
    %cst_101 = arith.constant dense<0.000000e+00> : vector<64xf32>
    %200 = vector.multi_reduction <add>, %199, %cst_101 [1] : vector<64x32xf32> to vector<64xf32>
    %201 = vector.shape_cast %200 : vector<64xf32> to vector<64x1xf32>
    %cst_102 = arith.constant 3.200000e+01 : f32
    %202 = vector.broadcast %cst_102 : f32 to vector<64x1xf32>
    %203 = arith.divf %201, %202 : vector<64x1xf32>
    %204 = vector.broadcast %196 : vector<64x1xf32> to vector<64x32xf32>
    %205 = arith.subf %192, %204 : vector<64x32xf32>
    %cst_103 = arith.constant 9.99999974E-6 : f32
    %206 = vector.broadcast %cst_103 : f32 to vector<64x1xf32>
    %207 = arith.addf %203, %206 : vector<64x1xf32>
    %208 = math.rsqrt %207 : vector<64x1xf32>
    %209 = vector.broadcast %208 : vector<64x1xf32> to vector<64x32xf32>
    %210 = arith.mulf %205, %209 : vector<64x32xf32>
    %211 = vector.broadcast %139 : vector<1x32xf32> to vector<64x32xf32>
    %212 = arith.mulf %210, %211 : vector<64x32xf32>
    %213 = vector.broadcast %140 : vector<1x32xf32> to vector<64x32xf32>
    %214 = arith.addf %212, %213 : vector<64x32xf32>
    %cst_104 = arith.constant 0.000000e+00 : f32
    %215 = vector.broadcast %cst_104 : f32 to vector<64x32xf32>
    %216 = arith.maximumf %214, %215 : vector<64x32xf32>
    %217 = arith.addf %138, %216 : vector<64x32xf32>
    %cst_105 = arith.constant 0.000000e+00 : f32
    %218 = vector.broadcast %cst_105 : f32 to vector<64x32xf32>
    %219 = arith.subf %218, %217 : vector<64x32xf32>
    %220 = math.exp %219 : vector<64x32xf32>
    %cst_106 = arith.constant 1.000000e+00 : f32
    %221 = vector.broadcast %cst_106 : f32 to vector<64x32xf32>
    %222 = arith.addf %221, %220 : vector<64x32xf32>
    %cst_107 = arith.constant 1.000000e+00 : f32
    %223 = vector.broadcast %cst_107 : f32 to vector<64x32xf32>
    %224 = arith.divf %223, %222 : vector<64x32xf32>
    %225 = math.exp %224 : vector<64x32xf32>
    %226 = vector.extract_strided_slice %225 {offsets = [0, 0], sizes = [8, 32], strides = [1, 1]} : vector<64x32xf32> to vector<8x32xf32>
    %cst_108 = arith.constant dense<0.000000e+00> : vector<32xf32>
    %227 = vector.multi_reduction <add>, %226, %cst_108 [0] : vector<8x32xf32> to vector<32xf32>
    %228 = vector.shape_cast %227 : vector<32xf32> to vector<1x32xf32>
    %229 = tpu.reciprocal %228 {approx = true} : vector<1x32xf32> -> vector<1x32xf32>
    %230 = arith.mulf %228, %229 : vector<1x32xf32>
    %cst_109 = arith.constant 2.000000e+00 : f32
    %231 = vector.broadcast %cst_109 : f32 to vector<1x32xf32>
    %232 = arith.subf %231, %230 : vector<1x32xf32>
    %233 = arith.mulf %229, %232 : vector<1x32xf32>
    %234 = vector.broadcast %233 : vector<1x32xf32> to vector<8x32xf32>
    %235 = arith.mulf %226, %234 : vector<8x32xf32>
    %236 = arith.mulf %235, %148 : vector<8x32xf32>
    %cst_110 = arith.constant dense<0.000000e+00> : vector<32xf32>
    %237 = vector.multi_reduction <add>, %236, %cst_110 [0] : vector<8x32xf32> to vector<32xf32>
    %238 = vector.shape_cast %237 : vector<32xf32> to vector<1x32xf32>
    %c0_111 = arith.constant 0 : index
    %c0_112 = arith.constant 0 : index
    %239 = vector.load %arg21[%c0_111, %c0_112] : memref<8x32xf32, #tpu.memory_space<vmem>>, vector<1x32xf32>
    tpu.vector_store %arg21[%c0_111, %c0_112], %238 {strides = array<i32>} : memref<8x32xf32, #tpu.memory_space<vmem>>, vector<1x32xf32>,
    %240 = vector.extract_strided_slice %225 {offsets = [8, 0], sizes = [8, 32], strides = [1, 1]} : vector<64x32xf32> to vector<8x32xf32>
    %cst_113 = arith.constant dense<0.000000e+00> : vector<32xf32>
    %241 = vector.multi_reduction <add>, %240, %cst_113 [0] : vector<8x32xf32> to vector<32xf32>
    %242 = vector.shape_cast %241 : vector<32xf32> to vector<1x32xf32>
    %243 = tpu.reciprocal %242 {approx = true} : vector<1x32xf32> -> vector<1x32xf32>
    %244 = arith.mulf %242, %243 : vector<1x32xf32>
    %cst_114 = arith.constant 2.000000e+00 : f32
    %245 = vector.broadcast %cst_114 : f32 to vector<1x32xf32>
    %246 = arith.subf %245, %244 : vector<1x32xf32>
    %247 = arith.mulf %243, %246 : vector<1x32xf32>
    %248 = vector.broadcast %247 : vector<1x32xf32> to vector<8x32xf32>
    %249 = arith.mulf %240, %248 : vector<8x32xf32>
    %250 = arith.mulf %249, %148 : vector<8x32xf32>
    %cst_115 = arith.constant dense<0.000000e+00> : vector<32xf32>
    %251 = vector.multi_reduction <add>, %250, %cst_115 [0] : vector<8x32xf32> to vector<32xf32>
    %252 = vector.shape_cast %251 : vector<32xf32> to vector<1x32xf32>
    %c1_116 = arith.constant 1 : index
    %c0_117 = arith.constant 0 : index
    %253 = vector.load %arg21[%c1_116, %c0_117] : memref<8x32xf32, #tpu.memory_space<vmem>>, vector<1x32xf32>
    tpu.vector_store %arg21[%c1_116, %c0_117], %252 {strides = array<i32>} : memref<8x32xf32, #tpu.memory_space<vmem>>, vector<1x32xf32>,
    %254 = vector.extract_strided_slice %225 {offsets = [16, 0], sizes = [8, 32], strides = [1, 1]} : vector<64x32xf32> to vector<8x32xf32>
    %cst_118 = arith.constant dense<0.000000e+00> : vector<32xf32>
    %255 = vector.multi_reduction <add>, %254, %cst_118 [0] : vector<8x32xf32> to vector<32xf32>
    %256 = vector.shape_cast %255 : vector<32xf32> to vector<1x32xf32>
    %257 = tpu.reciprocal %256 {approx = true} : vector<1x32xf32> -> vector<1x32xf32>
    %258 = arith.mulf %256, %257 : vector<1x32xf32>
    %cst_119 = arith.constant 2.000000e+00 : f32
    %259 = vector.broadcast %cst_119 : f32 to vector<1x32xf32>
    %260 = arith.subf %259, %258 : vector<1x32xf32>
    %261 = arith.mulf %257, %260 : vector<1x32xf32>
    %262 = vector.broadcast %261 : vector<1x32xf32> to vector<8x32xf32>
    %263 = arith.mulf %254, %262 : vector<8x32xf32>
    %264 = arith.mulf %263, %148 : vector<8x32xf32>
    %cst_120 = arith.constant dense<0.000000e+00> : vector<32xf32>
    %265 = vector.multi_reduction <add>, %264, %cst_120 [0] : vector<8x32xf32> to vector<32xf32>
    %266 = vector.shape_cast %265 : vector<32xf32> to vector<1x32xf32>
    %c2_121 = arith.constant 2 : index
    %c0_122 = arith.constant 0 : index
    %267 = vector.load %arg21[%c2_121, %c0_122] : memref<8x32xf32, #tpu.memory_space<vmem>>, vector<1x32xf32>
    tpu.vector_store %arg21[%c2_121, %c0_122], %266 {strides = array<i32>} : memref<8x32xf32, #tpu.memory_space<vmem>>, vector<1x32xf32>,
    %268 = vector.extract_strided_slice %225 {offsets = [24, 0], sizes = [8, 32], strides = [1, 1]} : vector<64x32xf32> to vector<8x32xf32>
    %cst_123 = arith.constant dense<0.000000e+00> : vector<32xf32>
    %269 = vector.multi_reduction <add>, %268, %cst_123 [0] : vector<8x32xf32> to vector<32xf32>
    %270 = vector.shape_cast %269 : vector<32xf32> to vector<1x32xf32>
    %271 = tpu.reciprocal %270 {approx = true} : vector<1x32xf32> -> vector<1x32xf32>
    %272 = arith.mulf %270, %271 : vector<1x32xf32>
    %cst_124 = arith.constant 2.000000e+00 : f32
    %273 = vector.broadcast %cst_124 : f32 to vector<1x32xf32>
    %274 = arith.subf %273, %272 : vector<1x32xf32>
    %275 = arith.mulf %271, %274 : vector<1x32xf32>
    %276 = vector.broadcast %275 : vector<1x32xf32> to vector<8x32xf32>
    %277 = arith.mulf %268, %276 : vector<8x32xf32>
    %278 = arith.mulf %277, %148 : vector<8x32xf32>
    %cst_125 = arith.constant dense<0.000000e+00> : vector<32xf32>
    %279 = vector.multi_reduction <add>, %278, %cst_125 [0] : vector<8x32xf32> to vector<32xf32>
    %280 = vector.shape_cast %279 : vector<32xf32> to vector<1x32xf32>
    %c3_126 = arith.constant 3 : index
    %c0_127 = arith.constant 0 : index
    %281 = vector.load %arg21[%c3_126, %c0_127] : memref<8x32xf32, #tpu.memory_space<vmem>>, vector<1x32xf32>
    tpu.vector_store %arg21[%c3_126, %c0_127], %280 {strides = array<i32>} : memref<8x32xf32, #tpu.memory_space<vmem>>, vector<1x32xf32>,
    %282 = vector.extract_strided_slice %225 {offsets = [32, 0], sizes = [8, 32], strides = [1, 1]} : vector<64x32xf32> to vector<8x32xf32>
    %cst_128 = arith.constant dense<0.000000e+00> : vector<32xf32>
    %283 = vector.multi_reduction <add>, %282, %cst_128 [0] : vector<8x32xf32> to vector<32xf32>
    %284 = vector.shape_cast %283 : vector<32xf32> to vector<1x32xf32>
    %285 = tpu.reciprocal %284 {approx = true} : vector<1x32xf32> -> vector<1x32xf32>
    %286 = arith.mulf %284, %285 : vector<1x32xf32>
    %cst_129 = arith.constant 2.000000e+00 : f32
    %287 = vector.broadcast %cst_129 : f32 to vector<1x32xf32>
    %288 = arith.subf %287, %286 : vector<1x32xf32>
    %289 = arith.mulf %285, %288 : vector<1x32xf32>
    %290 = vector.broadcast %289 : vector<1x32xf32> to vector<8x32xf32>
    %291 = arith.mulf %282, %290 : vector<8x32xf32>
    %292 = arith.mulf %291, %148 : vector<8x32xf32>
    %cst_130 = arith.constant dense<0.000000e+00> : vector<32xf32>
    %293 = vector.multi_reduction <add>, %292, %cst_130 [0] : vector<8x32xf32> to vector<32xf32>
    %294 = vector.shape_cast %293 : vector<32xf32> to vector<1x32xf32>
    %c4_131 = arith.constant 4 : index
    %c0_132 = arith.constant 0 : index
    %295 = vector.load %arg21[%c4_131, %c0_132] : memref<8x32xf32, #tpu.memory_space<vmem>>, vector<1x32xf32>
    tpu.vector_store %arg21[%c4_131, %c0_132], %294 {strides = array<i32>} : memref<8x32xf32, #tpu.memory_space<vmem>>, vector<1x32xf32>,
    %296 = vector.extract_strided_slice %225 {offsets = [40, 0], sizes = [8, 32], strides = [1, 1]} : vector<64x32xf32> to vector<8x32xf32>
    %cst_133 = arith.constant dense<0.000000e+00> : vector<32xf32>
    %297 = vector.multi_reduction <add>, %296, %cst_133 [0] : vector<8x32xf32> to vector<32xf32>
    %298 = vector.shape_cast %297 : vector<32xf32> to vector<1x32xf32>
    %299 = tpu.reciprocal %298 {approx = true} : vector<1x32xf32> -> vector<1x32xf32>
    %300 = arith.mulf %298, %299 : vector<1x32xf32>
    %cst_134 = arith.constant 2.000000e+00 : f32
    %301 = vector.broadcast %cst_134 : f32 to vector<1x32xf32>
    %302 = arith.subf %301, %300 : vector<1x32xf32>
    %303 = arith.mulf %299, %302 : vector<1x32xf32>
    %304 = vector.broadcast %303 : vector<1x32xf32> to vector<8x32xf32>
    %305 = arith.mulf %296, %304 : vector<8x32xf32>
    %306 = arith.mulf %305, %148 : vector<8x32xf32>
    %cst_135 = arith.constant dense<0.000000e+00> : vector<32xf32>
    %307 = vector.multi_reduction <add>, %306, %cst_135 [0] : vector<8x32xf32> to vector<32xf32>
    %308 = vector.shape_cast %307 : vector<32xf32> to vector<1x32xf32>
    %c5_136 = arith.constant 5 : index
    %c0_137 = arith.constant 0 : index
    %309 = vector.load %arg21[%c5_136, %c0_137] : memref<8x32xf32, #tpu.memory_space<vmem>>, vector<1x32xf32>
    tpu.vector_store %arg21[%c5_136, %c0_137], %308 {strides = array<i32>} : memref<8x32xf32, #tpu.memory_space<vmem>>, vector<1x32xf32>,
    %310 = vector.extract_strided_slice %225 {offsets = [48, 0], sizes = [8, 32], strides = [1, 1]} : vector<64x32xf32> to vector<8x32xf32>
    %cst_138 = arith.constant dense<0.000000e+00> : vector<32xf32>
    %311 = vector.multi_reduction <add>, %310, %cst_138 [0] : vector<8x32xf32> to vector<32xf32>
    %312 = vector.shape_cast %311 : vector<32xf32> to vector<1x32xf32>
    %313 = tpu.reciprocal %312 {approx = true} : vector<1x32xf32> -> vector<1x32xf32>
    %314 = arith.mulf %312, %313 : vector<1x32xf32>
    %cst_139 = arith.constant 2.000000e+00 : f32
    %315 = vector.broadcast %cst_139 : f32 to vector<1x32xf32>
    %316 = arith.subf %315, %314 : vector<1x32xf32>
    %317 = arith.mulf %313, %316 : vector<1x32xf32>
    %318 = vector.broadcast %317 : vector<1x32xf32> to vector<8x32xf32>
    %319 = arith.mulf %310, %318 : vector<8x32xf32>
    %320 = arith.mulf %319, %148 : vector<8x32xf32>
    %cst_140 = arith.constant dense<0.000000e+00> : vector<32xf32>
    %321 = vector.multi_reduction <add>, %320, %cst_140 [0] : vector<8x32xf32> to vector<32xf32>
    %322 = vector.shape_cast %321 : vector<32xf32> to vector<1x32xf32>
    %c6_141 = arith.constant 6 : index
    %c0_142 = arith.constant 0 : index
    %323 = vector.load %arg21[%c6_141, %c0_142] : memref<8x32xf32, #tpu.memory_space<vmem>>, vector<1x32xf32>
    tpu.vector_store %arg21[%c6_141, %c0_142], %322 {strides = array<i32>} : memref<8x32xf32, #tpu.memory_space<vmem>>, vector<1x32xf32>,
    %324 = vector.extract_strided_slice %225 {offsets = [56, 0], sizes = [8, 32], strides = [1, 1]} : vector<64x32xf32> to vector<8x32xf32>
    %cst_143 = arith.constant dense<0.000000e+00> : vector<32xf32>
    %325 = vector.multi_reduction <add>, %324, %cst_143 [0] : vector<8x32xf32> to vector<32xf32>
    %326 = vector.shape_cast %325 : vector<32xf32> to vector<1x32xf32>
    %327 = tpu.reciprocal %326 {approx = true} : vector<1x32xf32> -> vector<1x32xf32>
    %328 = arith.mulf %326, %327 : vector<1x32xf32>
    %cst_144 = arith.constant 2.000000e+00 : f32
    %329 = vector.broadcast %cst_144 : f32 to vector<1x32xf32>
    %330 = arith.subf %329, %328 : vector<1x32xf32>
    %331 = arith.mulf %327, %330 : vector<1x32xf32>
    %332 = vector.broadcast %331 : vector<1x32xf32> to vector<8x32xf32>
    %333 = arith.mulf %324, %332 : vector<8x32xf32>
    %334 = arith.mulf %333, %148 : vector<8x32xf32>
    %cst_145 = arith.constant dense<0.000000e+00> : vector<32xf32>
    %335 = vector.multi_reduction <add>, %334, %cst_145 [0] : vector<8x32xf32> to vector<32xf32>
    %336 = vector.shape_cast %335 : vector<32xf32> to vector<1x32xf32>
    %c7_146 = arith.constant 7 : index
    %c0_147 = arith.constant 0 : index
    %337 = vector.load %arg21[%c7_146, %c0_147] : memref<8x32xf32, #tpu.memory_space<vmem>>, vector<1x32xf32>
    tpu.vector_store %arg21[%c7_146, %c0_147], %336 {strides = array<i32>} : memref<8x32xf32, #tpu.memory_space<vmem>>, vector<1x32xf32>,
    %c0_148 = arith.constant 0 : index
    %c0_149 = arith.constant 0 : index
    %338 = vector.load %arg21[%c0_148, %c0_149] : memref<8x32xf32, #tpu.memory_space<vmem>>, vector<8x32xf32>
    %cst_150 = arith.constant 1.250000e-01 : f32
    %339 = vector.broadcast %cst_150 : f32 to vector<8x32xf32>
    %340 = arith.mulf %338, %339 : vector<8x32xf32>
    %341 = arith.addf %147, %340 : vector<8x32xf32>
    %cst_151 = arith.constant dense<0.000000e+00> : vector<8xf32>
    %342 = vector.multi_reduction <add>, %341, %cst_151 [1] : vector<8x32xf32> to vector<8xf32>
    %343 = vector.shape_cast %342 : vector<8xf32> to vector<8x1xf32>
    %cst_152 = arith.constant 3.200000e+01 : f32
    %344 = vector.broadcast %cst_152 : f32 to vector<8x1xf32>
    %345 = arith.divf %343, %344 : vector<8x1xf32>
    %346 = vector.broadcast %345 : vector<8x1xf32> to vector<8x32xf32>
    %347 = arith.subf %341, %346 : vector<8x32xf32>
    %348 = arith.mulf %347, %347 : vector<8x32xf32>
    %cst_153 = arith.constant dense<0.000000e+00> : vector<8xf32>
    %349 = vector.multi_reduction <add>, %348, %cst_153 [1] : vector<8x32xf32> to vector<8xf32>
    %350 = vector.shape_cast %349 : vector<8xf32> to vector<8x1xf32>
    %cst_154 = arith.constant 3.200000e+01 : f32
    %351 = vector.broadcast %cst_154 : f32 to vector<8x1xf32>
    %352 = arith.divf %350, %351 : vector<8x1xf32>
    %353 = vector.broadcast %345 : vector<8x1xf32> to vector<8x32xf32>
    %354 = arith.subf %341, %353 : vector<8x32xf32>
    %cst_155 = arith.constant 9.99999974E-6 : f32
    %355 = vector.broadcast %cst_155 : f32 to vector<8x1xf32>
    %356 = arith.addf %352, %355 : vector<8x1xf32>
    %357 = math.rsqrt %356 : vector<8x1xf32>
    %358 = vector.broadcast %357 : vector<8x1xf32> to vector<8x32xf32>
    %359 = arith.mulf %354, %358 : vector<8x32xf32>
    %360 = vector.broadcast %141 : vector<1x32xf32> to vector<8x32xf32>
    %361 = arith.mulf %359, %360 : vector<8x32xf32>
    %362 = vector.broadcast %142 : vector<1x32xf32> to vector<8x32xf32>
    %363 = arith.addf %361, %362 : vector<8x32xf32>
    %364 = arith.addf %32, %363 : vector<8x32xf32>
    %cst_156 = arith.constant 0.000000e+00 : f32
    %365 = vector.broadcast %cst_156 : f32 to vector<8x32xf32>
    %366 = arith.maximumf %364, %365 : vector<8x32xf32>
    %c14 = arith.constant 14 : index
    %c0_157 = arith.constant 0 : index
    %367 = vector.load %arg16[%c14, %c0_157] : memref<21x32xf32, #tpu.memory_space<vmem>>, vector<1x32xf32>
    %c15 = arith.constant 15 : index
    %c0_158 = arith.constant 0 : index
    %368 = vector.load %arg16[%c15, %c0_158] : memref<21x32xf32, #tpu.memory_space<vmem>>, vector<1x32xf32>
    %c16_159 = arith.constant 16 : index
    %c0_160 = arith.constant 0 : index
    %369 = vector.load %arg16[%c16_159, %c0_160] : memref<21x32xf32, #tpu.memory_space<vmem>>, vector<1x32xf32>
    %c17 = arith.constant 17 : index
    %c0_161 = arith.constant 0 : index
    %370 = vector.load %arg16[%c17, %c0_161] : memref<21x32xf32, #tpu.memory_space<vmem>>, vector<1x32xf32>
    %c0_162 = arith.constant 0 : index
    %c0_163 = arith.constant 0 : index
    %371 = vector.load %arg11[%c0_162, %c0_163] : memref<32x128xf32, #tpu.memory_space<vmem>>, vector<32x128xf32>
    %cst_164 = arith.constant dense<0.000000e+00> : vector<8x128xf32>
    %372 = tpu.matmul %366, %371, %cst_164 {dimension_numbers = #tpu.dot_dimension_numbers<[1], [0], [0], [1], [0, 0, 1, 1], [], []>} : vector<8x32xf32>, vector<32x128xf32>, vector<8x128xf32> -> vector<8x128xf32>
    %373 = vector.extract_strided_slice %372 {offsets = [0, 0], sizes = [8, 32], strides = [1, 1]} : vector<8x128xf32> to vector<8x32xf32>
    %374 = vector.extract_strided_slice %372 {offsets = [0, 32], sizes = [8, 32], strides = [1, 1]} : vector<8x128xf32> to vector<8x32xf32>
    %375 = vector.extract_strided_slice %372 {offsets = [0, 64], sizes = [8, 32], strides = [1, 1]} : vector<8x128xf32> to vector<8x32xf32>
    %376 = vector.extract_strided_slice %372 {offsets = [0, 96], sizes = [8, 32], strides = [1, 1]} : vector<8x128xf32> to vector<8x32xf32>
    %377 = vector.extract_strided_slice %373 {offsets = [0, 0], sizes = [1, 32], strides = [1, 1]} : vector<8x32xf32> to vector<1x32xf32>
    %378 = vector.shape_cast %377 : vector<1x32xf32> to vector<1x32xf32>
    %379 = vector.broadcast %378 : vector<1x32xf32> to vector<8x32xf32>
    %380 = arith.addf %379, %374 : vector<8x32xf32>
    %c0_165 = arith.constant 0 : index
    %c0_166 = arith.constant 0 : index
    %381 = vector.load %arg20[%c0_165, %c0_166] : memref<64x32xf32, #tpu.memory_space<vmem>>, vector<8x32xf32>
    tpu.vector_store %arg20[%c0_165, %c0_166], %380 {strides = array<i32>} : memref<64x32xf32, #tpu.memory_space<vmem>>, vector<8x32xf32>,
    %382 = vector.extract_strided_slice %373 {offsets = [1, 0], sizes = [1, 32], strides = [1, 1]} : vector<8x32xf32> to vector<1x32xf32>
    %383 = vector.shape_cast %382 : vector<1x32xf32> to vector<1x32xf32>
    %384 = vector.broadcast %383 : vector<1x32xf32> to vector<8x32xf32>
    %385 = arith.addf %384, %374 : vector<8x32xf32>
    %c8_167 = arith.constant 8 : index
    %c0_168 = arith.constant 0 : index
    %386 = vector.load %arg20[%c8_167, %c0_168] : memref<64x32xf32, #tpu.memory_space<vmem>>, vector<8x32xf32>
    tpu.vector_store %arg20[%c8_167, %c0_168], %385 {strides = array<i32>} : memref<64x32xf32, #tpu.memory_space<vmem>>, vector<8x32xf32>,
    %387 = vector.extract_strided_slice %373 {offsets = [2, 0], sizes = [1, 32], strides = [1, 1]} : vector<8x32xf32> to vector<1x32xf32>
    %388 = vector.shape_cast %387 : vector<1x32xf32> to vector<1x32xf32>
    %389 = vector.broadcast %388 : vector<1x32xf32> to vector<8x32xf32>
    %390 = arith.addf %389, %374 : vector<8x32xf32>
    %c16_169 = arith.constant 16 : index
    %c0_170 = arith.constant 0 : index
    %391 = vector.load %arg20[%c16_169, %c0_170] : memref<64x32xf32, #tpu.memory_space<vmem>>, vector<8x32xf32>
    tpu.vector_store %arg20[%c16_169, %c0_170], %390 {strides = array<i32>} : memref<64x32xf32, #tpu.memory_space<vmem>>, vector<8x32xf32>,
    %392 = vector.extract_strided_slice %373 {offsets = [3, 0], sizes = [1, 32], strides = [1, 1]} : vector<8x32xf32> to vector<1x32xf32>
    %393 = vector.shape_cast %392 : vector<1x32xf32> to vector<1x32xf32>
    %394 = vector.broadcast %393 : vector<1x32xf32> to vector<8x32xf32>
    %395 = arith.addf %394, %374 : vector<8x32xf32>
    %c24_171 = arith.constant 24 : index
    %c0_172 = arith.constant 0 : index
    %396 = vector.load %arg20[%c24_171, %c0_172] : memref<64x32xf32, #tpu.memory_space<vmem>>, vector<8x32xf32>
    tpu.vector_store %arg20[%c24_171, %c0_172], %395 {strides = array<i32>} : memref<64x32xf32, #tpu.memory_space<vmem>>, vector<8x32xf32>,
    %397 = vector.extract_strided_slice %373 {offsets = [4, 0], sizes = [1, 32], strides = [1, 1]} : vector<8x32xf32> to vector<1x32xf32>
    %398 = vector.shape_cast %397 : vector<1x32xf32> to vector<1x32xf32>
    %399 = vector.broadcast %398 : vector<1x32xf32> to vector<8x32xf32>
    %400 = arith.addf %399, %374 : vector<8x32xf32>
    %c32_173 = arith.constant 32 : index
    %c0_174 = arith.constant 0 : index
    %401 = vector.load %arg20[%c32_173, %c0_174] : memref<64x32xf32, #tpu.memory_space<vmem>>, vector<8x32xf32>
    tpu.vector_store %arg20[%c32_173, %c0_174], %400 {strides = array<i32>} : memref<64x32xf32, #tpu.memory_space<vmem>>, vector<8x32xf32>,
    %402 = vector.extract_strided_slice %373 {offsets = [5, 0], sizes = [1, 32], strides = [1, 1]} : vector<8x32xf32> to vector<1x32xf32>
    %403 = vector.shape_cast %402 : vector<1x32xf32> to vector<1x32xf32>
    %404 = vector.broadcast %403 : vector<1x32xf32> to vector<8x32xf32>
    %405 = arith.addf %404, %374 : vector<8x32xf32>
    %c40_175 = arith.constant 40 : index
    %c0_176 = arith.constant 0 : index
    %406 = vector.load %arg20[%c40_175, %c0_176] : memref<64x32xf32, #tpu.memory_space<vmem>>, vector<8x32xf32>
    tpu.vector_store %arg20[%c40_175, %c0_176], %405 {strides = array<i32>} : memref<64x32xf32, #tpu.memory_space<vmem>>, vector<8x32xf32>,
    %407 = vector.extract_strided_slice %373 {offsets = [6, 0], sizes = [1, 32], strides = [1, 1]} : vector<8x32xf32> to vector<1x32xf32>
    %408 = vector.shape_cast %407 : vector<1x32xf32> to vector<1x32xf32>
    %409 = vector.broadcast %408 : vector<1x32xf32> to vector<8x32xf32>
    %410 = arith.addf %409, %374 : vector<8x32xf32>
    %c48_177 = arith.constant 48 : index
    %c0_178 = arith.constant 0 : index
    %411 = vector.load %arg20[%c48_177, %c0_178] : memref<64x32xf32, #tpu.memory_space<vmem>>, vector<8x32xf32>
    tpu.vector_store %arg20[%c48_177, %c0_178], %410 {strides = array<i32>} : memref<64x32xf32, #tpu.memory_space<vmem>>, vector<8x32xf32>,
    %412 = vector.extract_strided_slice %373 {offsets = [7, 0], sizes = [1, 32], strides = [1, 1]} : vector<8x32xf32> to vector<1x32xf32>
    %413 = vector.shape_cast %412 : vector<1x32xf32> to vector<1x32xf32>
    %414 = vector.broadcast %413 : vector<1x32xf32> to vector<8x32xf32>
    %415 = arith.addf %414, %374 : vector<8x32xf32>
    %c56_179 = arith.constant 56 : index
    %c0_180 = arith.constant 0 : index
    %416 = vector.load %arg20[%c56_179, %c0_180] : memref<64x32xf32, #tpu.memory_space<vmem>>, vector<8x32xf32>
    tpu.vector_store %arg20[%c56_179, %c0_180], %415 {strides = array<i32>} : memref<64x32xf32, #tpu.memory_space<vmem>>, vector<8x32xf32>,
    %c0_181 = arith.constant 0 : index
    %c0_182 = arith.constant 0 : index
    %417 = vector.load %arg20[%c0_181, %c0_182] : memref<64x32xf32, #tpu.memory_space<vmem>>, vector<64x32xf32>
    %c0_183 = arith.constant 0 : index
    %c0_184 = arith.constant 0 : index
    %418 = vector.load %arg13[%c0_183, %c0_184] : memref<32x32xf32, #tpu.memory_space<vmem>>, vector<32x32xf32>
    %cst_185 = arith.constant dense<0.000000e+00> : vector<64x32xf32>
    %419 = tpu.matmul %217, %418, %cst_185 {dimension_numbers = #tpu.dot_dimension_numbers<[1], [0], [0], [1], [0, 0, 1, 1], [], []>} : vector<64x32xf32>, vector<32x32xf32>, vector<64x32xf32> -> vector<64x32xf32>
    %420 = arith.addf %417, %419 : vector<64x32xf32>
    %cst_186 = arith.constant dense<0.000000e+00> : vector<64xf32>
    %421 = vector.multi_reduction <add>, %420, %cst_186 [1] : vector<64x32xf32> to vector<64xf32>
    %422 = vector.shape_cast %421 : vector<64xf32> to vector<64x1xf32>
    %cst_187 = arith.constant 3.200000e+01 : f32
    %423 = vector.broadcast %cst_187 : f32 to vector<64x1xf32>
    %424 = arith.divf %422, %423 : vector<64x1xf32>
    %425 = vector.broadcast %424 : vector<64x1xf32> to vector<64x32xf32>
    %426 = arith.subf %420, %425 : vector<64x32xf32>
    %427 = arith.mulf %426, %426 : vector<64x32xf32>
    %cst_188 = arith.constant dense<0.000000e+00> : vector<64xf32>
    %428 = vector.multi_reduction <add>, %427, %cst_188 [1] : vector<64x32xf32> to vector<64xf32>
    %429 = vector.shape_cast %428 : vector<64xf32> to vector<64x1xf32>
    %cst_189 = arith.constant 3.200000e+01 : f32
    %430 = vector.broadcast %cst_189 : f32 to vector<64x1xf32>
    %431 = arith.divf %429, %430 : vector<64x1xf32>
    %432 = vector.broadcast %424 : vector<64x1xf32> to vector<64x32xf32>
    %433 = arith.subf %420, %432 : vector<64x32xf32>
    %cst_190 = arith.constant 9.99999974E-6 : f32
    %434 = vector.broadcast %cst_190 : f32 to vector<64x1xf32>
    %435 = arith.addf %431, %434 : vector<64x1xf32>
    %436 = math.rsqrt %435 : vector<64x1xf32>
    %437 = vector.broadcast %436 : vector<64x1xf32> to vector<64x32xf32>
    %438 = arith.mulf %433, %437 : vector<64x32xf32>
    %439 = vector.broadcast %367 : vector<1x32xf32> to vector<64x32xf32>
    %440 = arith.mulf %438, %439 : vector<64x32xf32>
    %441 = vector.broadcast %368 : vector<1x32xf32> to vector<64x32xf32>
    %442 = arith.addf %440, %441 : vector<64x32xf32>
    %cst_191 = arith.constant 0.000000e+00 : f32
    %443 = vector.broadcast %cst_191 : f32 to vector<64x32xf32>
    %444 = arith.maximumf %442, %443 : vector<64x32xf32>
    %445 = arith.addf %217, %444 : vector<64x32xf32>
    %cst_192 = arith.constant 0.000000e+00 : f32
    %446 = vector.broadcast %cst_192 : f32 to vector<64x32xf32>
    %447 = arith.subf %446, %445 : vector<64x32xf32>
    %448 = math.exp %447 : vector<64x32xf32>
    %cst_193 = arith.constant 1.000000e+00 : f32
    %449 = vector.broadcast %cst_193 : f32 to vector<64x32xf32>
    %450 = arith.addf %449, %448 : vector<64x32xf32>
    %cst_194 = arith.constant 1.000000e+00 : f32
    %451 = vector.broadcast %cst_194 : f32 to vector<64x32xf32>
    %452 = arith.divf %451, %450 : vector<64x32xf32>
    %453 = math.exp %452 : vector<64x32xf32>
    %454 = vector.extract_strided_slice %453 {offsets = [0, 0], sizes = [8, 32], strides = [1, 1]} : vector<64x32xf32> to vector<8x32xf32>
    %cst_195 = arith.constant dense<0.000000e+00> : vector<32xf32>
    %455 = vector.multi_reduction <add>, %454, %cst_195 [0] : vector<8x32xf32> to vector<32xf32>
    %456 = vector.shape_cast %455 : vector<32xf32> to vector<1x32xf32>
    %457 = tpu.reciprocal %456 {approx = true} : vector<1x32xf32> -> vector<1x32xf32>
    %458 = arith.mulf %456, %457 : vector<1x32xf32>
    %cst_196 = arith.constant 2.000000e+00 : f32
    %459 = vector.broadcast %cst_196 : f32 to vector<1x32xf32>
    %460 = arith.subf %459, %458 : vector<1x32xf32>
    %461 = arith.mulf %457, %460 : vector<1x32xf32>
    %462 = vector.broadcast %461 : vector<1x32xf32> to vector<8x32xf32>
    %463 = arith.mulf %454, %462 : vector<8x32xf32>
    %464 = arith.mulf %463, %376 : vector<8x32xf32>
    %cst_197 = arith.constant dense<0.000000e+00> : vector<32xf32>
    %465 = vector.multi_reduction <add>, %464, %cst_197 [0] : vector<8x32xf32> to vector<32xf32>
    %466 = vector.shape_cast %465 : vector<32xf32> to vector<1x32xf32>
    %c0_198 = arith.constant 0 : index
    %c0_199 = arith.constant 0 : index
    %467 = vector.load %arg21[%c0_198, %c0_199] : memref<8x32xf32, #tpu.memory_space<vmem>>, vector<1x32xf32>
    tpu.vector_store %arg21[%c0_198, %c0_199], %466 {strides = array<i32>} : memref<8x32xf32, #tpu.memory_space<vmem>>, vector<1x32xf32>,
    %468 = vector.extract_strided_slice %453 {offsets = [8, 0], sizes = [8, 32], strides = [1, 1]} : vector<64x32xf32> to vector<8x32xf32>
    %cst_200 = arith.constant dense<0.000000e+00> : vector<32xf32>
    %469 = vector.multi_reduction <add>, %468, %cst_200 [0] : vector<8x32xf32> to vector<32xf32>
    %470 = vector.shape_cast %469 : vector<32xf32> to vector<1x32xf32>
    %471 = tpu.reciprocal %470 {approx = true} : vector<1x32xf32> -> vector<1x32xf32>
    %472 = arith.mulf %470, %471 : vector<1x32xf32>
    %cst_201 = arith.constant 2.000000e+00 : f32
    %473 = vector.broadcast %cst_201 : f32 to vector<1x32xf32>
    %474 = arith.subf %473, %472 : vector<1x32xf32>
    %475 = arith.mulf %471, %474 : vector<1x32xf32>
    %476 = vector.broadcast %475 : vector<1x32xf32> to vector<8x32xf32>
    %477 = arith.mulf %468, %476 : vector<8x32xf32>
    %478 = arith.mulf %477, %376 : vector<8x32xf32>
    %cst_202 = arith.constant dense<0.000000e+00> : vector<32xf32>
    %479 = vector.multi_reduction <add>, %478, %cst_202 [0] : vector<8x32xf32> to vector<32xf32>
    %480 = vector.shape_cast %479 : vector<32xf32> to vector<1x32xf32>
    %c1_203 = arith.constant 1 : index
    %c0_204 = arith.constant 0 : index
    %481 = vector.load %arg21[%c1_203, %c0_204] : memref<8x32xf32, #tpu.memory_space<vmem>>, vector<1x32xf32>
    tpu.vector_store %arg21[%c1_203, %c0_204], %480 {strides = array<i32>} : memref<8x32xf32, #tpu.memory_space<vmem>>, vector<1x32xf32>,
    %482 = vector.extract_strided_slice %453 {offsets = [16, 0], sizes = [8, 32], strides = [1, 1]} : vector<64x32xf32> to vector<8x32xf32>
    %cst_205 = arith.constant dense<0.000000e+00> : vector<32xf32>
    %483 = vector.multi_reduction <add>, %482, %cst_205 [0] : vector<8x32xf32> to vector<32xf32>
    %484 = vector.shape_cast %483 : vector<32xf32> to vector<1x32xf32>
    %485 = tpu.reciprocal %484 {approx = true} : vector<1x32xf32> -> vector<1x32xf32>
    %486 = arith.mulf %484, %485 : vector<1x32xf32>
    %cst_206 = arith.constant 2.000000e+00 : f32
    %487 = vector.broadcast %cst_206 : f32 to vector<1x32xf32>
    %488 = arith.subf %487, %486 : vector<1x32xf32>
    %489 = arith.mulf %485, %488 : vector<1x32xf32>
    %490 = vector.broadcast %489 : vector<1x32xf32> to vector<8x32xf32>
    %491 = arith.mulf %482, %490 : vector<8x32xf32>
    %492 = arith.mulf %491, %376 : vector<8x32xf32>
    %cst_207 = arith.constant dense<0.000000e+00> : vector<32xf32>
    %493 = vector.multi_reduction <add>, %492, %cst_207 [0] : vector<8x32xf32> to vector<32xf32>
    %494 = vector.shape_cast %493 : vector<32xf32> to vector<1x32xf32>
    %c2_208 = arith.constant 2 : index
    %c0_209 = arith.constant 0 : index
    %495 = vector.load %arg21[%c2_208, %c0_209] : memref<8x32xf32, #tpu.memory_space<vmem>>, vector<1x32xf32>
    tpu.vector_store %arg21[%c2_208, %c0_209], %494 {strides = array<i32>} : memref<8x32xf32, #tpu.memory_space<vmem>>, vector<1x32xf32>,
    %496 = vector.extract_strided_slice %453 {offsets = [24, 0], sizes = [8, 32], strides = [1, 1]} : vector<64x32xf32> to vector<8x32xf32>
    %cst_210 = arith.constant dense<0.000000e+00> : vector<32xf32>
    %497 = vector.multi_reduction <add>, %496, %cst_210 [0] : vector<8x32xf32> to vector<32xf32>
    %498 = vector.shape_cast %497 : vector<32xf32> to vector<1x32xf32>
    %499 = tpu.reciprocal %498 {approx = true} : vector<1x32xf32> -> vector<1x32xf32>
    %500 = arith.mulf %498, %499 : vector<1x32xf32>
    %cst_211 = arith.constant 2.000000e+00 : f32
    %501 = vector.broadcast %cst_211 : f32 to vector<1x32xf32>
    %502 = arith.subf %501, %500 : vector<1x32xf32>
    %503 = arith.mulf %499, %502 : vector<1x32xf32>
    %504 = vector.broadcast %503 : vector<1x32xf32> to vector<8x32xf32>
    %505 = arith.mulf %496, %504 : vector<8x32xf32>
    %506 = arith.mulf %505, %376 : vector<8x32xf32>
    %cst_212 = arith.constant dense<0.000000e+00> : vector<32xf32>
    %507 = vector.multi_reduction <add>, %506, %cst_212 [0] : vector<8x32xf32> to vector<32xf32>
    %508 = vector.shape_cast %507 : vector<32xf32> to vector<1x32xf32>
    %c3_213 = arith.constant 3 : index
    %c0_214 = arith.constant 0 : index
    %509 = vector.load %arg21[%c3_213, %c0_214] : memref<8x32xf32, #tpu.memory_space<vmem>>, vector<1x32xf32>
    tpu.vector_store %arg21[%c3_213, %c0_214], %508 {strides = array<i32>} : memref<8x32xf32, #tpu.memory_space<vmem>>, vector<1x32xf32>,
    %510 = vector.extract_strided_slice %453 {offsets = [32, 0], sizes = [8, 32], strides = [1, 1]} : vector<64x32xf32> to vector<8x32xf32>
    %cst_215 = arith.constant dense<0.000000e+00> : vector<32xf32>
    %511 = vector.multi_reduction <add>, %510, %cst_215 [0] : vector<8x32xf32> to vector<32xf32>
    %512 = vector.shape_cast %511 : vector<32xf32> to vector<1x32xf32>
    %513 = tpu.reciprocal %512 {approx = true} : vector<1x32xf32> -> vector<1x32xf32>
    %514 = arith.mulf %512, %513 : vector<1x32xf32>
    %cst_216 = arith.constant 2.000000e+00 : f32
    %515 = vector.broadcast %cst_216 : f32 to vector<1x32xf32>
    %516 = arith.subf %515, %514 : vector<1x32xf32>
    %517 = arith.mulf %513, %516 : vector<1x32xf32>
    %518 = vector.broadcast %517 : vector<1x32xf32> to vector<8x32xf32>
    %519 = arith.mulf %510, %518 : vector<8x32xf32>
    %520 = arith.mulf %519, %376 : vector<8x32xf32>
    %cst_217 = arith.constant dense<0.000000e+00> : vector<32xf32>
    %521 = vector.multi_reduction <add>, %520, %cst_217 [0] : vector<8x32xf32> to vector<32xf32>
    %522 = vector.shape_cast %521 : vector<32xf32> to vector<1x32xf32>
    %c4_218 = arith.constant 4 : index
    %c0_219 = arith.constant 0 : index
    %523 = vector.load %arg21[%c4_218, %c0_219] : memref<8x32xf32, #tpu.memory_space<vmem>>, vector<1x32xf32>
    tpu.vector_store %arg21[%c4_218, %c0_219], %522 {strides = array<i32>} : memref<8x32xf32, #tpu.memory_space<vmem>>, vector<1x32xf32>,
    %524 = vector.extract_strided_slice %453 {offsets = [40, 0], sizes = [8, 32], strides = [1, 1]} : vector<64x32xf32> to vector<8x32xf32>
    %cst_220 = arith.constant dense<0.000000e+00> : vector<32xf32>
    %525 = vector.multi_reduction <add>, %524, %cst_220 [0] : vector<8x32xf32> to vector<32xf32>
    %526 = vector.shape_cast %525 : vector<32xf32> to vector<1x32xf32>
    %527 = tpu.reciprocal %526 {approx = true} : vector<1x32xf32> -> vector<1x32xf32>
    %528 = arith.mulf %526, %527 : vector<1x32xf32>
    %cst_221 = arith.constant 2.000000e+00 : f32
    %529 = vector.broadcast %cst_221 : f32 to vector<1x32xf32>
    %530 = arith.subf %529, %528 : vector<1x32xf32>
    %531 = arith.mulf %527, %530 : vector<1x32xf32>
    %532 = vector.broadcast %531 : vector<1x32xf32> to vector<8x32xf32>
    %533 = arith.mulf %524, %532 : vector<8x32xf32>
    %534 = arith.mulf %533, %376 : vector<8x32xf32>
    %cst_222 = arith.constant dense<0.000000e+00> : vector<32xf32>
    %535 = vector.multi_reduction <add>, %534, %cst_222 [0] : vector<8x32xf32> to vector<32xf32>
    %536 = vector.shape_cast %535 : vector<32xf32> to vector<1x32xf32>
    %c5_223 = arith.constant 5 : index
    %c0_224 = arith.constant 0 : index
    %537 = vector.load %arg21[%c5_223, %c0_224] : memref<8x32xf32, #tpu.memory_space<vmem>>, vector<1x32xf32>
    tpu.vector_store %arg21[%c5_223, %c0_224], %536 {strides = array<i32>} : memref<8x32xf32, #tpu.memory_space<vmem>>, vector<1x32xf32>,
    %538 = vector.extract_strided_slice %453 {offsets = [48, 0], sizes = [8, 32], strides = [1, 1]} : vector<64x32xf32> to vector<8x32xf32>
    %cst_225 = arith.constant dense<0.000000e+00> : vector<32xf32>
    %539 = vector.multi_reduction <add>, %538, %cst_225 [0] : vector<8x32xf32> to vector<32xf32>
    %540 = vector.shape_cast %539 : vector<32xf32> to vector<1x32xf32>
    %541 = tpu.reciprocal %540 {approx = true} : vector<1x32xf32> -> vector<1x32xf32>
    %542 = arith.mulf %540, %541 : vector<1x32xf32>
    %cst_226 = arith.constant 2.000000e+00 : f32
    %543 = vector.broadcast %cst_226 : f32 to vector<1x32xf32>
    %544 = arith.subf %543, %542 : vector<1x32xf32>
    %545 = arith.mulf %541, %544 : vector<1x32xf32>
    %546 = vector.broadcast %545 : vector<1x32xf32> to vector<8x32xf32>
    %547 = arith.mulf %538, %546 : vector<8x32xf32>
    %548 = arith.mulf %547, %376 : vector<8x32xf32>
    %cst_227 = arith.constant dense<0.000000e+00> : vector<32xf32>
    %549 = vector.multi_reduction <add>, %548, %cst_227 [0] : vector<8x32xf32> to vector<32xf32>
    %550 = vector.shape_cast %549 : vector<32xf32> to vector<1x32xf32>
    %c6_228 = arith.constant 6 : index
    %c0_229 = arith.constant 0 : index
    %551 = vector.load %arg21[%c6_228, %c0_229] : memref<8x32xf32, #tpu.memory_space<vmem>>, vector<1x32xf32>
    tpu.vector_store %arg21[%c6_228, %c0_229], %550 {strides = array<i32>} : memref<8x32xf32, #tpu.memory_space<vmem>>, vector<1x32xf32>,
    %552 = vector.extract_strided_slice %453 {offsets = [56, 0], sizes = [8, 32], strides = [1, 1]} : vector<64x32xf32> to vector<8x32xf32>
    %cst_230 = arith.constant dense<0.000000e+00> : vector<32xf32>
    %553 = vector.multi_reduction <add>, %552, %cst_230 [0] : vector<8x32xf32> to vector<32xf32>
    %554 = vector.shape_cast %553 : vector<32xf32> to vector<1x32xf32>
    %555 = tpu.reciprocal %554 {approx = true} : vector<1x32xf32> -> vector<1x32xf32>
    %556 = arith.mulf %554, %555 : vector<1x32xf32>
    %cst_231 = arith.constant 2.000000e+00 : f32
    %557 = vector.broadcast %cst_231 : f32 to vector<1x32xf32>
    %558 = arith.subf %557, %556 : vector<1x32xf32>
    %559 = arith.mulf %555, %558 : vector<1x32xf32>
    %560 = vector.broadcast %559 : vector<1x32xf32> to vector<8x32xf32>
    %561 = arith.mulf %552, %560 : vector<8x32xf32>
    %562 = arith.mulf %561, %376 : vector<8x32xf32>
    %cst_232 = arith.constant dense<0.000000e+00> : vector<32xf32>
    %563 = vector.multi_reduction <add>, %562, %cst_232 [0] : vector<8x32xf32> to vector<32xf32>
    %564 = vector.shape_cast %563 : vector<32xf32> to vector<1x32xf32>
    %c7_233 = arith.constant 7 : index
    %c0_234 = arith.constant 0 : index
    %565 = vector.load %arg21[%c7_233, %c0_234] : memref<8x32xf32, #tpu.memory_space<vmem>>, vector<1x32xf32>
    tpu.vector_store %arg21[%c7_233, %c0_234], %564 {strides = array<i32>} : memref<8x32xf32, #tpu.memory_space<vmem>>, vector<1x32xf32>,
    %c0_235 = arith.constant 0 : index
    %c0_236 = arith.constant 0 : index
    %566 = vector.load %arg21[%c0_235, %c0_236] : memref<8x32xf32, #tpu.memory_space<vmem>>, vector<8x32xf32>
    %cst_237 = arith.constant 1.250000e-01 : f32
    %567 = vector.broadcast %cst_237 : f32 to vector<8x32xf32>
    %568 = arith.mulf %566, %567 : vector<8x32xf32>
    %569 = arith.addf %375, %568 : vector<8x32xf32>
    %cst_238 = arith.constant dense<0.000000e+00> : vector<8xf32>
    %570 = vector.multi_reduction <add>, %569, %cst_238 [1] : vector<8x32xf32> to vector<8xf32>
    %571 = vector.shape_cast %570 : vector<8xf32> to vector<8x1xf32>
    %cst_239 = arith.constant 3.200000e+01 : f32
    %572 = vector.broadcast %cst_239 : f32 to vector<8x1xf32>
    %573 = arith.divf %571, %572 : vector<8x1xf32>
    %574 = vector.broadcast %573 : vector<8x1xf32> to vector<8x32xf32>
    %575 = arith.subf %569, %574 : vector<8x32xf32>
    %576 = arith.mulf %575, %575 : vector<8x32xf32>
    %cst_240 = arith.constant dense<0.000000e+00> : vector<8xf32>
    %577 = vector.multi_reduction <add>, %576, %cst_240 [1] : vector<8x32xf32> to vector<8xf32>
    %578 = vector.shape_cast %577 : vector<8xf32> to vector<8x1xf32>
    %cst_241 = arith.constant 3.200000e+01 : f32
    %579 = vector.broadcast %cst_241 : f32 to vector<8x1xf32>
    %580 = arith.divf %578, %579 : vector<8x1xf32>
    %581 = vector.broadcast %573 : vector<8x1xf32> to vector<8x32xf32>
    %582 = arith.subf %569, %581 : vector<8x32xf32>
    %cst_242 = arith.constant 9.99999974E-6 : f32
    %583 = vector.broadcast %cst_242 : f32 to vector<8x1xf32>
    %584 = arith.addf %580, %583 : vector<8x1xf32>
    %585 = math.rsqrt %584 : vector<8x1xf32>
    %586 = vector.broadcast %585 : vector<8x1xf32> to vector<8x32xf32>
    %587 = arith.mulf %582, %586 : vector<8x32xf32>
    %588 = vector.broadcast %369 : vector<1x32xf32> to vector<8x32xf32>
    %589 = arith.mulf %587, %588 : vector<8x32xf32>
    %590 = vector.broadcast %370 : vector<1x32xf32> to vector<8x32xf32>
    %591 = arith.addf %589, %590 : vector<8x32xf32>
    %592 = arith.addf %366, %591 : vector<8x32xf32>
    %cst_243 = arith.constant 0.000000e+00 : f32
    %593 = vector.broadcast %cst_243 : f32 to vector<8x32xf32>
    %594 = arith.maximumf %592, %593 : vector<8x32xf32>
    %595 = arith.addf %594, %32 : vector<8x32xf32>
    %c0_244 = arith.constant 0 : index
    %c0_245 = arith.constant 0 : index
    %596 = vector.load %arg14[%c0_244, %c0_245] : memref<32x128xf32, #tpu.memory_space<vmem>>, vector<32x128xf32>
    %cst_246 = arith.constant dense<0.000000e+00> : vector<8x128xf32>
    %597 = tpu.matmul %595, %596, %cst_246 {dimension_numbers = #tpu.dot_dimension_numbers<[1], [0], [0], [1], [0, 0, 1, 1], [], []>} : vector<8x32xf32>, vector<32x128xf32>, vector<8x128xf32> -> vector<8x128xf32>
    %c4_247 = arith.constant 4 : index
    %c0_248 = arith.constant 0 : index
    %598 = vector.load %arg17[%c4_247, %c0_248] : memref<5x128xf32, #tpu.memory_space<vmem>>, vector<1x128xf32>
    %599 = vector.broadcast %598 : vector<1x128xf32> to vector<8x128xf32>
    %600 = arith.addf %597, %599 : vector<8x128xf32>
    %cst_249 = arith.constant 0.000000e+00 : f32
    %601 = vector.broadcast %cst_249 : f32 to vector<8x128xf32>
    %602 = arith.maximumf %600, %601 : vector<8x128xf32>
    %c0_250 = arith.constant 0 : index
    %c0_251 = arith.constant 0 : index
    %603 = vector.load %arg15[%c0_250, %c0_251] : memref<128x32xf32, #tpu.memory_space<vmem>>, vector<128x32xf32>
    %cst_252 = arith.constant dense<0.000000e+00> : vector<8x32xf32>
    %604 = tpu.matmul %602, %603, %cst_252 {dimension_numbers = #tpu.dot_dimension_numbers<[1], [0], [0], [1], [0, 0, 1, 1], [], []>} : vector<8x128xf32>, vector<128x32xf32>, vector<8x32xf32> -> vector<8x32xf32>
    %605 = arith.addf %595, %604 : vector<8x32xf32>
    %c18 = arith.constant 18 : index
    %c0_253 = arith.constant 0 : index
    %606 = vector.load %arg16[%c18, %c0_253] : memref<21x32xf32, #tpu.memory_space<vmem>>, vector<1x32xf32>
    %607 = vector.broadcast %606 : vector<1x32xf32> to vector<8x32xf32>
    %608 = arith.addf %605, %607 : vector<8x32xf32>
    %c19 = arith.constant 19 : index
    %c0_254 = arith.constant 0 : index
    %609 = vector.load %arg16[%c19, %c0_254] : memref<21x32xf32, #tpu.memory_space<vmem>>, vector<1x32xf32>
    %c20 = arith.constant 20 : index
    %c0_255 = arith.constant 0 : index
    %610 = vector.load %arg16[%c20, %c0_255] : memref<21x32xf32, #tpu.memory_space<vmem>>, vector<1x32xf32>
    %cst_256 = arith.constant dense<0.000000e+00> : vector<8xf32>
    %611 = vector.multi_reduction <add>, %608, %cst_256 [1] : vector<8x32xf32> to vector<8xf32>
    %612 = vector.shape_cast %611 : vector<8xf32> to vector<8x1xf32>
    %cst_257 = arith.constant 3.200000e+01 : f32
    %613 = vector.broadcast %cst_257 : f32 to vector<8x1xf32>
    %614 = arith.divf %612, %613 : vector<8x1xf32>
    %615 = vector.broadcast %614 : vector<8x1xf32> to vector<8x32xf32>
    %616 = arith.subf %608, %615 : vector<8x32xf32>
    %617 = arith.mulf %616, %616 : vector<8x32xf32>
    %cst_258 = arith.constant dense<0.000000e+00> : vector<8xf32>
    %618 = vector.multi_reduction <add>, %617, %cst_258 [1] : vector<8x32xf32> to vector<8xf32>
    %619 = vector.shape_cast %618 : vector<8xf32> to vector<8x1xf32>
    %cst_259 = arith.constant 3.200000e+01 : f32
    %620 = vector.broadcast %cst_259 : f32 to vector<8x1xf32>
    %621 = arith.divf %619, %620 : vector<8x1xf32>
    %622 = vector.broadcast %614 : vector<8x1xf32> to vector<8x32xf32>
    %623 = arith.subf %608, %622 : vector<8x32xf32>
    %cst_260 = arith.constant 9.99999974E-6 : f32
    %624 = vector.broadcast %cst_260 : f32 to vector<8x1xf32>
    %625 = arith.addf %621, %624 : vector<8x1xf32>
    %626 = math.rsqrt %625 : vector<8x1xf32>
    %627 = vector.broadcast %626 : vector<8x1xf32> to vector<8x32xf32>
    %628 = arith.mulf %623, %627 : vector<8x32xf32>
    %629 = vector.broadcast %609 : vector<1x32xf32> to vector<8x32xf32>
    %630 = arith.mulf %628, %629 : vector<8x32xf32>
    %631 = vector.broadcast %610 : vector<1x32xf32> to vector<8x32xf32>
    %632 = arith.addf %630, %631 : vector<8x32xf32>
    %c0_261 = arith.constant 0 : index
    %c0_262 = arith.constant 0 : index
    %c0_263 = arith.constant 0 : index
    %633 = vector.load %arg18[%c0_261, %c0_262, %c0_263] : memref<1x8x32xf32, #tpu.memory_space<vmem>>, vector<1x8x32xf32>
    %634 = vector.shape_cast %633 : vector<1x8x32xf32> to vector<8x32xf32>
    %635 = vector.shape_cast %632 : vector<8x32xf32> to vector<1x8x32xf32>
    tpu.vector_store %arg18[%c0_261, %c0_262, %c0_263], %635 {strides = array<i32>} : memref<1x8x32xf32, #tpu.memory_space<vmem>>, vector<1x8x32xf32>,
    %636 = arith.subf %32, %632 : vector<8x32xf32>
    %c0_264 = arith.constant 0 : index
    %c0_265 = arith.constant 0 : index
    %c0_266 = arith.constant 0 : index
    %637 = vector.load %arg19[%c0_264, %c0_265, %c0_266] : memref<1x8x32xf32, #tpu.memory_space<vmem>>, vector<1x8x32xf32>
    %638 = vector.shape_cast %637 : vector<1x8x32xf32> to vector<8x32xf32>
    %639 = vector.shape_cast %636 : vector<8x32xf32> to vector<1x8x32xf32>
    tpu.vector_store %arg19[%c0_264, %c0_265, %c0_266], %639 {strides = array<i32>} : memref<1x8x32xf32, #tpu.memory_space<vmem>>, vector<1x8x32xf32>,
    return
  }
  func.func @transform_0(%arg0: i32) -> (i32, i32, i32) {
    %c0_i32 = arith.constant 0 : i32
    %c0_i32_0 = arith.constant 0 : i32
    %c0_i32_1 = arith.constant 0 : i32
    return %arg0, %c0_i32, %c0_i32_0 : i32, i32, i32
  }
  func.func @transform_1(%arg0: i32) -> (i32, i32) {
    %c0_i32 = arith.constant 0 : i32
    %c0_i32_0 = arith.constant 0 : i32
    %c0_i32_1 = arith.constant 0 : i32
    return %c0_i32, %c0_i32_0 : i32, i32
  }
  func.func @transform_2(%arg0: i32) -> (i32, i32) {
    %c0_i32 = arith.constant 0 : i32
    %c0_i32_0 = arith.constant 0 : i32
    %c0_i32_1 = arith.constant 0 : i32
    return %c0_i32, %c0_i32_0 : i32, i32
  }
  func.func @transform_3(%arg0: i32) -> (i32, i32) {
    %c0_i32 = arith.constant 0 : i32
    %c0_i32_0 = arith.constant 0 : i32
    %c0_i32_1 = arith.constant 0 : i32
    return %c0_i32, %c0_i32_0 : i32, i32
  }
  func.func @transform_4(%arg0: i32) -> (i32, i32) {
    %c0_i32 = arith.constant 0 : i32
    %c0_i32_0 = arith.constant 0 : i32
    %c0_i32_1 = arith.constant 0 : i32
    return %c0_i32, %c0_i32_0 : i32, i32
  }
  func.func @transform_5(%arg0: i32) -> (i32, i32) {
    %c0_i32 = arith.constant 0 : i32
    %c0_i32_0 = arith.constant 0 : i32
    %c0_i32_1 = arith.constant 0 : i32
    return %c0_i32, %c0_i32_0 : i32, i32
  }
  func.func @transform_6(%arg0: i32) -> (i32, i32) {
    %c0_i32 = arith.constant 0 : i32
    %c0_i32_0 = arith.constant 0 : i32
    %c0_i32_1 = arith.constant 0 : i32
    return %c0_i32, %c0_i32_0 : i32, i32
  }
  func.func @transform_7(%arg0: i32) -> (i32, i32) {
    %c0_i32 = arith.constant 0 : i32
    %c0_i32_0 = arith.constant 0 : i32
    %c0_i32_1 = arith.constant 0 : i32
    return %c0_i32, %c0_i32_0 : i32, i32
  }
  func.func @transform_8(%arg0: i32) -> (i32, i32) {
    %c0_i32 = arith.constant 0 : i32
    %c0_i32_0 = arith.constant 0 : i32
    %c0_i32_1 = arith.constant 0 : i32
    return %c0_i32, %c0_i32_0 : i32, i32
  }
  func.func @transform_9(%arg0: i32) -> (i32, i32) {
    %c0_i32 = arith.constant 0 : i32
    %c0_i32_0 = arith.constant 0 : i32
    %c0_i32_1 = arith.constant 0 : i32
    return %c0_i32, %c0_i32_0 : i32, i32
  }
  func.func @transform_10(%arg0: i32) -> (i32, i32) {
    %c0_i32 = arith.constant 0 : i32
    %c0_i32_0 = arith.constant 0 : i32
    %c0_i32_1 = arith.constant 0 : i32
    return %c0_i32, %c0_i32_0 : i32, i32
  }
  func.func @transform_11(%arg0: i32) -> (i32, i32) {
    %c0_i32 = arith.constant 0 : i32
    %c0_i32_0 = arith.constant 0 : i32
    %c0_i32_1 = arith.constant 0 : i32
    return %c0_i32, %c0_i32_0 : i32, i32
  }
  func.func @transform_12(%arg0: i32) -> (i32, i32) {
    %c0_i32 = arith.constant 0 : i32
    %c0_i32_0 = arith.constant 0 : i32
    %c0_i32_1 = arith.constant 0 : i32
    return %c0_i32, %c0_i32_0 : i32, i32
  }
  func.func @transform_13(%arg0: i32) -> (i32, i32) {
    %c0_i32 = arith.constant 0 : i32
    %c0_i32_0 = arith.constant 0 : i32
    %c0_i32_1 = arith.constant 0 : i32
    return %c0_i32, %c0_i32_0 : i32, i32
  }
  func.func @transform_14(%arg0: i32) -> (i32, i32) {
    %c0_i32 = arith.constant 0 : i32
    %c0_i32_0 = arith.constant 0 : i32
    %c0_i32_1 = arith.constant 0 : i32
    return %c0_i32, %c0_i32_0 : i32, i32
  }
  func.func @transform_15(%arg0: i32) -> (i32, i32) {
    %c0_i32 = arith.constant 0 : i32
    %c0_i32_0 = arith.constant 0 : i32
    %c0_i32_1 = arith.constant 0 : i32
    return %c0_i32, %c0_i32_0 : i32, i32
  }
  func.func @transform_16(%arg0: i32) -> (i32, i32) {
    %c0_i32 = arith.constant 0 : i32
    %c0_i32_0 = arith.constant 0 : i32
    %c0_i32_1 = arith.constant 0 : i32
    return %c0_i32, %c0_i32_0 : i32, i32
  }
  func.func @transform_17(%arg0: i32) -> (i32, i32, i32) {
    %c0_i32 = arith.constant 0 : i32
    %c0_i32_0 = arith.constant 0 : i32
    %c0_i32_1 = arith.constant 0 : i32
    return %arg0, %c0_i32, %c0_i32_0 : i32, i32, i32
  }
  func.func @transform_18(%arg0: i32) -> (i32, i32, i32) {
    %c0_i32 = arith.constant 0 : i32
    %c0_i32_0 = arith.constant 0 : i32
    %c0_i32_1 = arith.constant 0 : i32
    return %arg0, %c0_i32, %c0_i32_0 : i32, i32, i32
  }
}

</mosaic_0001>

<bundles_post_ra>
// kernel: graphsep_forward.1
= control target key start
LH: loop header
LB: loop body
LE: loop exit
PB: predicated region body
PF: predicated region fallthrough
CT: control target
= control target key end

     0   :  { %s6338_s0 = inlined_call_operand.vmem [shape: f32[2,8,64], index: 0, kind: input, shape index: {}]   ;;  %s6339_s1 = inlined_call_operand.vmem [shape: f32[64,32], index: 1, kind: input, shape index: {}]   ;;  %s6340_s2 = inlined_call_operand.vmem [shape: f32[256,128], index: 2, kind: input, shape index: {}]   ;;  %s6341_s3 = inlined_call_operand.vmem [shape: f32[128,128], index: 3, kind: input, shape index: {}]   ;;  %s6342_s4 = inlined_call_operand.vmem [shape: f32[128,32], index: 4, kind: input, shape index: {}]   ;;  %s6343_s5 = inlined_call_operand.vmem [shape: f32[32,32], index: 5, kind: input, shape index: {}]   ;;  %s6344_s6 = inlined_call_operand.vmem [shape: f32[32,32], index: 6, kind: input, shape index: {}]   ;;  %s6345_s7 = inlined_call_operand.vmem [shape: f32[32,128], index: 7, kind: input, shape index: {}]   ;;  %s6346_s8 = inlined_call_operand.vmem [shape: f32[128,32], index: 8, kind: input, shape index: {}]   ;;  %s6347_s9 = inlined_call_operand.vmem [shape: f32[32,128], index: 9, kind: input, shape index: {}]   ;;  %s6348_s10 = inlined_call_operand.vmem [shape: f32[32,128], index: 10, kind: input, shape index: {}]   ;;  %s6349_s11 = inlined_call_operand.vmem [shape: f32[32,32], index: 11, kind: input, shape index: {}]   ;;  %s6350_s12 = inlined_call_operand.vmem [shape: f32[32,32], index: 12, kind: input, shape index: {}]   ;;  %s6351_s13 = inlined_call_operand.vmem [shape: f32[32,128], index: 13, kind: input, shape index: {}]   ;;  %s6352_s14 = inlined_call_operand.vmem [shape: f32[128,32], index: 14, kind: input, shape index: {}]   ;;  %s6353_s15 = inlined_call_operand.vmem [shape: f32[21,32], index: 15, kind: input, shape index: {}]   ;;  %s6354_s16 = inlined_call_operand.vmem [shape: f32[5,128], index: 16, kind: input, shape index: {}]   ;;  %s6355_s17 = inlined_call_operand.hbm [shape: f32[2,8,32], index: 17, kind: output, shape index: {0}]   ;;  %s6356_s18 = inlined_call_operand.hbm [shape: f32[2,8,32], index: 18, kind: output, shape index: {1}]  }
   0x1   :  { %6367 = sst [smem:[#allocation15_spill]] %s6338_s0 }
   0x2   :  { %6368 = sst [smem:[#allocation16_spill]] %s6339_s1 }
   0x3   :  { %6369 = sst [smem:[#allocation17_spill]] %s6340_s2 }
   0x4   :  { %6370 = sst [smem:[#allocation18_spill]] %s6341_s3 }
   0x5   :  { %6371 = sst [smem:[#allocation19_spill]] %s6342_s4 }
   0x6   :  { %6372 = sst [smem:[#allocation20_spill]] %s6343_s5 }
   0x7   :  { %6373 = sst [smem:[#allocation21_spill]] %s6344_s6 }
   0x8   :  { %24 = vsyncpa [#allocation5], 0 }
   0x9   :  { %26 = vsyncpa [#allocation5 + $0x1], 0 }
   0xa   :  { %27 = vsyncpa [#allocation7], 0 }
   0xb   :  { %29 = vsyncpa [#allocation7 + $0x1], 0  ;;  %s5060_s27 = smov 0   ;;  %s5062_s28 = smov 0  }
   0xc   :  { %s5064_s29 = smov 0   ;;  %s5066_s30 = smov 0  }
   0xd LB: > { %6374 = sst [smem:[#allocation10_spill]] %s4943_s27  ;;  %s5081_s0 = sadd.s32 4294967295, %s4955_s30   ;;  %s4955_s30 = sphi %s5066_s30, %s6392_s30   ;;  %s4951_s29 = sphi %s5064_s29, %s6394_s29   ;;  %s4947_s28 = sphi %s5062_s28, %s6396_s28   ;;  %s4943_s27 = sphi %s5060_s27, %s6395_s27  }
   0xe   : > { %6375 = sst [smem:[#allocation11_spill]] %s4951_s29  ;;  %s3732_s19 = sadd.s32 4294967294, %s4955_s30  }
   0xf   : > { %s5085_s1 = sadd.s32 1, %s4955_s30   ;;  %s404_s20 = sadd.s32 1, %s4951_s29 }
  0x10   : > { %6376 = sst [smem:[#allocation12_spill]] %s5085_s1  ;;  %s401_s21 = ssub.s32 %s4955_s30, %s5085_s1 }
  0x11   : > { %p414_p0 = scmp.ne.s32.totalorder %s4951_s29, %s4947_s28  ;;  %p402_p1 = scmp.eq.s32.totalorder %s401_s21, 0 }
  0x12   : > { %p415_p2 = scmp.eq.s32.totalorder %s5081_s0, 1  ;;  %p420_p3 = scmp.ne.s32.totalorder %s4947_s28, %s4943_s27 }
  0x13   : > { %p421_p4 = scmp.eq.s32.totalorder %s3732_s19, 1  ;;  %p3735_p7 = scmp.ge.s32.totalorder %s4955_s30, 1 }
  0x14   : > { %s5096_s22 = scalar_select %p402_p1, %s4951_s29, %s404_s20  }
  0x15   : > { %p5098_p5 = por %p415_p2, %p414_p0  ;;  %p5102_p6 = por %p421_p4, %p420_p3 }
  0x16   : > { %6377 = sst [smem:[#allocation13_spill]] %s5096_s22  ;;  %p520_p8 = scmp.lt.s32.totalorder %s4955_s30, 3 }
  0x17   : > { %s6379_s23 = scalar_select %p5102_p6, 1, 0 }
  0x18   : > { %p521_p9 = pnand %p3735_p7, %p520_p8 }
  0x19   : > { %6380 = sst [smem:[#allocation14_spill]] %s6379_s23  ;;  %s6381_s26 = sld [smem:[#allocation16_spill]] (!%p521_p9)  ;;  %v4957_v3 = vmov (!%p521_p9), 0.0|0.0   ;;  %vm4958_vm0 = vmmov (!%p521_p9), 0   ;;  %v4959_v6 = vmov (!%p521_p9), 0.0   ;;  %vm596_vm1 = vcmask (!%p521_p9), 523264  }
  0x1a   : > { %524 = sbr.rel (%p521_p9) target bundleno = 6694 (0x1a26), region = 88  ;;  %4384 = vmatprep.subr.bf16.mxu1 (!%p521_p9), %v4957_v3  ;;  %4001 = vmatprep.mubr.msk.f32.mxu1 (!%p521_p9), %vm4958_vm0, %v4959_v6  ;;  %p578_p10 = scmp.lt.s32.totalorder (!%p521_p9), %s5081_s0, 1  ;;  %v3739_v15 = vld [vmem:[%s6353_s15] ss:$0 sm:$0xff] (!%p521_p9)  ;;  %vm672_vm2 = vcmask (!%p521_p9), 261120   ;;  %vm1982_vm3 = vcmask (!%p521_p9), 253952  }
  0x1b   : > { %4444 = vmatprep.subr.bf16.mxu0 (!%p521_p9), %v4957_v3  ;;  %4124 = vmatprep.mubr.msk.f32.mxu0 (!%p521_p9), %vm4958_vm0, %v4959_v6  ;;  %s6382_s29 = sld [smem:[#allocation15_spill]] (!%p521_p9)  ;;  %s6383_s20 = sld [smem:[#allocation17_spill]] (!%p521_p9)  ;;  %v3741_v56 = vld [vmem:[%s6353_s15 + $0x1] ss:$0 sm:$0xff] (!%p521_p9)  ;;  %v3742_v58 = vld [vmem:[%s6353_s15 + $0x2] ss:$0 sm:$0xff] (!%p521_p9) }
  0x1c   : > { %s6384_s3 = sld [smem:[#allocation18_spill]] (!%p521_p9)  ;;  %s6385_s4 = sld [smem:[#allocation19_spill]] (!%p521_p9) }
  0x1d   : > { %s6386_s5 = sld [smem:[#allocation20_spill]] (!%p521_p9)  ;;  %s6387_s6 = sld [smem:[#allocation21_spill]] (!%p521_p9) }
  0x1e   : > { %s6366_s21 = smov (!%p521_p9), 96   ;;  %s6365_s23 = smov (!%p521_p9), 32  }
  0x1f   : > { %v583_v0 = vld [vmem:[%s6381_s26] sm:$0xff] (!%p521_p9)  ;;  %v584_v1 = vld [vmem:[%s6381_s26 + $0x8] sm:$0xff] (!%p521_p9)  ;;  %v585_v2 = vld [vmem:[%s6381_s26 + $0x10] sm:$0xff] (!%p521_p9)  ;;  %s4962_s22 = smov (!%p521_p9), 64  }
  0x20   : > { %v4385_v4 = vpack.c.bf16 (!%p521_p9), %v584_v1, %v583_v0  ;;  %v586_v5 = vld [vmem:[%s6381_s26 + $0x18] sm:$0xff] (!%p521_p9)  ;;  %v587_v8 = vld [vmem:[%s6381_s26 + $0x20] sm:$0xff] (!%p521_p9)  ;;  %v588_v9 = vld [vmem:[%s6381_s26 + $0x28] sm:$0xff] (!%p521_p9) }
  0x21   : > { %v4388_v7 = vpack.c.bf16 %v586_v5, %v585_v2  ;;  %s579_s25 = scalar_select %p578_p10, %s5081_s0, 1  ;;  %v4391_v10 = vpack.c.bf16 %v588_v9, %v587_v8  ;;  %v589_v11 = vld [vmem:[%s6381_s26 + $0x30] sm:$0xff]  ;;  %v590_v12 = vld [vmem:[%s6381_s26 + $0x38] sm:$0xff]  ;;  %v699_v25 = vld [vmem:[%s6383_s20] sm:$0xff] }
  0x22   : > { %4386 = vmatpush3.bf16.msra.mxu1 %v4385_v4  ;;  %v4394_v13 = vpack.c.bf16 %v590_v12, %v589_v11  ;;  %v700_v26 = vld [vmem:[%s6383_s20 + $0x8] sm:$0xff]  ;;  %v701_v28 = vld [vmem:[%s6383_s20 + $0x10] sm:$0xff]  ;;  %v702_v29 = vld [vmem:[%s6383_s20 + $0x18] sm:$0xff] }
  0x23   : > { %4387 = vmatprep.subr.bf16.mxu1 %v4957_v3  ;;  %s3738_s27 = sshll.u32 %s579_s25, 3  ;;  %v4397_v27 = vpack.c.bf16 %v700_v26, %v699_v25  ;;  %v4400_v30 = vpack.c.bf16 %v702_v29, %v701_v28  ;;  %v1323_v31 = vld [vmem:[%s6384_s3] sm:$0xff]  ;;  %v1324_v32 = vld [vmem:[%s6384_s3 + $0x8] sm:$0xff]  ;;  %v1325_v33 = vld [vmem:[%s6384_s3 + $0x10] sm:$0xff]  ;;  %s3788_s25 = sshll.u32 %s5081_s0, 7 }
  0x24   : > { %s581_s1 = scalar_lea.vmem %s6382_s29, %s3738_s27  ;;  %v5177_v34 = vpack.c.bf16 %v1324_v32, %v1323_v31  ;;  %v1326_v35 = vld [vmem:[%s6384_s3 + $0x18] sm:$0xff]  ;;  %v1327_v37 = vld [vmem:[%s6384_s3 + $0x20] sm:$0xff]  ;;  %v1328_v38 = vld [vmem:[%s6384_s3 + $0x28] sm:$0xff]  ;;  %s6262_s19 = scalar_lea.hbm %s6355_s17, %s3788_s25 }
  0x25   : > { %v582_v14 = vld [vmem:[%s581_s1] sm:$0xff]  ;;  %v5183_v36 = vpack.c.bf16 %v1326_v35, %v1325_v33  ;;  %v5193_v39 = vpack.c.bf16 %v1328_v38, %v1327_v37  ;;  %v1329_v40 = vld [vmem:[%s6384_s3 + $0x30] sm:$0xff]  ;;  %v1330_v41 = vld [vmem:[%s6384_s3 + $0x38] sm:$0xff]  ;;  %s6271_s27 = scalar_lea.hbm %s6356_s18, %s3788_s25 }
  0x26   : > { %4389 = vmatpush3.bf16.msra.mxu1 %v4388_v7  ;;  %4446 = vmatpush3.bf16.msra.mxu0 %v5177_v34  ;;  %v5203_v42 = vpack.c.bf16 %v1330_v41, %v1329_v40  ;;  %v1331_v43 = vld [vmem:[%s6384_s3 + $0x40] sm:$0xff]  ;;  %v1332_v44 = vld [vmem:[%s6384_s3 + $0x48] sm:$0xff]  ;;  %v1333_v46 = vld [vmem:[%s6384_s3 + $0x50] sm:$0xff] }
  0x27   : > { %4390 = vmatprep.subr.bf16.mxu1 %v4957_v3  ;;  %4447 = vmatprep.subr.bf16.mxu0 %v4957_v3  ;;  %v5213_v45 = vpack.c.bf16 %v1332_v44, %v1331_v43  ;;  %v1334_v47 = vld [vmem:[%s6384_s3 + $0x58] sm:$0xff]  ;;  %v1335_v49 = vld [vmem:[%s6384_s3 + $0x60] sm:$0xff]  ;;  %v1336_v50 = vld [vmem:[%s6384_s3 + $0x68] sm:$0xff] }
  0x28   : > { %v5223_v48 = vpack.c.bf16 %v1334_v47, %v1333_v46  ;;  %v5233_v51 = vpack.c.bf16 %v1336_v50, %v1335_v49  ;;  %v777_v60 = vld [vmem:[%s6383_s20 + $0x20] sm:$0xff]  ;;  %v778_v61 = vld [vmem:[%s6383_s20 + $0x28] sm:$0xff]  ;;  %v779_v1 = vld [vmem:[%s6383_s20 + $0x30] sm:$0xff] }
  0x29   : > { %v4403_v63 = vpack.c.bf16 %v778_v61, %v777_v60  ;;  %v780_v2 = vld [vmem:[%s6383_s20 + $0x38] sm:$0xff]  ;;  %v855_v5 = vld [vmem:[%s6383_s20 + $0x40] sm:$0xff]  ;;  %v856_v7 = vld [vmem:[%s6383_s20 + $0x48] sm:$0xff] }
  0x2a   : > { %4392 = vmatpush3.bf16.msra.mxu1 %v4391_v10  ;;  %4449 = vmatpush3.bf16.msra.mxu0 %v5183_v36  ;;  %v4406_v4 = vpack.c.bf16 %v780_v2, %v779_v1  ;;  %v4409_v8 = vpack.c.bf16 %v856_v7, %v855_v5  ;;  %v857_v10 = vld [vmem:[%s6383_s20 + $0x50] sm:$0xff]  ;;  %v858_v11 = vld [vmem:[%s6383_s20 + $0x58] sm:$0xff]  ;;  %v1090_v28 = vld [vmem:[%s6383_s20 + $0xa8] sm:$0xff] }
  0x2b   : > { %4393 = vmatprep.subr.bf16.mxu1 %v4957_v3  ;;  %4450 = vmatprep.subr.bf16.mxu0 %v4957_v3  ;;  %v4412_v12 = vpack.c.bf16 %v858_v11, %v857_v10  ;;  %v1014_v25 = vld [vmem:[%s6383_s20 + $0x98] sm:$0xff]  ;;  %v1091_v31 = vld [vmem:[%s6383_s20 + $0xb0] sm:$0xff]  ;;  %v1167_v35 = vld [vmem:[%s6383_s20 + $0xc0] sm:$0xff] }
  0x2c   : > { %v1092_v32 = vld [vmem:[%s6383_s20 + $0xb8] sm:$0xff]  ;;  %v1168_v37 = vld [vmem:[%s6383_s20 + $0xc8] sm:$0xff]  ;;  %v1169_v41 = vld [vmem:[%s6383_s20 + $0xd0] sm:$0xff] }
  0x2d   : > { %v4430_v33 = vpack.c.bf16 %v1092_v32, %v1091_v31  ;;  %v4433_v38 = vpack.c.bf16 %v1168_v37, %v1167_v35  ;;  %v1170_v43 = vld [vmem:[%s6383_s20 + $0xd8] sm:$0xff]  ;;  %v1245_v46 = vld [vmem:[%s6383_s20 + $0xe0] sm:$0xff]  ;;  %v1246_v47 = vld [vmem:[%s6383_s20 + $0xe8] sm:$0xff] }
  0x2e   : > { %4395 = vmatpush3.bf16.msra.mxu1 %v4394_v13  ;;  %4452 = vmatpush3.bf16.msra.mxu0 %v5193_v39  ;;  %v933_v13 = vld [vmem:[%s6383_s20 + $0x60] sm:$0xff]  ;;  %v4436_v44 = vpack.c.bf16 %v1170_v43, %v1169_v41  ;;  %v4439_v49 = vpack.c.bf16 %v1246_v47, %v1245_v46 }
  0x2f   : > { %4396 = vmatprep.subr.bf16.mxu1 %v4957_v3  ;;  %4453 = vmatprep.subr.bf16.mxu0 %v4957_v3  ;;  %v1496_v11 = vld [vmem:[%s6385_s4 + $0x40] sm:$0xff] }
  0x30   : > { %v1340_v32 = vld [vmem:[%s6354_s16 + $0x2] sm:$0x1]  ;;  %v1504_v43 = vld [vmem:[%s6353_s15 + $0x3] sm:$0x1] }
  0x31   : > { %4002 = vmatmul.mubr.msk.f32.vlgmr.msra.gmra.mrb[0].mxu1 %vm596_vm1, %v582_v14  ;;  %v934_v14 = vld [vmem:[%s6383_s20 + $0x68] sm:$0xff] }
  0x32   : > { %4012 = vmatprep.mubr.msk.f32.mxu1 %vm4958_vm0, %v4959_v6  ;;  %4398 = vmatpush3.bf16.msra.mxu1 %v4397_v27  ;;  %v1089_v27 = vld [vmem:[%s6383_s20 + $0xa0] sm:$0xff] }
  0x33   : > { %4399 = vmatprep.subr.bf16.mxu1 %v4957_v3  ;;  %4455 = vmatpush3.bf16.msra.mxu0 %v5203_v42  ;;  %v4427_v29 = vpack.c.bf16 %v1090_v28, %v1089_v27 }
  0x34   : > { %4456 = vmatprep.subr.bf16.mxu0 %v4957_v3 }
  0x36   : > { %4401 = vmatpush3.bf16.msra.mxu1 %v4400_v30 }
  0x37   : > { %4402 = vmatprep.subr.bf16.mxu1 %v4957_v3  ;;  %4458 = vmatpush3.bf16.msra.mxu0 %v5213_v45 }
  0x38   : > { %4459 = vmatprep.subr.bf16.mxu0 %v4957_v3 }
  0x3b   : > { %4461 = vmatpush3.bf16.msra.mxu0 %v5223_v48 }
  0x3c   : > { %4462 = vmatprep.subr.bf16.mxu0 %v4957_v3 }
  0x3f   : > { %4464 = vmatpush3.bf16.msra.mxu0 %v5233_v51 }
  0x40   : > { %4465 = vmatprep.subr.bf16.mxu0 %v4957_v3 }
 0x104   : > { %v666_v16 = vpop.f32.mrb[0].mxu1 }
 0x105   : > { %v667_v17 = vadd.f32 %v3739_v15, %v666_v16  ;;  %v4003_v18 = vpop.f32.mrb[1].mxu1  ;;  %v4415_v15 = vpack.c.bf16 %v934_v14, %v933_v13  ;;  %v1498_v14 = vld [vmem:[%s6385_s4 + $0x50] sm:$0xff] }
 0x106   : > { %v936_v18 = vld [vmem:[%s6383_s20 + $0x78] sm:$0xff] }
 0x107   : > { %v673_v19 = vsel %vm672_vm2, %v667_v17, 0.0 }
 0x108   : > { %674 = vadd.xlane.f32.xlu0 %v673_v19 }
 0x195   : > { %v675_v20 = vpop.xlane.xlu0 %674 }
 0x196   : > { %v677_v21 = vmul.f32 0.03125, %v675_v20  ;;  %v1011_v20 = vld [vmem:[%s6383_s20 + $0x80] sm:$0xff] }
 0x198   : > { %v678_v22 = vsub.f32 %v667_v17, %v677_v21  ;;  %v935_v17 = vld [vmem:[%s6383_s20 + $0x70] sm:$0xff]  ;;  %v1012_v21 = vld [vmem:[%s6383_s20 + $0x88] sm:$0xff] }
 0x199   : > { %v4418_v19 = vpack.c.bf16 %v936_v18, %v935_v17  ;;  %v1500_v17 = vld [vmem:[%s6385_s4 + $0x60] sm:$0xff]  ;;  %v1501_v18 = vld [vmem:[%s6385_s4 + $0x68] sm:$0xff] }
 0x19a   : > { %v679_v23 = vmul.f32 %v678_v22, %v678_v22 }
 0x19c   : > { %v680_v24 = vsel %vm672_vm2, %v679_v23, 0.0 }
 0x19d   : > { %681 = vadd.xlane.f32.xlu0 %v680_v24  ;;  %v1013_v24 = vld [vmem:[%s6383_s20 + $0x90] sm:$0xff] }
 0x19e   : > { %v4424_v26 = vpack.c.bf16 %v1014_v25, %v1013_v24  ;;  %v1576_v24 = vld [vmem:[%s6386_s5 + $0x8] sm:$0xff] }
 0x22a   : > { %v682_v52 = vpop.xlane.xlu0 %681 }
 0x22b   : > { %v683_v53 = vmul.f32 0.03125, %v682_v52  ;;  %v1247_v52 = vld [vmem:[%s6383_s20 + $0xf0] sm:$0xff] }
 0x22d   : > { %v684_v54 = vadd.f32 1e-05, %v683_v53  ;;  %v1248_v53 = vld [vmem:[%s6383_s20 + $0xf8] sm:$0xff] }
 0x22f   : > { %4687 = vrsqrt.f32 %v684_v54  ;;  %v4442_v54 = vpack.c.bf16 %v1248_v53, %v1247_v52 }
 0x239   : > { %v4688_v55 = vpop.eup %4687 }
 0x23a   : > { %v686_v57 = vmul.f32 %v4688_v55, %v678_v22  ;;  %v4421_v22 = vpack.c.bf16 %v1012_v21, %v1011_v20  ;;  %v1502_v20 = vld [vmem:[%s6385_s4 + $0x70] sm:$0xff]  ;;  %v1503_v21 = vld [vmem:[%s6385_s4 + $0x78] sm:$0xff] }
 0x23c   : > { %v691_v59 = vmul.f32 %v3741_v56, %v686_v57  ;;  %v1337_v56 = vld [vmem:[%s6384_s3 + $0x70] sm:$0xff]  ;;  %v1338_v57 = vld [vmem:[%s6384_s3 + $0x78] sm:$0xff]  ;;  %s6388_s3 = smov 96  }
 0x23e   : > { %v696_v62 = vadd.f32 %v3742_v58, %v691_v59  ;;  %v4466_v58 = vpack.c.bf16 %v1338_v57, %v1337_v56  ;;  %v698_v59 = vld [vmem:[%s6354_s16] sm:$0x1]  ;;  %v1736_v57 = vld [vmem:[%s6387_s6 + $0x10] sm:$0xff] }
 0x240   : > { %v5250_v0 = vmax.f32 %v696_v62, 0.0  ;;  %4467 = vmatpush3.bf16.msra.mxu0 %v4466_v58 }
 0x241   : > { %4468 = vmatprep.subr.bf16.mxu0 %v4957_v3 }
 0x242   : > { %4013 = vmatmul.mubr.msk.f32.vlgmr.msra.gmra.mrb[2].mxu1 %vm672_vm2, %v5250_v0  ;;  %v781_v9 = vrot.slane %v5250_v0, 1  ;;  %v859_v16 = vrot.slane %v5250_v0, 2  ;;  %v937_v23 = vrot.slane %v5250_v0, 3  ;;  %v1015_v30 = vrot.slane %v5250_v0, 4 }
 0x243   : > { %4404 = vmatpush3.bf16.msra.mxu1 %v4403_v63  ;;  %4023 = vmatprep.mubr.msk.f32.mxu1 %vm4958_vm0, %v4959_v6  ;;  %v1093_v40 = vrot.slane %v5250_v0, 5  ;;  %v1171_v50 = vrot.slane %v5250_v0, 6  ;;  %v1249_v55 = vrot.slane %v5250_v0, 7  ;;  %v1493_v63 = vld [vmem:[%s6385_s4 + $0x28] sm:$0xff] }
 0x244   : > { %4405 = vmatprep.subr.bf16.mxu1 %v4957_v3 }
 0x247   : > { %4407 = vmatpush3.bf16.msra.mxu1 %v4406_v4 }
 0x248   : > { %4408 = vmatprep.subr.bf16.mxu1 %v4957_v3 }
 0x24a   : > { %4024 = vmatmul.mubr.msk.f32.vlgmr.msra.gmra.mrb[2].mxu1 %vm672_vm2, %v781_v9  ;;  %v1495_v9 = vld [vmem:[%s6385_s4 + $0x38] sm:$0xff] }
 0x24b   : > { %4410 = vmatpush3.bf16.msra.mxu1 %v4409_v8  ;;  %4034 = vmatprep.mubr.msk.f32.mxu1 %vm4958_vm0, %v4959_v6  ;;  %v1494_v8 = vld [vmem:[%s6385_s4 + $0x30] sm:$0xff] }
 0x24c   : > { %4411 = vmatprep.subr.bf16.mxu1 %v4957_v3  ;;  %v4502_v10 = vpack.c.bf16 %v1495_v9, %v1494_v8  ;;  %v1891_v8 = vld [vmem:[%s6346_s8] sm:$0xff]  ;;  %v1892_v9 = vld [vmem:[%s6346_s8 + $0x8] sm:$0xff] }
 0x24f   : > { %4413 = vmatpush3.bf16.msra.mxu1 %v4412_v12  ;;  %v1497_v12 = vld [vmem:[%s6385_s4 + $0x48] sm:$0xff] }
 0x250   : > { %4414 = vmatprep.subr.bf16.mxu1 %v4957_v3  ;;  %v4505_v13 = vpack.c.bf16 %v1497_v12, %v1496_v11  ;;  %v4541_v11 = vpack.c.bf16 %v1892_v9, %v1891_v8  ;;  %v1894_v12 = vld [vmem:[%s6346_s8 + $0x18] sm:$0xff] }
 0x252   : > { %4035 = vmatmul.mubr.msk.f32.vlgmr.msra.gmra.mrb[2].mxu1 %vm672_vm2, %v859_v16 }
 0x253   : > { %4416 = vmatpush3.bf16.msra.mxu1 %v4415_v15  ;;  %4045 = vmatprep.mubr.msk.f32.mxu1 %vm4958_vm0, %v4959_v6  ;;  %v1499_v15 = vld [vmem:[%s6385_s4 + $0x58] sm:$0xff] }
 0x254   : > { %4417 = vmatprep.subr.bf16.mxu1 %v4957_v3  ;;  %v4508_v16 = vpack.c.bf16 %v1499_v15, %v1498_v14  ;;  %v1895_v14 = vld [vmem:[%s6346_s8 + $0x20] sm:$0xff]  ;;  %v1896_v15 = vld [vmem:[%s6346_s8 + $0x28] sm:$0xff] }
 0x257   : > { %4419 = vmatpush3.bf16.msra.mxu1 %v4418_v19  ;;  %v4511_v19 = vpack.c.bf16 %v1501_v18, %v1500_v17  ;;  %v1897_v17 = vld [vmem:[%s6346_s8 + $0x30] sm:$0xff]  ;;  %v1898_v18 = vld [vmem:[%s6346_s8 + $0x38] sm:$0xff] }
 0x258   : > { %4420 = vmatprep.subr.bf16.mxu1 %v4957_v3 }
 0x25a   : > { %4046 = vmatmul.mubr.msk.f32.vlgmr.msra.gmra.mrb[2].mxu1 %vm672_vm2, %v937_v23  ;;  %v1575_v23 = vld [vmem:[%s6386_s5] sm:$0xff] }
 0x25b   : > { %4422 = vmatpush3.bf16.msra.mxu1 %v4421_v22  ;;  %4056 = vmatprep.mubr.msk.f32.mxu1 %vm4958_vm0, %v4959_v6  ;;  %v4514_v22 = vpack.c.bf16 %v1503_v21, %v1502_v20  ;;  %v4517_v25 = vpack.c.bf16 %v1576_v24, %v1575_v23  ;;  %v1899_v20 = vld [vmem:[%s6346_s8 + $0x40] sm:$0xff]  ;;  %v1900_v21 = vld [vmem:[%s6346_s8 + $0x48] sm:$0xff]  ;;  %v1901_v23 = vld [vmem:[%s6346_s8 + $0x50] sm:$0xff] }
 0x25c   : > { %4423 = vmatprep.subr.bf16.mxu1 %v4957_v3  ;;  %v1902_v24 = vld [vmem:[%s6346_s8 + $0x58] sm:$0xff] }
 0x25f   : > { %4425 = vmatpush3.bf16.msra.mxu1 %v4424_v26 }
 0x260   : > { %4426 = vmatprep.subr.bf16.mxu1 %v4957_v3 }
 0x262   : > { %4057 = vmatmul.mubr.msk.f32.vlgmr.msra.gmra.mrb[2].mxu1 %vm672_vm2, %v1015_v30  ;;  %v1339_v30 = vld [vmem:[%s6354_s16 + $0x1] sm:$0x1] }
 0x263   : > { %4428 = vmatpush3.bf16.msra.mxu1 %v4427_v29  ;;  %4067 = vmatprep.mubr.msk.f32.mxu1 %vm4958_vm0, %v4959_v6 }
 0x264   : > { %4429 = vmatprep.subr.bf16.mxu1 %v4957_v3 }
 0x267   : > { %4431 = vmatpush3.bf16.msra.mxu1 %v4430_v33 }
 0x268   : > { %4432 = vmatprep.subr.bf16.mxu1 %v4957_v3 }
 0x26a   : > { %4068 = vmatmul.mubr.msk.f32.vlgmr.msra.gmra.mrb[2].mxu1 %vm672_vm2, %v1093_v40  ;;  %v1578_v40 = vld [vmem:[%s6386_s5 + $0x18] sm:$0xff] }
 0x26b   : > { %4434 = vmatpush3.bf16.msra.mxu1 %v4433_v38  ;;  %4078 = vmatprep.mubr.msk.f32.mxu1 %vm4958_vm0, %v4959_v6  ;;  %v1577_v38 = vld [vmem:[%s6386_s5 + $0x10] sm:$0xff]  ;;  %s4963_s5 = smov [#allocation4]  }
 0x26c   : > { %4435 = vmatprep.subr.bf16.mxu1 %v4957_v3  ;;  %v4520_v41 = vpack.c.bf16 %v1578_v40, %v1577_v38  ;;  %v2008_v38 = vld [vmem:[%s6347_s9 + $0x10] sm:$0xff]  ;;  %v2009_v40 = vld [vmem:[%s6347_s9 + $0x18] sm:$0xff]  ;;  %s4865_s26 = sshll.u32 %s4963_s5, 4  ;;  %s4866_s26 = int_to_ptr.vmem [resolvable:$false] %s4865_s26 }
 0x26f   : > { %4437 = vmatpush3.bf16.msra.mxu1 %v4436_v44 }
 0x270   : > { %4438 = vmatprep.subr.bf16.mxu1 %v4957_v3 }
 0x272   : > { %4079 = vmatmul.mubr.msk.f32.vlgmr.msra.gmra.mrb[2].mxu1 %vm672_vm2, %v1171_v50 }
 0x273   : > { %4440 = vmatpush3.bf16.msra.mxu1 %v4439_v49  ;;  %4089 = vmatprep.mubr.msk.f32.mxu1 %vm4958_vm0, %v4959_v6 }
 0x274   : > { %4441 = vmatprep.subr.bf16.mxu1 %v4957_v3 }
 0x277   : > { %4443 = vmatpush3.bf16.msra.mxu1 %v4442_v54  ;;  %v1734_v54 = vld [vmem:[%s6387_s6] sm:$0xff] }
 0x278   : > { %4492 = vmatprep.subr.bf16.mxu1 %v4957_v3 }
 0x27a   : > { %4090 = vmatmul.mubr.msk.f32.vlgmr.msra.gmra.mrb[2].mxu1 %vm672_vm2, %v1249_v55  ;;  %v1735_v55 = vld [vmem:[%s6387_s6 + $0x8] sm:$0xff] }
 0x27b   : > { %4194 = vmatprep.mubr.msk.f32.mxu1 %vm4958_vm0, %v4959_v6  ;;  %v4529_v56 = vpack.c.bf16 %v1735_v55, %v1734_v54 }
 0x34d   : > { %v1318_v60 = vpop.f32.mrb[2].mxu1 }
 0x34e   : > { %v4622_v61 = vadd.f32 %v1318_v60, %v698_v59  ;;  %v4091_v62 = vpop.f32.mrb[3].mxu1  ;;  %v1812_v60 = vld [vmem:[%s6345_s7] sm:$0xff] }
 0x34f   : > { %v1814_v62 = vld [vmem:[%s6345_s7 + $0x10] sm:$0xff] }
 0x350   : > { %4125 = vmatmul.mubr.f32.vlgmr.msra.gmra.mrb[0].mxu0 %v4622_v61 }
 0x351   : > { %4470 = vmatpush3.bf16.msra.mxu0 %v5177_v34  ;;  %4159 = vmatprep.mubr.msk.f32.mxu0 %vm4958_vm0, %v4959_v6  ;;  %v1488_v34 = vld [vmem:[%s6385_s4] sm:$0xff] }
 0x352   : > { %4471 = vmatprep.subr.bf16.mxu0 %v4957_v3 }
 0x355   : > { %4473 = vmatpush3.bf16.msra.mxu0 %v5183_v36  ;;  %v1489_v36 = vld [vmem:[%s6385_s4 + $0x8] sm:$0xff] }
 0x356   : > { %4474 = vmatprep.subr.bf16.mxu0 %v4957_v3 }
 0x359   : > { %4476 = vmatpush3.bf16.msra.mxu0 %v5193_v39  ;;  %v1490_v39 = vld [vmem:[%s6385_s4 + $0x10] sm:$0xff] }
 0x35a   : > { %4477 = vmatprep.subr.bf16.mxu0 %v4957_v3 }
 0x35d   : > { %4479 = vmatpush3.bf16.msra.mxu0 %v5203_v42  ;;  %v4493_v42 = vpack.c.bf16 %v1489_v36, %v1488_v34  ;;  %v1815_v36 = vld [vmem:[%s6345_s7 + $0x18] sm:$0xff] }
 0x35e   : > { %4480 = vmatprep.subr.bf16.mxu0 %v4957_v3 }
 0x35f   : > { %4494 = vmatpush3.bf16.msra.mxu1 %v4493_v42 }
 0x360   : > { %4495 = vmatprep.subr.bf16.mxu1 %v4957_v3 }
 0x361   : > { %4482 = vmatpush3.bf16.msra.mxu0 %v5213_v45  ;;  %v1491_v45 = vld [vmem:[%s6385_s4 + $0x18] sm:$0xff] }
 0x362   : > { %4483 = vmatprep.subr.bf16.mxu0 %v4957_v3 }
 0x365   : > { %4485 = vmatpush3.bf16.msra.mxu0 %v5223_v48  ;;  %v4496_v48 = vpack.c.bf16 %v1491_v45, %v1490_v39  ;;  %v4538_v39 = vpack.c.bf16 %v1815_v36, %v1814_v62 }
 0x366   : > { %4486 = vmatprep.subr.bf16.mxu0 %v4957_v3 }
 0x367   : > { %4497 = vmatpush3.bf16.msra.mxu1 %v4496_v48 }
 0x368   : > { %4498 = vmatprep.subr.bf16.mxu1 %v4957_v3 }
 0x369   : > { %4488 = vmatpush3.bf16.msra.mxu0 %v5233_v51  ;;  %v1492_v51 = vld [vmem:[%s6385_s4 + $0x20] sm:$0xff] }
 0x36a   : > { %4489 = vmatprep.subr.bf16.mxu0 %v4957_v3  ;;  %v4499_v1 = vpack.c.bf16 %v1493_v63, %v1492_v51  ;;  %v1579_v63 = vld [vmem:[%s6353_s15 + $0x4] sm:$0x1] }
 0x36c   : > { %4500 = vmatpush3.bf16.msra.mxu1 %v4499_v1 }
 0x36d   : > { %4491 = vmatpush3.bf16.msra.mxu0 %v4466_v58  ;;  %4501 = vmatprep.subr.bf16.mxu1 %v4957_v3  ;;  %v1737_v58 = vld [vmem:[%s6387_s6 + $0x18] sm:$0xff]  ;;  %s4867_s6 = scalar_lea.vmem %s4866_s26, 256 }
 0x36e   : > { %4516 = vmatprep.subr.bf16.mxu0 %v4957_v3  ;;  %v4532_v59 = vpack.c.bf16 %v1737_v58, %v1736_v57 }
 0x370   : > { %4503 = vmatpush3.bf16.msra.mxu1 %v4502_v10  ;;  %v1893_v10 = vld [vmem:[%s6346_s8 + $0x10] sm:$0xff] }
 0x371   : > { %4504 = vmatprep.subr.bf16.mxu1 %v4957_v3 }
 0x374   : > { %4506 = vmatpush3.bf16.msra.mxu1 %v4505_v13  ;;  %v4544_v13 = vpack.c.bf16 %v1894_v12, %v1893_v10 }
 0x375   : > { %4507 = vmatprep.subr.bf16.mxu1 %v4957_v3 }
 0x378   : > { %4509 = vmatpush3.bf16.msra.mxu1 %v4508_v16  ;;  %v4547_v16 = vpack.c.bf16 %v1896_v15, %v1895_v14 }
 0x379   : > { %4510 = vmatprep.subr.bf16.mxu1 %v4957_v3 }
 0x37c   : > { %4512 = vmatpush3.bf16.msra.mxu1 %v4511_v19  ;;  %v4550_v19 = vpack.c.bf16 %v1898_v18, %v1897_v17 }
 0x37d   : > { %4513 = vmatprep.subr.bf16.mxu1 %v4957_v3 }
 0x380   : > { %4515 = vmatpush3.bf16.msra.mxu1 %v4514_v22  ;;  %v4553_v22 = vpack.c.bf16 %v1900_v21, %v1899_v20 }
 0x381   : > { %4534 = vmatprep.subr.bf16.mxu1 %v4957_v3 }
 0x423   : > { %v1407_v2 = vpop.f32.mrb[0].mxu0 }
 0x424   : > { %v1411_v4 = vsub.f32 %v4622_v61, %v1407_v2  ;;  %v4126_v5 = vpop.f32.mrb[1].mxu0  ;;  %v1813_v61 = vld [vmem:[%s6345_s7 + $0x8] sm:$0xff]  ;;  %v1580_v2 = vld [vmem:[%s6353_s15 + $0x5] sm:$0x1] }
 0x425   : > { %v4535_v34 = vpack.c.bf16 %v1813_v61, %v1812_v60 }
 0x426   : > { %v1412_v7 = vmul.f32 %v1411_v4, %v1411_v4 }
 0x428   : > { %4160 = vmatmul.mubr.f32.vlgmr.msra.gmra.mrb[2].mxu0 %v1412_v7 }
 0x429   : > { %4205 = vmatprep.mubr.msk.f32.mxu0 %vm4958_vm0, %v4959_v6  ;;  %4518 = vmatpush3.bf16.msra.mxu0 %v4517_v25 }
 0x42a   : > { %4519 = vmatprep.subr.bf16.mxu0 %v4957_v3 }
 0x42d   : > { %4521 = vmatpush3.bf16.msra.mxu0 %v4520_v41 }
 0x42e   : > { %4522 = vmatprep.subr.bf16.mxu0 %v4957_v3 }
 0x4fb   : > { %v1479_v26 = vpop.f32.mrb[2].mxu0 }
 0x4fc   : > { %v1480_v27 = vadd.f32 1e-05, %v1479_v26  ;;  %v4161_v28 = vpop.f32.mrb[3].mxu0  ;;  %v1903_v26 = vld [vmem:[%s6346_s8 + $0x60] sm:$0xff] }
 0x4fe   : > { %4689 = vrsqrt.f32 %v1480_v27  ;;  %v1904_v27 = vld [vmem:[%s6346_s8 + $0x68] sm:$0xff] }
 0x4ff   : > { %v4559_v28 = vpack.c.bf16 %v1904_v27, %v1903_v26  ;;  %v2140_v26 = vld [vmem:[%s6349_s11] sm:$0xff]  ;;  %v2141_v27 = vld [vmem:[%s6349_s11 + $0x8] sm:$0xff] }
 0x508   : > { %v4690_v29 = vpop.eup %4689 }
 0x509   : > { %v1484_v31 = vmul.f32 %v4690_v29, %v1411_v4  ;;  %v2006_v29 = vld [vmem:[%s6347_s9] sm:$0xff] }
 0x50b   : > { %v1485_v33 = vmul.f32 %v1484_v31, %v1339_v30  ;;  %v2007_v30 = vld [vmem:[%s6347_s9 + $0x8] sm:$0xff]  ;;  %v1738_v31 = vld [vmem:[%s6353_s15 + $0x6] sm:$0x1] }
 0x50d   : > { %v1486_v35 = vadd.f32 %v1485_v33, %v1340_v32  ;;  %v4565_v33 = vpack.c.bf16 %v2007_v30, %v2006_v29  ;;  %v2142_v29 = vld [vmem:[%s6349_s11 + $0x10] sm:$0xff]  ;;  %v2143_v30 = vld [vmem:[%s6349_s11 + $0x18] sm:$0xff] }
 0x50f   : > { %v1487_v37 = vmax.f32 %v1486_v35, 0.0 }
 0x511   : > { %4195 = vmatmul.mubr.f32.vlgmr.msra.gmra.mrb[4].mxu1 %v1487_v37 }
 0x512   : > { %4238 = vmatprep.mubr.msk.f32.mxu1 %vm4958_vm0, %v4959_v6  ;;  %4536 = vmatpush3.bf16.msra.mxu1 %v4535_v34 }
 0x513   : > { %4537 = vmatprep.subr.bf16.mxu1 %v4957_v3 }
 0x516   : > { %4539 = vmatpush3.bf16.msra.mxu1 %v4538_v39 }
 0x517   : > { %4564 = vmatprep.subr.bf16.mxu1 %v4957_v3 }
 0x5e4   : > { %v1571_v44 = vpop.f32.mrb[4].mxu1 }
 0x5e5   : > { %v1572_v46 = vadd.f32 %v1571_v44, %v1504_v43  ;;  %v4196_v47 = vpop.f32.mrb[5].mxu1  ;;  %v1905_v43 = vld [vmem:[%s6346_s8 + $0x70] sm:$0xff]  ;;  %v1906_v44 = vld [vmem:[%s6346_s8 + $0x78] sm:$0xff] }
 0x5e6   : > { %v1816_v47 = vld [vmem:[%s6354_s16 + $0x3] sm:$0x1] }
 0x5e7   : > { %4206 = vmatmul.mubr.msk.f32.vlgmr.msra.gmra.mrb[4].mxu0 %vm672_vm2, %v1572_v46 }
 0x5e8   : > { %4524 = vmatpush3.bf16.msra.mxu0 %v4517_v25  ;;  %4216 = vmatprep.mubr.msk.f32.mxu0 %vm4958_vm0, %v4959_v6  ;;  %v4556_v25 = vpack.c.bf16 %v1902_v24, %v1901_v23 }
 0x5e9   : > { %4525 = vmatprep.subr.bf16.mxu0 %v4957_v3 }
 0x5ec   : > { %4527 = vmatpush3.bf16.msra.mxu0 %v4520_v41  ;;  %v4568_v41 = vpack.c.bf16 %v2009_v40, %v2008_v38  ;;  %v1980_v38 = vld [vmem:[%s6353_s15 + $0x8] sm:$0x1] }
 0x5ed   : > { %4528 = vmatprep.subr.bf16.mxu0 %v4957_v3 }
 0x6ba   : > { %v1650_v49 = vpop.f32.mrb[4].mxu0 }
 0x6bb   : > { %v1654_v50 = vsub.f32 %v1572_v46, %v1650_v49  ;;  %v4207_v52 = vpop.f32.mrb[5].mxu0  ;;  %v4562_v46 = vpack.c.bf16 %v1906_v44, %v1905_v43 }
 0x6bd   : > { %v1655_v53 = vmul.f32 %v1654_v50, %v1654_v50 }
 0x6bf   : > { %4217 = vmatmul.mubr.msk.f32.vlgmr.msra.gmra.mrb[6].mxu0 %vm672_vm2, %v1655_v53 }
 0x6c0   : > { %4227 = vmatprep.mubr.msk.f32.mxu0 %vm4958_vm0, %v4959_v6  ;;  %4530 = vmatpush3.bf16.msra.mxu0 %v4529_v56  ;;  %v1998_v56 = vlaneseq }
 0x6c1   : > { %4531 = vmatprep.subr.bf16.mxu0 %v4957_v3 }
 0x6c2   : > { %v5614_v57 = vshrl.u32 %v1998_v56, 7 }
 0x6c4   : > { %4533 = vmatpush3.bf16.msra.mxu0 %v4532_v59  ;;  %v5617_v58 = vsub.s32 0, %v5614_v57  ;;  %v2092_v59 = vsub.s32 1, %v5614_v57  ;;  %v2098_v60 = vsub.s32 2, %v5614_v57  ;;  %v2104_v61 = vsub.s32 3, %v5614_v57 }
 0x6c5   : > { %4540 = vmatprep.subr.bf16.mxu0 %v4957_v3  ;;  %v2110_v62 = vsub.s32 4, %v5614_v57  ;;  %v2116_v34 = vsub.s32 5, %v5614_v57  ;;  %v2122_v36 = vsub.s32 6, %v5614_v57  ;;  %v2128_v39 = vsub.s32 7, %v5614_v57 }
 0x792   : > { %v1725_v42 = vpop.f32.mrb[6].mxu0 }
 0x793   : > { %v1726_v45 = vadd.f32 1e-05, %v1725_v42  ;;  %v4218_v48 = vpop.f32.mrb[7].mxu0 }
 0x795   : > { %4691 = vrsqrt.f32 %v1726_v45 }
 0x79f   : > { %v4692_v51 = vpop.eup %4691 }
 0x7a0   : > { %v1730_v1 = vmul.f32 %v4692_v51, %v1654_v50 }
 0x7a2   : > { %v1731_v4 = vmul.f32 %v1730_v1, %v1579_v63 }
 0x7a4   : > { %v1732_v5 = vadd.f32 %v1731_v4, %v1580_v2 }
 0x7a6   : > { %v1733_v7 = vmax.f32 %v1732_v5, 0.0 }
 0x7a8   : > { %4228 = vmatmul.mubr.msk.f32.vlgmr.msra.gmra.mrb[8].mxu0 %vm672_vm2, %v1733_v7 }
 0x7a9   : > { %4273 = vmatprep.mubr.msk.f32.mxu0 %vm4958_vm0, %v4959_v6  ;;  %4542 = vmatpush3.bf16.msra.mxu0 %v4541_v11 }
 0x7aa   : > { %4543 = vmatprep.subr.bf16.mxu0 %v4957_v3 }
 0x7ad   : > { %4545 = vmatpush3.bf16.msra.mxu0 %v4544_v13 }
 0x7ae   : > { %4546 = vmatprep.subr.bf16.mxu0 %v4957_v3 }
 0x7b1   : > { %4548 = vmatpush3.bf16.msra.mxu0 %v4547_v16  ;;  %v1978_v16 = vld [vmem:[%s6353_s15 + $0x7] sm:$0x1] }
 0x7b2   : > { %4549 = vmatprep.subr.bf16.mxu0 %v4957_v3 }
 0x7b5   : > { %4551 = vmatpush3.bf16.msra.mxu0 %v4550_v19 }
 0x7b6   : > { %4552 = vmatprep.subr.bf16.mxu0 %v4957_v3 }
 0x7b9   : > { %4554 = vmatpush3.bf16.msra.mxu0 %v4553_v22 }
 0x7ba   : > { %4555 = vmatprep.subr.bf16.mxu0 %v4957_v3 }
 0x7bd   : > { %4557 = vmatpush3.bf16.msra.mxu0 %v4556_v25 }
 0x7be   : > { %4558 = vmatprep.subr.bf16.mxu0 %v4957_v3 }
 0x7c1   : > { %4560 = vmatpush3.bf16.msra.mxu0 %v4559_v28  ;;  %v4570_v28 = vpack.c.bf16 %v2141_v27, %v2140_v26 }
 0x7c2   : > { %4561 = vmatprep.subr.bf16.mxu0 %v4957_v3 }
 0x7c5   : > { %4563 = vmatpush3.bf16.msra.mxu0 %v4562_v46 }
 0x87b   : > { %v1808_v32 = vpop.f32.mrb[8].mxu0 }
 0x87c   : > { %v1809_v35 = vadd.f32 %v1808_v32, %v1738_v31  ;;  %v4229_v37 = vpop.f32.mrb[9].mxu0  ;;  %v4574_v31 = vpack.c.bf16 %v2143_v30, %v2142_v29 }
 0x87e   : > { %4239 = vmatmul.mubr.msk.f32.vlgmr.msra.gmra.mrb[6].mxu1 %vm672_vm2, %v1809_v35 }
 0x87f   : > { %4566 = vmatpush3.bf16.msra.mxu1 %v4565_v33  ;;  %4284 = vmatprep.mubr.msk.f32.mxu1 %vm4958_vm0, %v4959_v6 }
 0x880   : > { %4567 = vmatprep.subr.bf16.mxu1 %v4957_v3 }
 0x883   : > { %4569 = vmatpush3.bf16.msra.mxu1 %v4568_v41  ;;  %v1981_v41 = vld [vmem:[%s6353_s15 + $0x9] sm:$0x1] }
 0x884   : > { %4571 = vmatprep.subr.bf16.mxu1 %v4570_v28 }
 0x886   : > { %4285 = vmatmul.mubr.msk.f32.vlgmr.msra.gmra.mrb[8].mxu1 %vm672_vm2, %v5250_v0 }
 0x887   : > { %4573 = vmatpush3.bf16.msra.mxu1 %v4570_v28 }
 0x888   : > { %4575 = vmatprep.subr.bf16.mxu1 %v4574_v31 }
 0x88b   : > { %4577 = vmatpush3.bf16.msra.mxu1 %v4574_v31 }
 0x88c   : > { %4578 = vmatprep.subr.bf16.mxu1 %v4957_v3 }
 0x951   : > { %v1886_v49 = vpop.f32.mrb[6].mxu1 }
 0x952   : > { %v1887_v50 = vadd.f32 %v1886_v49, %v1816_v47  ;;  %v4240_v52 = vpop.f32.mrb[7].mxu1 }
 0x954   : > { %v1890_v53 = vmax.f32 %v1887_v50, 0.0 }
 0x956   : > { %4274 = vmatmul.mubr.f32.vlgmr.msra.gmra.mrb[10].mxu0 %v1890_v53 }
 0x959   : > { %v5610_v54 = vpop.f32.mrb[8].mxu1 }
 0x95a   : > { %2085 = vrot.lane.b32.xlu0 %v5610_v54, %s6366_s21  ;;  %v4286_v55 = vpop.f32.mrb[9].mxu1  ;;  %v2083_v42 = vrot.slane %v5610_v54, %v5617_v58  ;;  %v2093_v45 = vrot.slane %v5610_v54, %v2092_v59  ;;  %v2099_v48 = vrot.slane %v5610_v54, %v2098_v60  ;;  %v2105_v51 = vrot.slane %v5610_v54, %v2104_v61  ;;  %s6389_s21 = smov 32  }
 0x95b   : > { %v2111_v1 = vrot.slane %v5610_v54, %v2110_v62  ;;  %v2117_v2 = vrot.slane %v5610_v54, %v2116_v34  ;;  %v2123_v4 = vrot.slane %v5610_v54, %v2122_v36  ;;  %v2129_v5 = vrot.slane %v5610_v54, %v2128_v39 }
 0x9cc   : > { %v2086_v63 = vpop.permute.xlu0 %2085 }
 0x9cd   : > { %v2088_v7 = vadd.f32 %v2086_v63, %v2083_v42  ;;  %v2094_v8 = vadd.f32 %v2093_v45, %v2086_v63  ;;  %v2100_v9 = vadd.f32 %v2099_v48, %v2086_v63  ;;  %v2106_v10 = vadd.f32 %v2105_v51, %v2086_v63 }
 0x9ce   : > { %v2112_v11 = vadd.f32 %v2111_v1, %v2086_v63  ;;  %v2118_v12 = vadd.f32 %v2117_v2, %v2086_v63  ;;  %v2124_v13 = vadd.f32 %v2123_v4, %v2086_v63  ;;  %v2130_v14 = vadd.f32 %v2129_v5, %v2086_v63 }
 0x9cf   : > { %2089 = vst.msk [vmem:[#allocation2] sm:$0xff] %vm672_vm2, %v2088_v7  ;;  %2095 = vst.msk [vmem:[#allocation2 + $0x8] sm:$0xff] %vm672_vm2, %v2094_v8 }
 0x9d0   : > { %2101 = vst.msk [vmem:[#allocation2 + $0x10] sm:$0xff] %vm672_vm2, %v2100_v9  ;;  %2107 = vst.msk [vmem:[#allocation2 + $0x18] sm:$0xff] %vm672_vm2, %v2106_v10 }
 0x9d1   : > { %2113 = vst.msk [vmem:[#allocation2 + $0x20] sm:$0xff] %vm672_vm2, %v2112_v11  ;;  %2119 = vst.msk [vmem:[#allocation2 + $0x28] sm:$0xff] %vm672_vm2, %v2118_v12 }
 0x9d2   : > { %2125 = vst.msk [vmem:[#allocation2 + $0x30] sm:$0xff] %vm672_vm2, %v2124_v13  ;;  %2131 = vst.msk [vmem:[#allocation2 + $0x38] sm:$0xff] %vm672_vm2, %v2130_v14 }
 0x9d6   : > { %v2133_v47 = vld [vmem:[#allocation2 + $0x8] sm:$0xff]  ;;  %v2132_v53 = vld [vmem:[#allocation2] sm:$0xff] }
 0x9d7   : > { %v2135_v48 = vld [vmem:[#allocation2 + $0x18] sm:$0xff]  ;;  %v2134_v4 = vld [vmem:[#allocation2 + $0x10] sm:$0xff] }
 0x9d8   : > { %v2137_v11 = vld [vmem:[#allocation2 + $0x28] sm:$0xff] }
 0x9d9   : > { %v2138_v9 = vld [vmem:[#allocation2 + $0x30] sm:$0xff] }
 0xa29   : > { %v1973_v15 = vpop.f32.mrb[10].mxu0 }
 0xa2a   : > { %v1977_v17 = vadd.f32 %v1973_v15, %v1809_v35  ;;  %v4275_v18 = vpop.f32.mrb[11].mxu0 }
 0xa2c   : > { %v1979_v19 = vadd.f32 %v1978_v16, %v1977_v17  ;;  %v2136_v16 = vld [vmem:[#allocation2 + $0x20] sm:$0xff] }
 0xa2e   : > { %v1983_v20 = vsel %vm1982_vm3, %v1979_v19, 0.0 }
 0xa2f   : > { %1984 = vadd.xlane.f32.xlu1 %v1983_v20 }
 0xabc   : > { %v1985_v21 = vpop.xlane.xlu1 %1984 }
 0xabd   : > { %v1986_v22 = vmul.f32 0.03125, %v1985_v21 }
 0xabf   : > { %v1987_v23 = vsub.f32 %v1979_v19, %v1986_v22  ;;  %v2139_v19 = vld [vmem:[#allocation2 + $0x38] sm:$0xff] }
 0xac1   : > { %v1988_v24 = vmul.f32 %v1987_v23, %v1987_v23 }
 0xac3   : > { %v1989_v25 = vsel %vm1982_vm3, %v1988_v24, 0.0 }
 0xac4   : > { %1990 = vadd.xlane.f32.xlu1 %v1989_v25 }
 0xb51   : > { %v1991_v32 = vpop.xlane.xlu1 %1990 }
 0xb52   : > { %v1992_v33 = vmul.f32 0.03125, %v1991_v32 }
 0xb54   : > { %v1993_v35 = vadd.f32 1e-05, %v1992_v33 }
 0xb56   : > { %4693 = vrsqrt.f32 %v1993_v35 }
 0xb60   : > { %v4694_v37 = vpop.eup %4693 }
 0xb61   : > { %v1995_v40 = vmul.f32 %v4694_v37, %v1987_v23 }
 0xb63   : > { %v1996_v43 = vmul.f32 %v1995_v40, %v1980_v38 }
 0xb65   : > { %v1997_v44 = vadd.f32 %v1996_v43, %v1981_v41 }
 0xb67   : > { %v5682_v46 = vrot.slane %v1997_v44, %v5617_v58 }
 0xb69   : > { %4295 = vmatprep.mubr.msk.f32.mxu1 %vm672_vm2, %v5682_v46 }
 0xb6a   : > { %4296 = vmatmul.mubr.msk.f32.vlgmr.msra.gmra.mrb[10].mxu1 %vm672_vm2, %v5682_v46 }
 0xb6b   : > { %4298 = vmatprep.mubr.msk.f32.mxu1 %vm672_vm2, %v5682_v46 }
 0xb6e   : > { %4299 = vmatmul.mubr.msk.f32.gmra.mrb[12].mxu1 %vm672_vm2, %v5682_v46 }
 0xb6f   : > { %4301 = vmatprep.mubr.msk.f32.mxu1 %vm672_vm2, %v5682_v46 }
 0xb72   : > { %4302 = vmatmul.mubr.msk.f32.gmra.mrb[14].mxu1 %vm672_vm2, %v5682_v46 }
 0xb73   : > { %4304 = vmatprep.mubr.msk.f32.mxu1 %vm672_vm2, %v5682_v46 }
 0xb76   : > { %4305 = vmatmul.mubr.msk.f32.gmra.mrb[16].mxu1 %vm672_vm2, %v5682_v46 }
 0xb77   : > { %4315 = vmatprep.mubr.msk.f32.mxu1 %vm4958_vm0, %v4959_v6 }
 0xc3d   : > { %v4297_v49 = vpop.f32.mrb[10].mxu1 }
 0xc3e   : > { %v2253_v50 = vadd.f32 %v4297_v49, %v2133_v47  ;;  %v2213_v52 = vpop.f32.mrb[11].mxu1 }
 0xc3f   : > { %v2252_v55 = vadd.f32 %v2213_v52, %v2132_v53 }
 0xc40   : > { %v2263_v56 = vsel %vm672_vm2, %v2253_v50, 0.0 }
 0xc41   : > { %2264 = vadd.xlane.f32.xlu1 %v2263_v56  ;;  %v4300_v42 = vpop.f32.mrb[12].mxu1  ;;  %v2260_v63 = vsel %vm672_vm2, %v2252_v55, 0.0 }
 0xc42   : > { %v2223_v45 = vpop.f32.mrb[13].mxu1  ;;  %v2255_v51 = vadd.f32 %v4300_v42, %v2135_v48 }
 0xc43   : > { %v2254_v5 = vadd.f32 %v2223_v45, %v2134_v4 }
 0xc44   : > { %v2269_v7 = vsel %vm672_vm2, %v2255_v51, 0.0 }
 0xc45   : > { %2261 = vadd.xlane.f32.xlu1 %v2260_v63  ;;  %v4303_v1 = vpop.f32.mrb[14].mxu1  ;;  %v2266_v14 = vsel %vm672_vm2, %v2254_v5, 0.0 }
 0xc46   : > { %v2233_v2 = vpop.f32.mrb[15].mxu1  ;;  %v2257_v13 = vadd.f32 %v4303_v1, %v2137_v11 }
 0xc47   : > { %v2256_v17 = vadd.f32 %v2233_v2, %v2136_v16  ;;  %v2834_v16 = vld [vmem:[%s6350_s12 + $0x10] sm:$0xff] }
 0xc48   : > { %v2275_v18 = vsel %vm672_vm2, %v2257_v13, 0.0 }
 0xc49   : > { %2270 = vadd.xlane.f32.xlu1 %v2269_v7  ;;  %v4306_v8 = vpop.f32.mrb[16].mxu1  ;;  %v2272_v21 = vsel %vm672_vm2, %v2256_v17, 0.0 }
 0xc4a   : > { %v2243_v10 = vpop.f32.mrb[17].mxu1  ;;  %v2259_v20 = vadd.f32 %v4306_v8, %v2139_v19 }
 0xc4b   : > { %v2258_v12 = vadd.f32 %v2243_v10, %v2138_v9 }
 0xc4c   : > { %v2281_v22 = vsel %vm672_vm2, %v2259_v20, 0.0 }
 0xc4d   : > { %2267 = vadd.xlane.f32.xlu1 %v2266_v14  ;;  %v2278_v15 = vsel %vm672_vm2, %v2258_v12, 0.0  ;;  %v2833_v14 = vld [vmem:[%s6350_s12 + $0x8] sm:$0xff] }
 0xc4e   : > { %2279 = vadd.xlane.f32.xlu0 %v2278_v15 }
 0xc51   : > { %2276 = vadd.xlane.f32.xlu1 %v2275_v18 }
 0xc55   : > { %2273 = vadd.xlane.f32.xlu1 %v2272_v21 }
 0xc59   : > { %2282 = vadd.xlane.f32.xlu1 %v2281_v22 }
 0xcce   : > { %v2265_v23 = vpop.xlane.xlu1 %2264 }
 0xccf   : > { %v2285_v24 = vmul.f32 0.03125, %v2265_v23 }
 0xcd1   : > { %v5710_v25 = vsub.f32 %v2253_v50, %v2285_v24 }
 0xcd2   : > { %v2262_v26 = vpop.xlane.xlu1 %2261 }
 0xcd3   : > { %v2284_v27 = vmul.f32 0.03125, %v2262_v26  ;;  %v2301_v28 = vmul.f32 %v5710_v25, %v5710_v25 }
 0xcd5   : > { %v5714_v29 = vsub.f32 %v2252_v55, %v2284_v27  ;;  %v2311_v30 = vsel %vm672_vm2, %v2301_v28, 0.0 }
 0xcd6   : > { %v2271_v31 = vpop.xlane.xlu1 %2270  ;;  %2312 = vadd.xlane.f32.xlu1 %v2311_v30 }
 0xcd7   : > { %v2287_v32 = vmul.f32 0.03125, %v2271_v31  ;;  %v2300_v33 = vmul.f32 %v5714_v29, %v5714_v29 }
 0xcd9   : > { %v5719_v35 = vsub.f32 %v2255_v51, %v2287_v32  ;;  %v2308_v37 = vsel %vm672_vm2, %v2300_v33, 0.0  ;;  %v5768_v33 = vld [vmem:[%s6353_s15 + $0xa] ss:$0 sm:$0xff] }
 0xcda   : > { %v2268_v38 = vpop.xlane.xlu1 %2267  ;;  %2309 = vadd.xlane.f32.xlu1 %v2308_v37 }
 0xcdb   : > { %v2286_v40 = vmul.f32 0.03125, %v2268_v38  ;;  %v2303_v41 = vmul.f32 %v5719_v35, %v5719_v35  ;;  %v2280_v47 = vpop.xlane.xlu0 %2279 }
 0xcdc   : > { %v2290_v53 = vmul.f32 0.03125, %v2280_v47 }
 0xcdd   : > { %v5724_v43 = vsub.f32 %v2254_v5, %v2286_v40  ;;  %v2317_v44 = vsel %vm672_vm2, %v2303_v41, 0.0 }
 0xcde   : > { %v2277_v49 = vpop.xlane.xlu1 %2276  ;;  %2318 = vadd.xlane.f32.xlu1 %v2317_v44  ;;  %v5734_v51 = vsub.f32 %v2258_v12, %v2290_v53  ;;  %v5774_v44 = vld [vmem:[%s6353_s15 + $0xb] ss:$0 sm:$0xff] }
 0xcdf   : > { %v2289_v50 = vmul.f32 0.03125, %v2277_v49  ;;  %v2302_v52 = vmul.f32 %v5724_v43, %v5724_v43 }
 0xce0   : > { %v2306_v9 = vmul.f32 %v5734_v51, %v5734_v51 }
 0xce1   : > { %v5729_v55 = vsub.f32 %v2257_v13, %v2289_v50  ;;  %v2314_v56 = vsel %vm672_vm2, %v2302_v52, 0.0  ;;  %v2832_v13 = vld [vmem:[%s6350_s12] sm:$0xff] }
 0xce2   : > { %v2274_v42 = vpop.xlane.xlu1 %2273  ;;  %2315 = vadd.xlane.f32.xlu1 %v2314_v56  ;;  %v2326_v12 = vsel %vm672_vm2, %v2306_v9, 0.0  ;;  %v4584_v15 = vpack.c.bf16 %v2833_v14, %v2832_v13 }
 0xce3   : > { %v2288_v45 = vmul.f32 0.03125, %v2274_v42  ;;  %v2305_v48 = vmul.f32 %v5729_v55, %v5729_v55 }
 0xce4   : > { %4585 = vmatprep.subr.bf16.mxu0 %v4584_v15 }
 0xce5   : > { %v5736_v63 = vsub.f32 %v2256_v17, %v2288_v45  ;;  %v2323_v1 = vsel %vm672_vm2, %v2305_v48, 0.0  ;;  %4587 = vmatpush3.bf16.msra.mxu0 %v4584_v15  ;;  %v2835_v17 = vld [vmem:[%s6350_s12 + $0x18] sm:$0xff] }
 0xce6   : > { %2324 = vadd.xlane.f32.xlu1 %v2323_v1  ;;  %v2283_v2 = vpop.xlane.xlu1 %2282  ;;  %v4588_v18 = vpack.c.bf16 %v2835_v17, %v2834_v16 }
 0xce7   : > { %v2291_v4 = vmul.f32 0.03125, %v2283_v2  ;;  %v2304_v5 = vmul.f32 %v5736_v63, %v5736_v63 }
 0xce8   : > { %4589 = vmatprep.subr.bf16.mxu0 %v4588_v18 }
 0xce9   : > { %v5741_v7 = vsub.f32 %v2259_v20, %v2291_v4  ;;  %v2320_v8 = vsel %vm672_vm2, %v2304_v5, 0.0  ;;  %4591 = vmatpush3.bf16.msra.mxu0 %v4588_v18 }
 0xcea   : > { %2321 = vadd.xlane.f32.xlu1 %v2320_v8  ;;  %4598 = vmatprep.subr.bf16.mxu0 %v4957_v3 }
 0xceb   : > { %v2307_v10 = vmul.f32 %v5741_v7, %v5741_v7 }
 0xced   : > { %v2329_v11 = vsel %vm672_vm2, %v2307_v10, 0.0 }
 0xcee   : > { %2330 = vadd.xlane.f32.xlu0 %v2329_v11  ;;  %2327 = vadd.xlane.f32.xlu1 %v2326_v12 }
 0xcff   : > { %2480 = vrot.lane.b32.xlu1 %v5610_v54, %s6365_s23  ;;  %s6246_s23 = sand.u32 1, %s4947_s28  }
 0xd00   : > { %s3736_s1 = sshll.u32 %s6246_s23, 3 }
 0xd01   : > { %s570_s24 = scalar_lea.vmem [#allocation4], %s3736_s1 }
 0xd02   : > { %s3628_s29 = sshll.u32 %s570_s24, 4  ;;  %s6264_s29 = int_to_ptr.vmem [resolvable:$true] %s3628_s29 }
 0xd03   : > { %s4861_s4 = scalar_lea.vmem %s6264_s29, 128  ;;  %p4868_p0 = scmp.lt.s32.totalorder %s6264_s29, %s4866_s26 }
 0xd04   : > { %p4862_p11 = scmp.ne.s32.totalorder %s6264_s29, %s4861_s4  ;;  %p4869_p1 = scmp.lt.s32.totalorder %s4867_s6, %s4861_s4 }
 0xd06   : > { %p4863_p12 = pnand %p4862_p11, %p5098_p5  ;;  %p4870_p2 = por %p4869_p1, %p4868_p0 }
 0xd08   : > { %p4864_p13 = pneg %p4863_p12 }
 0xd0a   : > { %p4871_p3 = pnand %p4870_p2, %p4864_p13 }
 0xd63   : > { %v2313_v19 = vpop.xlane.xlu1 %2312 }
 0xd64   : > { %v2333_v20 = vmul.f32 0.03125, %v2313_v19 }
 0xd66   : > { %v2341_v21 = vadd.f32 1e-05, %v2333_v20 }
 0xd67   : > { %v2310_v22 = vpop.xlane.xlu1 %2309 }
 0xd68   : > { %4695 = vrsqrt.f32 %v2341_v21  ;;  %v2332_v23 = vmul.f32 0.03125, %v2310_v22 }
 0xd6a   : > { %v2340_v24 = vadd.f32 1e-05, %v2332_v23 }
 0xd6b   : > { %v2319_v26 = vpop.xlane.xlu1 %2318 }
 0xd6c   : > { %4697 = vrsqrt.f32 %v2340_v24  ;;  %v2335_v27 = vmul.f32 0.03125, %v2319_v26 }
 0xd6e   : > { %v2343_v28 = vadd.f32 1e-05, %v2335_v27 }
 0xd6f   : > { %v2316_v30 = vpop.xlane.xlu1 %2315 }
 0xd70   : > { %4699 = vrsqrt.f32 %v2343_v28  ;;  %v2334_v31 = vmul.f32 0.03125, %v2316_v30 }
 0xd72   : > { %v4696_v32 = vpop.eup %4695  ;;  %v2342_v37 = vadd.f32 1e-05, %v2334_v31 }
 0xd73   : > { %v2357_v38 = vmul.f32 %v4696_v32, %v5710_v25  ;;  %v2325_v40 = vpop.xlane.xlu1 %2324 }
 0xd74   : > { %4701 = vrsqrt.f32 %v2342_v37  ;;  %v2337_v41 = vmul.f32 0.03125, %v2325_v40 }
 0xd75   : > { %v2369_v47 = vmul.f32 %v5768_v33, %v2357_v38 }
 0xd76   : > { %v4698_v49 = vpop.eup %4697  ;;  %v2345_v50 = vadd.f32 1e-05, %v2337_v41 }
 0xd77   : > { %v2356_v52 = vmul.f32 %v4698_v49, %v5714_v29  ;;  %v2322_v53 = vpop.xlane.xlu1 %2321  ;;  %v2381_v56 = vadd.f32 %v5774_v44, %v2369_v47 }
 0xd78   : > { %4703 = vrsqrt.f32 %v2345_v50  ;;  %v2336_v42 = vmul.f32 0.03125, %v2322_v53 }
 0xd79   : > { %v2368_v25 = vmul.f32 %v5768_v33, %v2356_v52  ;;  %v2389_v45 = vmax.f32 %v2381_v56, 0.0 }
 0xd7a   : > { %v4700_v48 = vpop.eup %4699  ;;  %v2344_v1 = vadd.f32 1e-05, %v2336_v42 }
 0xd7b   : > { %v2359_v2 = vmul.f32 %v4700_v48, %v5719_v35  ;;  %v2328_v4 = vpop.xlane.xlu1 %2327  ;;  %v2331_v5 = vpop.xlane.xlu0 %2330  ;;  %v2380_v8 = vadd.f32 %v5774_v44, %v2368_v25  ;;  %v5783_v9 = vadd.f32 %v2389_v45, %v5682_v46 }
 0xd7c   : > { %4705 = vrsqrt.f32 %v2344_v1  ;;  %v2338_v29 = vmul.f32 0.03125, %v2328_v4  ;;  %v2339_v10 = vmul.f32 0.03125, %v2331_v5 }
 0xd7d   : > { %v2388_v11 = vmax.f32 %v2380_v8, 0.0  ;;  %v2405_v12 = vsub.f32 0.0, %v5783_v9  ;;  %v2371_v13 = vmul.f32 %v5768_v33, %v2359_v2 }
 0xd7e   : > { %v4702_v14 = vpop.eup %4701  ;;  %v2346_v15 = vadd.f32 1e-05, %v2338_v29  ;;  %v2347_v16 = vadd.f32 1e-05, %v2339_v10 }
 0xd7f   : > { %v2358_v35 = vmul.f32 %v4702_v14, %v5724_v43  ;;  %v5789_v17 = vadd.f32 %v2388_v11, %v5682_v46  ;;  %v2414_v18 = vmul.f32 1.442695, %v2405_v12  ;;  %v2383_v19 = vadd.f32 %v5774_v44, %v2371_v13 }
 0xd80   : > { %4707 = vrsqrt.f32 %v2346_v15 }
 0xd81   : > { %4709 = vrsqrt.f32 %v2347_v16  ;;  %v2404_v20 = vsub.f32 0.0, %v5789_v17  ;;  %4326 = vmatprep.mubr.msk.f32.mxu0 %vm672_vm2, %v5789_v17  ;;  %v2370_v21 = vmul.f32 %v5768_v33, %v2358_v35  ;;  %v2391_v22 = vmax.f32 %v2383_v19, 0.0 }
 0xd82   : > { %v4704_v23 = vpop.eup %4703  ;;  %4711 = vpow2.f32 %v2414_v18  ;;  %4327 = vmatmul.mubr.msk.f32.vlgmr.msra.gmra.mrb[12].mxu0 %vm672_vm2, %v5783_v9 }
 0xd83   : > { %v2361_v43 = vmul.f32 %v4704_v23, %v5729_v55  ;;  %v2412_v24 = vmul.f32 1.442695, %v2404_v20  ;;  %v2382_v26 = vadd.f32 %v5774_v44, %v2370_v21  ;;  %v5801_v27 = vadd.f32 %v2391_v22, %v5682_v46 }
 0xd85   : > { %4713 = vpow2.f32 %v2412_v24  ;;  %v2390_v28 = vmax.f32 %v2382_v26, 0.0  ;;  %v2407_v30 = vsub.f32 0.0, %v5801_v27  ;;  %v2373_v31 = vmul.f32 %v5768_v33, %v2361_v43 }
 0xd86   : > { %v4706_v32 = vpop.eup %4705 }
 0xd87   : > { %v2360_v37 = vmul.f32 %v4706_v32, %v5736_v63  ;;  %v5807_v38 = vadd.f32 %v2390_v28, %v5682_v46  ;;  %v2418_v40 = vmul.f32 1.442695, %v2407_v30  ;;  %v2385_v55 = vadd.f32 %v5774_v44, %v2373_v31 }
 0xd89   : > { %v2406_v41 = vsub.f32 0.0, %v5807_v38  ;;  %4329 = vmatprep.mubr.msk.f32.mxu0 %vm672_vm2, %v5807_v38  ;;  %4715 = vpow2.f32 %v2418_v40  ;;  %v2372_v47 = vmul.f32 %v5768_v33, %v2360_v37  ;;  %v2393_v49 = vmax.f32 %v2385_v55, 0.0 }
 0xd8a   : > { %v4708_v50 = vpop.eup %4707  ;;  %4330 = vmatmul.mubr.msk.f32.gmra.mrb[14].mxu0 %vm672_vm2, %v5801_v27 }
 0xd8b   : > { %v4710_v63 = vpop.eup %4709  ;;  %v2362_v52 = vmul.f32 %v4708_v50, %v5734_v51  ;;  %v2416_v53 = vmul.f32 1.442695, %v2406_v41  ;;  %v2384_v56 = vadd.f32 %v5774_v44, %v2372_v47  ;;  %v5819_v42 = vadd.f32 %v2393_v49, %v5682_v46 }
 0xd8c   : > { %v4712_v25 = vpop.eup %4711  ;;  %v2363_v45 = vmul.f32 %v4710_v63, %v5741_v7 }
 0xd8d   : > { %v2429_v48 = vadd.f32 1.0, %v4712_v25  ;;  %4717 = vpow2.f32 %v2416_v53  ;;  %v2392_v1 = vmax.f32 %v2384_v56, 0.0  ;;  %v2409_v2 = vsub.f32 0.0, %v5819_v42 }
 0xd8e   : > { %v2374_v4 = vmul.f32 %v5768_v33, %v2362_v52  ;;  %v2375_v5 = vmul.f32 %v5768_v33, %v2363_v45 }
 0xd8f   : > { %v4714_v8 = vpop.eup %4713  ;;  %4719 = vrcp.f32 %v2429_v48  ;;  %v5826_v51 = vadd.f32 %v2392_v1, %v5682_v46  ;;  %v2422_v29 = vmul.f32 1.442695, %v2409_v2 }
 0xd90   : > { %v2428_v10 = vadd.f32 1.0, %v4714_v8  ;;  %v2386_v11 = vadd.f32 %v5774_v44, %v2374_v4  ;;  %v2387_v7 = vadd.f32 %v5774_v44, %v2375_v5 }
 0xd91   : > { %v2408_v12 = vsub.f32 0.0, %v5826_v51  ;;  %4332 = vmatprep.mubr.msk.f32.mxu0 %vm672_vm2, %v5826_v51  ;;  %4721 = vpow2.f32 %v2422_v29 }
 0xd92   : > { %4723 = vrcp.f32 %v2428_v10  ;;  %4333 = vmatmul.mubr.msk.f32.gmra.mrb[16].mxu0 %vm672_vm2, %v5819_v42  ;;  %v2394_v33 = vmax.f32 %v2386_v11, 0.0  ;;  %v2395_v13 = vmax.f32 %v2387_v7, 0.0 }
 0xd93   : > { %v4716_v14 = vpop.eup %4715  ;;  %v2420_v15 = vmul.f32 1.442695, %v2408_v12 }
 0xd94   : > { %v2431_v16 = vadd.f32 1.0, %v4716_v14  ;;  %v5836_v35 = vadd.f32 %v2394_v33, %v5682_v46  ;;  %v5839_v44 = vadd.f32 %v2395_v13, %v5682_v46 }
 0xd95   : > { %4725 = vpow2.f32 %v2420_v15 }
 0xd96   : > { %4727 = vrcp.f32 %v2431_v16  ;;  %v2410_v18 = vsub.f32 0.0, %v5836_v35  ;;  %4335 = vmatprep.mubr.msk.f32.mxu0 %vm672_vm2, %v5836_v35  ;;  %v2411_v19 = vsub.f32 0.0, %v5839_v44 }
 0xd97   : > { %v4718_v20 = vpop.eup %4717  ;;  %4336 = vmatmul.mubr.msk.f32.gmra.mrb[18].mxu0 %vm672_vm2, %v5839_v44 }
 0xd98   : > { %v2430_v21 = vadd.f32 1.0, %v4718_v20  ;;  %v2424_v22 = vmul.f32 1.442695, %v2410_v18  ;;  %4381 = vmatprep.mubr.msk.f32.mxu0 %vm4958_vm0, %v4959_v6  ;;  %v2426_v23 = vmul.f32 1.442695, %v2411_v19 }
 0xd99   : > { %v4720_v46 = vpop.eup %4719 }
 0xd9a   : > { %v2454_v43 = vmul.f32 1.442695, %v4720_v46  ;;  %4729 = vrcp.f32 %v2430_v21 }
 0xd9b   : > { %v4722_v24 = vpop.eup %4721  ;;  %4731 = vpow2.f32 %v2424_v22 }
 0xd9c   : > { %v4724_v26 = vpop.eup %4723  ;;  %4733 = vpow2.f32 %v2454_v43  ;;  %v2433_v28 = vadd.f32 1.0, %v4722_v24 }
 0xd9d   : > { %v2452_v30 = vmul.f32 1.442695, %v4724_v26  ;;  %4735 = vpow2.f32 %v2426_v23 }
 0xd9e   : > { %4737 = vrcp.f32 %v2433_v28 }
 0xd9f   : > { %v4726_v31 = vpop.eup %4725  ;;  %4739 = vpow2.f32 %v2452_v30 }
 0xda0   : > { %v4728_v32 = vpop.eup %4727  ;;  %v2432_v37 = vadd.f32 1.0, %v4726_v31 }
 0xda1   : > { %v2458_v40 = vmul.f32 1.442695, %v4728_v32 }
 0xda2   : > { %4741 = vrcp.f32 %v2432_v37 }
 0xda3   : > { %4743 = vpow2.f32 %v2458_v40 }
 0xda4   : > { %v4730_v55 = vpop.eup %4729 }
 0xda5   : > { %v4732_v41 = vpop.eup %4731  ;;  %v2456_v47 = vmul.f32 1.442695, %v4730_v55 }
 0xda6   : > { %v5849_v49 = vpop.eup %4733  ;;  %v2434_v50 = vadd.f32 1.0, %v4732_v41 }
 0xda7   : > { %v4736_v63 = vpop.eup %4735  ;;  %v2492_v52 = vsel %vm672_vm2, %v5849_v49, 0.0  ;;  %4745 = vpow2.f32 %v2456_v47 }
 0xda8   : > { %v4738_v53 = vpop.eup %4737  ;;  %v2493_v56 = vrot.slane %v2492_v52, 4  ;;  %4747 = vrcp.f32 %v2434_v50  ;;  %v2435_v25 = vadd.f32 1.0, %v4736_v63 }
 0xda9   : > { %v5853_v45 = vpop.eup %4739  ;;  %v2462_v48 = vmul.f32 1.442695, %v4738_v53 }
 0xdaa   : > { %v2468_v1 = vsel %vm672_vm2, %v5853_v45, 0.0  ;;  %v2494_v2 = vadd.f32 %v2493_v56, %v2492_v52  ;;  %4749 = vrcp.f32 %v2435_v25 }
 0xdab   : > { %v2469_v4 = vrot.slane %v2468_v1, 4  ;;  %4751 = vpow2.f32 %v2462_v48 }
 0xdac   : > { %v4742_v5 = vpop.eup %4741  ;;  %v2495_v8 = vrot.slane %v2494_v2, 2 }
 0xdad   : > { %v5857_v29 = vpop.eup %4743  ;;  %v2470_v10 = vadd.f32 %v2469_v4, %v2468_v1  ;;  %v2460_v11 = vmul.f32 1.442695, %v4742_v5 }
 0xdae   : > { %v2496_v7 = vadd.f32 %v2495_v8, %v2494_v2  ;;  %v2534_v12 = vsel %vm672_vm2, %v5857_v29, 0.0 }
 0xdaf   : > { %v2471_v33 = vrot.slane %v2470_v10, 2  ;;  %v2535_v13 = vrot.slane %v2534_v12, 4  ;;  %4753 = vpow2.f32 %v2460_v11 }
 0xdb0   : > { %v2497_v14 = vrot.slane %v2496_v7, 1 }
 0xdb1   : > { %v5861_v15 = vpop.eup %4745  ;;  %v2472_v16 = vadd.f32 %v2471_v33, %v2470_v10  ;;  %v2536_v18 = vadd.f32 %v2535_v13, %v2534_v12 }
 0xdb2   : > { %v4748_v19 = vpop.eup %4747  ;;  %v2498_v20 = vadd.f32 %v2497_v14, %v2496_v7  ;;  %v2513_v21 = vsel %vm672_vm2, %v5861_v15, 0.0 }
 0xdb3   : > { %v2473_v22 = vrot.slane %v2472_v16, 1  ;;  %v2514_v46 = vrot.slane %v2513_v21, 4  ;;  %v2537_v23 = vrot.slane %v2536_v18, 2  ;;  %v2464_v43 = vmul.f32 1.442695, %v4748_v19 }
 0xdb4   : > { %v4750_v24 = vpop.eup %4749  ;;  %4755 = vrcp.f32 %v2498_v20 }
 0xdb5   : > { %v5865_v26 = vpop.eup %4751  ;;  %v2474_v28 = vadd.f32 %v2473_v22, %v2472_v16  ;;  %v2515_v30 = vadd.f32 %v2514_v46, %v2513_v21  ;;  %v2538_v31 = vadd.f32 %v2537_v23, %v2536_v18  ;;  %4757 = vpow2.f32 %v2464_v43 }
 0xdb6   : > { %v2576_v32 = vsel %vm672_vm2, %v5865_v26, 0.0  ;;  %v2466_v37 = vmul.f32 1.442695, %v4750_v24 }
 0xdb7   : > { %4759 = vrcp.f32 %v2474_v28  ;;  %v2516_v40 = vrot.slane %v2515_v30, 2  ;;  %v2539_v55 = vrot.slane %v2538_v31, 1  ;;  %v2577_v41 = vrot.slane %v2576_v32, 4 }
 0xdb8   : > { %4761 = vpow2.f32 %v2466_v37 }
 0xdb9   : > { %v5869_v47 = vpop.eup %4753  ;;  %v2517_v50 = vadd.f32 %v2516_v40, %v2515_v30  ;;  %v2540_v63 = vadd.f32 %v2539_v55, %v2538_v31  ;;  %v2578_v52 = vadd.f32 %v2577_v41, %v2576_v32  ;;  %v5882_v40 = vpop.permute.xlu1 %2480 }
 0xdba   : > { %v2555_v53 = vsel %vm672_vm2, %v5869_v47, 0.0 }
 0xdbb   : > { %v2518_v56 = vrot.slane %v2517_v50, 1  ;;  %4763 = vrcp.f32 %v2540_v63  ;;  %v2556_v25 = vrot.slane %v2555_v53, 4  ;;  %v2579_v48 = vrot.slane %v2578_v52, 2 }
 0xdbd   : > { %v2519_v1 = vadd.f32 %v2518_v56, %v2517_v50  ;;  %v2557_v2 = vadd.f32 %v2556_v25, %v2555_v53  ;;  %v2580_v4 = vadd.f32 %v2579_v48, %v2578_v52 }
 0xdbe   : > { %v4756_v5 = vpop.eup %4755 }
 0xdbf   : > { %v5873_v8 = vpop.eup %4757  ;;  %v2500_v10 = vmul.f32 %v4756_v5, %v2498_v20  ;;  %4765 = vrcp.f32 %v2519_v1  ;;  %v2558_v11 = vrot.slane %v2557_v2, 2  ;;  %v2581_v7 = vrot.slane %v2580_v4, 1 }
 0xdc0   : > { %v2597_v12 = vsel %vm672_vm2, %v5873_v8, 0.0 }
 0xdc1   : > { %v4760_v33 = vpop.eup %4759  ;;  %v2501_v13 = vsub.f32 2.0, %v2500_v10  ;;  %v2559_v14 = vadd.f32 %v2558_v11, %v2557_v2  ;;  %v2582_v16 = vadd.f32 %v2581_v7, %v2580_v4  ;;  %v2598_v18 = vrot.slane %v2597_v12, 4 }
 0xdc2   : > { %v5877_v19 = vpop.eup %4761  ;;  %v2476_v21 = vmul.f32 %v4760_v33, %v2474_v28 }
 0xdc3   : > { %v2502_v22 = vmul.f32 %v4756_v5, %v2501_v13  ;;  %v2560_v46 = vrot.slane %v2559_v14, 1  ;;  %4767 = vrcp.f32 %v2582_v16  ;;  %v2599_v23 = vadd.f32 %v2598_v18, %v2597_v12 }
 0xdc4   : > { %v2477_v43 = vsub.f32 2.0, %v2476_v21  ;;  %v2618_v20 = vsel %vm672_vm2, %v5877_v19, 0.0 }
 0xdc5   : > { %v4764_v24 = vpop.eup %4763  ;;  %v2503_v30 = vmul.f32 %v5849_v49, %v2502_v22  ;;  %v2561_v31 = vadd.f32 %v2560_v46, %v2559_v14  ;;  %v2600_v32 = vrot.slane %v2599_v23, 2  ;;  %v2619_v37 = vrot.slane %v2618_v20, 4 }
 0xdc6   : > { %v2478_v55 = vmul.f32 %v4760_v33, %v2477_v43  ;;  %v2542_v41 = vmul.f32 %v4764_v24, %v2540_v63 }
 0xdc7   : > { %v2504_v28 = vmul.f32 %v2503_v30, %v5882_v40  ;;  %4769 = vrcp.f32 %v2561_v31  ;;  %v2601_v50 = vadd.f32 %v2600_v32, %v2599_v23  ;;  %v2620_v52 = vadd.f32 %v2619_v37, %v2618_v20 }
 0xdc8   : > { %v2479_v53 = vmul.f32 %v5853_v45, %v2478_v55  ;;  %v2543_v56 = vsub.f32 2.0, %v2542_v41 }
 0xdc9   : > { %v4766_v25 = vpop.eup %4765  ;;  %v2505_v48 = vsel %vm672_vm2, %v2504_v28, 0.0  ;;  %v2602_v2 = vrot.slane %v2601_v50, 1  ;;  %v2621_v49 = vrot.slane %v2620_v52, 2 }
 0xdca   : > { %v2483_v4 = vmul.f32 %v5882_v40, %v2479_v53  ;;  %v2506_v5 = vrot.slane %v2505_v48, 4  ;;  %v2521_v10 = vmul.f32 %v4766_v25, %v2519_v1  ;;  %v2544_v11 = vmul.f32 %v4764_v24, %v2543_v56 }
 0xdcb   : > { %v2603_v7 = vadd.f32 %v2602_v2, %v2601_v50  ;;  %v2622_v63 = vadd.f32 %v2621_v49, %v2620_v52 }
 0xdcc   : > { %v2484_v12 = vsel %vm672_vm2, %v2483_v4, 0.0  ;;  %v2507_v33 = vadd.f32 %v2506_v5, %v2505_v48  ;;  %v2522_v13 = vsub.f32 2.0, %v2521_v10  ;;  %v2545_v14 = vmul.f32 %v5857_v29, %v2544_v11 }
 0xdcd   : > { %v4768_v45 = vpop.eup %4767  ;;  %v2485_v18 = vrot.slane %v2484_v12, 4  ;;  %4771 = vrcp.f32 %v2603_v7  ;;  %v2623_v21 = vrot.slane %v2622_v63, 1 }
 0xdce   : > { %v2508_v22 = vrot.slane %v2507_v33, 2  ;;  %v2523_v46 = vmul.f32 %v4766_v25, %v2522_v13  ;;  %v2546_v23 = vmul.f32 %v2545_v14, %v5882_v40  ;;  %v2584_v43 = vmul.f32 %v4768_v45, %v2582_v16 }
 0xdcf   : > { %v2486_v20 = vadd.f32 %v2485_v18, %v2484_v12  ;;  %v2624_v1 = vadd.f32 %v2623_v21, %v2622_v63 }
 0xdd0   : > { %v2509_v24 = vadd.f32 %v2508_v22, %v2507_v33  ;;  %v2524_v30 = vmul.f32 %v5861_v15, %v2523_v46  ;;  %v2547_v32 = vsel %vm672_vm2, %v2546_v23, 0.0  ;;  %v2585_v37 = vsub.f32 2.0, %v2584_v43 }
 0xdd1   : > { %v4770_v55 = vpop.eup %4769  ;;  %v2487_v41 = vrot.slane %v2486_v20, 2  ;;  %v2548_v29 = vrot.slane %v2547_v32, 4  ;;  %4773 = vrcp.f32 %v2624_v1 }
 0xdd2   : > { %v2510_v28 = vrot.slane %v2509_v24, 1  ;;  %v2525_v50 = vmul.f32 %v2524_v30, %v5882_v40  ;;  %v2563_v52 = vmul.f32 %v4770_v55, %v2561_v31  ;;  %v2586_v53 = vmul.f32 %v4768_v45, %v2585_v37 }
 0xdd3   : > { %v2488_v56 = vadd.f32 %v2487_v41, %v2486_v20  ;;  %v2549_v25 = vadd.f32 %v2548_v29, %v2547_v32 }
 0xdd4   : > { %v2511_v16 = vadd.f32 %v2510_v28, %v2509_v24  ;;  %v2526_v48 = vsel %vm672_vm2, %v2525_v50, 0.0  ;;  %v2564_v2 = vsub.f32 2.0, %v2563_v52  ;;  %v2587_v15 = vmul.f32 %v5865_v26, %v2586_v53 }
 0xdd5   : > { %v2489_v49 = vrot.slane %v2488_v56, 1  ;;  %v2527_v4 = vrot.slane %v2526_v48, 4  ;;  %v2550_v5 = vrot.slane %v2549_v25, 2 }
 0xdd6   : > { %2512 = vst.msk [vmem:[#allocation3 + $0x1] sm:$0x1] %vm1982_vm3, %v2511_v16  ;;  %v2565_v10 = vmul.f32 %v4770_v55, %v2564_v2  ;;  %v2588_v11 = vmul.f32 %v2587_v15, %v5882_v40 }
 0xdd7   : > { %v4772_v63 = vpop.eup %4771  ;;  %v2490_v12 = vadd.f32 %v2489_v49, %v2488_v56  ;;  %v2528_v31 = vadd.f32 %v2527_v4, %v2526_v48  ;;  %v2551_v33 = vadd.f32 %v2550_v5, %v2549_v25 }
 0xdd8   : > { %v2566_v13 = vmul.f32 %v5869_v47, %v2565_v10  ;;  %v2589_v14 = vsel %vm672_vm2, %v2588_v11, 0.0  ;;  %v2605_v45 = vmul.f32 %v4772_v63, %v2603_v7 }
 0xdd9   : > { %2491 = vst.msk [vmem:[#allocation3] sm:$0x1] %vm1982_vm3, %v2490_v12  ;;  %v2529_v26 = vrot.slane %v2528_v31, 2  ;;  %v2552_v18 = vrot.slane %v2551_v33, 1  ;;  %v2590_v21 = vrot.slane %v2589_v14, 4 }
 0xdda   : > { %v2567_v22 = vmul.f32 %v2566_v13, %v5882_v40  ;;  %v2606_v46 = vsub.f32 2.0, %v2605_v45 }
 0xddb   : > { %v4774_v23 = vpop.eup %4773  ;;  %v2530_v43 = vadd.f32 %v2529_v26, %v2528_v31  ;;  %v2553_v20 = vadd.f32 %v2552_v18, %v2551_v33  ;;  %v2591_v24 = vadd.f32 %v2590_v21, %v2589_v14 }
 0xddc   : > { %v2568_v30 = vsel %vm672_vm2, %v2567_v22, 0.0  ;;  %v2607_v32 = vmul.f32 %v4772_v63, %v2606_v46  ;;  %v2626_v37 = vmul.f32 %v4774_v23, %v2624_v1 }
 0xddd   : > { %v2531_v47 = vrot.slane %v2530_v43, 1  ;;  %2554 = vst.msk [vmem:[#allocation3 + $0x3] sm:$0x1] %vm1982_vm3, %v2553_v20  ;;  %v2569_v7 = vrot.slane %v2568_v30, 4  ;;  %v2592_v55 = vrot.slane %v2591_v24, 2 }
 0xdde   : > { %v2608_v41 = vmul.f32 %v5873_v8, %v2607_v32  ;;  %v2627_v29 = vsub.f32 2.0, %v2626_v37 }
 0xddf   : > { %v2532_v28 = vadd.f32 %v2531_v47, %v2530_v43  ;;  %v2570_v50 = vadd.f32 %v2569_v7, %v2568_v30  ;;  %v2593_v52 = vadd.f32 %v2592_v55, %v2591_v24 }
 0xde0   : > { %v2609_v53 = vmul.f32 %v2608_v41, %v5882_v40  ;;  %v2628_v56 = vmul.f32 %v4774_v23, %v2627_v29  ;;  %v3766_v41 = vld [vmem:[%s6353_s15 + $0xc] ss:$0 sm:$0xff] }
 0xde1   : > { %2533 = vst.msk [vmem:[#allocation3 + $0x2] sm:$0x1] %vm1982_vm3, %v2532_v28  ;;  %v2571_v25 = vrot.slane %v2570_v50, 2  ;;  %v2594_v16 = vrot.slane %v2593_v52, 1 }
 0xde2   : > { %v2610_v1 = vsel %vm672_vm2, %v2609_v53, 0.0  ;;  %v2629_v48 = vmul.f32 %v5877_v19, %v2628_v56  ;;  %v3767_v56 = vld [vmem:[%s6353_s15 + $0xd] ss:$0 sm:$0xff] }
 0xde3   : > { %v2572_v2 = vadd.f32 %v2571_v25, %v2570_v50  ;;  %v2595_v15 = vadd.f32 %v2594_v16, %v2593_v52  ;;  %v2611_v49 = vrot.slane %v2610_v1, 4  ;;  %v2695_v25 = vld [vmem:[%s6348_s10] sm:$0xff]  ;;  %v2696_v16 = vld [vmem:[%s6348_s10 + $0x8] sm:$0xff] }
 0xde4   : > { %v2630_v8 = vmul.f32 %v2629_v48, %v5882_v40  ;;  %v4579_v48 = vpack.c.bf16 %v2696_v16, %v2695_v25 }
 0xde5   : > { %v2573_v4 = vrot.slane %v2572_v2, 1  ;;  %2596 = vst.msk [vmem:[#allocation3 + $0x5] sm:$0x1] %vm1982_vm3, %v2595_v15  ;;  %v2612_v5 = vadd.f32 %v2611_v49, %v2610_v1  ;;  %v2697_v1 = vld [vmem:[%s6348_s10 + $0x10] sm:$0xff] }
 0xde6   : > { %v2631_v10 = vsel %vm672_vm2, %v2630_v8, 0.0  ;;  %4580 = vmatpush3.bf16.msra.mxu1 %v4579_v48 }
 0xde7   : > { %v2574_v11 = vadd.f32 %v2573_v4, %v2572_v2  ;;  %v2613_v63 = vrot.slane %v2612_v5, 2  ;;  %v2632_v12 = vrot.slane %v2631_v10, 4  ;;  %v2698_v2 = vld [vmem:[%s6348_s10 + $0x18] sm:$0xff]  ;;  %4581 = vmatprep.subr.bf16.mxu1 %v4957_v3 }
 0xde8   : > { %v4582_v15 = vpack.c.bf16 %v2698_v2, %v2697_v1 }
 0xde9   : > { %2575 = vst.msk [vmem:[#allocation3 + $0x4] sm:$0x1] %vm1982_vm3, %v2574_v11  ;;  %v2614_v31 = vadd.f32 %v2613_v63, %v2612_v5  ;;  %v2633_v33 = vadd.f32 %v2632_v12, %v2631_v10 }
 0xdea   : > { %4583 = vmatpush3.bf16.msra.mxu1 %v4582_v15 }
 0xdeb   : > { %v2615_v13 = vrot.slane %v2614_v31, 1  ;;  %v2634_v19 = vrot.slane %v2633_v33, 2  ;;  %4592 = vmatprep.subr.bf16.mxu1 %v4957_v3 }
 0xded   : > { %v2616_v14 = vadd.f32 %v2615_v13, %v2614_v31  ;;  %v2635_v45 = vadd.f32 %v2634_v19, %v2633_v33 }
 0xdef   : > { %2617 = vst.msk [vmem:[#allocation3 + $0x6] sm:$0x1] %vm1982_vm3, %v2616_v14  ;;  %v2636_v40 = vrot.slane %v2635_v45, 1 }
 0xdf1   : > { %v2637_v26 = vadd.f32 %v2636_v40, %v2635_v45 }
 0xdf3   : > { %2638 = vst.msk [vmem:[#allocation3 + $0x7] sm:$0x1] %vm1982_vm3, %v2637_v26 }
 0xdfa   : > { %v2639_v18 = vld [vmem:[#allocation3] sm:$0xff] }
 0xdfb   : > { %v2640_v21 = vmul.f32 0.125, %v2639_v18 }
 0xdfd   : > { %2642 = vrot.lane.b32.xlu0 %v2640_v21, %s4962_s22 }
 0xe55   : > { %v5916_v22 = vpop.f32.mrb[12].mxu0 }
 0xe56   : > { %v5918_v46 = vpop.f32.mrb[13].mxu0 }
 0xe5d   : > { %v5920_v23 = vpop.f32.mrb[14].mxu0 }
 0xe5e   : > { %v5922_v43 = vpop.f32.mrb[15].mxu0 }
 0xe65   : > { %v5924_v20 = vpop.f32.mrb[16].mxu0 }
 0xe66   : > { %v5926_v24 = vpop.f32.mrb[17].mxu0 }
 0xe6a   : > { %v5928_v30 = vpop.f32.mrb[18].mxu0 }
 0xe6b   : > { %v5930_v32 = vpop.f32.mrb[19].mxu0 }
 0xe6f   : > { %v2643_v37 = vpop.permute.xlu0 %2642 }
 0xe70   : > { %v2645_v47 = vadd.f32 %v2643_v37, %v5610_v54 }
 0xe72   : > { %2647 = vrot.lane.b32.xlu1 %v2645_v47, %s4962_s22 }
 0xee4   : > { %v2648_v7 = vpop.permute.xlu1 %2647 }
 0xee5   : > { %v2650_v55 = vsel %vm672_vm2, %v2648_v7, 0.0 }
 0xee6   : > { %2651 = vadd.xlane.f32.xlu1 %v2650_v55 }
 0xef7   : > { %2672 = vrot.lane.b32.xlu1 %v3766_v41, %s4962_s22 }
 0xf73   : > { %v2652_v29 = vpop.xlane.xlu1 %2651 }
 0xf74   : > { %v2653_v28 = vmul.f32 0.03125, %v2652_v29 }
 0xf76   : > { %v2654_v50 = vsub.f32 %v2645_v47, %v2653_v28 }
 0xf77   : > { %v2673_v10 = vpop.permute.xlu1 %2672 }
 0xf78   : > { %v2655_v52 = vmul.f32 %v2654_v50, %v2654_v50 }
 0xf7a   : > { %2657 = vrot.lane.b32.xlu0 %v2655_v52, %s4962_s22 }
 0xfec   : > { %v2658_v53 = vpop.permute.xlu0 %2657 }
 0xfed   : > { %v2660_v54 = vsel %vm672_vm2, %v2658_v53, 0.0 }
 0xfee   : > { %2661 = vadd.xlane.f32.xlu0 %v2660_v54 }
0x1004   : > { %2681 = vrot.lane.b32.xlu0 %v3767_v56, %s4962_s22 }
0x107b   : > { %v2662_v49 = vpop.xlane.xlu0 %2661 }
0x107c   : > { %v2663_v8 = vmul.f32 0.03125, %v2662_v49 }
0x107e   : > { %v2664_v4 = vadd.f32 1e-05, %v2663_v8 }
0x107f   : > { %v2682_v63 = vpop.permute.xlu0 %2681 }
0x1080   : > { %4775 = vrsqrt.f32 %v2664_v4 }
0x108a   : > { %v4776_v5 = vpop.eup %4775 }
0x108b   : > { %v2666_v11 = vmul.f32 %v4776_v5, %v2654_v50 }
0x108d   : > { %v2675_v12 = vmul.f32 %v2673_v10, %v2666_v11 }
0x108f   : > { %v2684_v31 = vadd.f32 %v2682_v63, %v2675_v12 }
0x1091   : > { %2686 = vrot.lane.b32.xlu1 %v2684_v31, %s4962_s22 }
0x1103   : > { %v2687_v33 = vpop.permute.xlu1 %2686 }
0x1104   : > { %v5961_v13 = vadd.f32 %v2687_v33, %v5250_v0 }
0x1106   : > { %v2690_v19 = vmax.f32 %v5961_v13, 0.0 }
0x1108   : > { %4316 = vmatmul.mubr.msk.f32.vlgmr.msra.gmra.mrb[18].mxu1 %vm672_vm2, %v2690_v19 }
0x1109   : > { %4346 = vmatprep.mubr.msk.f32.mxu1 %vm4958_vm0, %v4959_v6 }
0x11db   : > { %v5969_v14 = vpop.f32.mrb[18].mxu1 }
0x11dc   : > { %2777 = vrot.lane.b32.xlu1 %v5969_v14, %s6388_s3  ;;  %v4317_v45 = vpop.f32.mrb[19].mxu1  ;;  %v2775_v40 = vrot.slane %v5969_v14, %v5617_v58  ;;  %v2785_v26 = vrot.slane %v5969_v14, %v2092_v59  ;;  %v2791_v18 = vrot.slane %v5969_v14, %v2098_v60  ;;  %v2797_v6 = vrot.slane %v5969_v14, %v2104_v61  ;;  %s6256_s3 = scalar_lea.vmem [#allocation6], %s3736_s1 }
0x11dd   : > { %v2803_v37 = vrot.slane %v5969_v14, %v2110_v62  ;;  %v2809_v58 = vrot.slane %v5969_v14, %v2116_v34  ;;  %v2815_v59 = vrot.slane %v5969_v14, %v2122_v36  ;;  %v2821_v60 = vrot.slane %v5969_v14, %v2128_v39 }
0x124e   : > { %v2778_v21 = vpop.permute.xlu1 %2777 }
0x124f   : > { %v2780_v47 = vadd.f32 %v2778_v21, %v2775_v40  ;;  %v2786_v7 = vadd.f32 %v2785_v26, %v2778_v21  ;;  %v2792_v61 = vadd.f32 %v2791_v18, %v2778_v21  ;;  %v2798_v55 = vadd.f32 %v2797_v6, %v2778_v21 }
0x1250   : > { %v2804_v41 = vadd.f32 %v2803_v37, %v2778_v21  ;;  %v2810_v29 = vadd.f32 %v2809_v58, %v2778_v21  ;;  %v2816_v28 = vadd.f32 %v2815_v59, %v2778_v21  ;;  %v2822_v62 = vadd.f32 %v2821_v60, %v2778_v21 }
0x1251   : > { %2781 = vst.msk [vmem:[#allocation2] sm:$0xff] %vm672_vm2, %v2780_v47  ;;  %2787 = vst.msk [vmem:[#allocation2 + $0x8] sm:$0xff] %vm672_vm2, %v2786_v7 }
0x1252   : > { %2793 = vst.msk [vmem:[#allocation2 + $0x10] sm:$0xff] %vm672_vm2, %v2792_v61  ;;  %2799 = vst.msk [vmem:[#allocation2 + $0x18] sm:$0xff] %vm672_vm2, %v2798_v55 }
0x1253   : > { %2805 = vst.msk [vmem:[#allocation2 + $0x20] sm:$0xff] %vm672_vm2, %v2804_v41  ;;  %2811 = vst.msk [vmem:[#allocation2 + $0x28] sm:$0xff] %vm672_vm2, %v2810_v29 }
0x1254   : > { %2817 = vst.msk [vmem:[#allocation2 + $0x30] sm:$0xff] %vm672_vm2, %v2816_v28  ;;  %2823 = vst.msk [vmem:[#allocation2 + $0x38] sm:$0xff] %vm672_vm2, %v2822_v62 }
0x1258   : > { %v2825_v57 = vld [vmem:[#allocation2 + $0x8] sm:$0xff]  ;;  %v2824_v34 = vld [vmem:[#allocation2] sm:$0xff] }
0x1259   : > { %v2826_v36 = vld [vmem:[#allocation2 + $0x10] sm:$0xff]  ;;  %v2966_v39 = vadd.f32 %v5916_v22, %v2825_v57  ;;  %v2965_v50 = vadd.f32 %v5918_v46, %v2824_v34  ;;  %v2827_v1 = vld [vmem:[#allocation2 + $0x18] sm:$0xff] }
0x125a   : > { %v2828_v52 = vld [vmem:[#allocation2 + $0x20] sm:$0xff]  ;;  %v2967_v25 = vadd.f32 %v5922_v43, %v2826_v36  ;;  %v2968_v46 = vadd.f32 %v5920_v23, %v2827_v1  ;;  %v2829_v15 = vld [vmem:[#allocation2 + $0x28] sm:$0xff] }
0x125b   : > { %v2976_v53 = vsel %vm672_vm2, %v2966_v39, 0.0  ;;  %v2973_v54 = vsel %vm672_vm2, %v2965_v50, 0.0  ;;  %v2969_v56 = vadd.f32 %v5926_v24, %v2828_v52  ;;  %v2830_v16 = vld [vmem:[#allocation2 + $0x30] sm:$0xff]  ;;  %v2970_v43 = vadd.f32 %v5924_v20, %v2829_v15  ;;  %v2831_v8 = vld [vmem:[#allocation2 + $0x38] sm:$0xff] }
0x125c   : > { %2977 = vadd.xlane.f32.xlu1 %v2976_v53  ;;  %2974 = vadd.xlane.f32.xlu0 %v2973_v54  ;;  %v2979_v2 = vsel %vm672_vm2, %v2967_v25, 0.0  ;;  %v2971_v22 = vadd.f32 %v5930_v32, %v2830_v16  ;;  %v2982_v24 = vsel %vm672_vm2, %v2968_v46, 0.0  ;;  %v2972_v5 = vadd.f32 %v5928_v30, %v2831_v8 }
0x125d   : > { %v2985_v48 = vsel %vm672_vm2, %v2969_v56, 0.0  ;;  %v2988_v4 = vsel %vm672_vm2, %v2970_v43, 0.0 }
0x125e   : > { %v2991_v49 = vsel %vm672_vm2, %v2971_v22, 0.0  ;;  %v2994_v32 = vsel %vm672_vm2, %v2972_v5, 0.0 }
0x1260   : > { %2986 = vadd.xlane.f32.xlu1 %v2985_v48  ;;  %2980 = vadd.xlane.f32.xlu0 %v2979_v2 }
0x1264   : > { %2992 = vadd.xlane.f32.xlu1 %v2991_v49  ;;  %2983 = vadd.xlane.f32.xlu0 %v2982_v24 }
0x1268   : > { %2989 = vadd.xlane.f32.xlu0 %v2988_v4 }
0x126c   : > { %2995 = vadd.xlane.f32.xlu0 %v2994_v32 }
0x12e9   : > { %v2978_v23 = vpop.xlane.xlu1 %2977  ;;  %v2975_v10 = vpop.xlane.xlu0 %2974 }
0x12ea   : > { %v2998_v11 = vmul.f32 0.03125, %v2978_v23  ;;  %v2997_v63 = vmul.f32 0.03125, %v2975_v10 }
0x12ec   : > { %v6020_v12 = vsub.f32 %v2966_v39, %v2998_v11  ;;  %v6022_v31 = vsub.f32 %v2965_v50, %v2997_v63 }
0x12ed   : > { %v2987_v20 = vpop.xlane.xlu1 %2986  ;;  %v2981_v33 = vpop.xlane.xlu0 %2980 }
0x12ee   : > { %v3001_v45 = vmul.f32 0.03125, %v2987_v20  ;;  %v2999_v40 = vmul.f32 0.03125, %v2981_v33  ;;  %v3014_v26 = vmul.f32 %v6020_v12, %v6020_v12  ;;  %v3013_v30 = vmul.f32 %v6022_v31, %v6022_v31 }
0x12f0   : > { %v6028_v18 = vsub.f32 %v2969_v56, %v3001_v45  ;;  %v6030_v6 = vsub.f32 %v2967_v25, %v2999_v40  ;;  %v3024_v21 = vsel %vm672_vm2, %v3014_v26, 0.0  ;;  %v3021_v37 = vsel %vm672_vm2, %v3013_v30, 0.0  ;;  %v3777_v30 = vld [vmem:[%s6353_s15 + $0xe] ss:$0 sm:$0xff] }
0x12f1   : > { %v2993_v58 = vpop.xlane.xlu1 %2992  ;;  %3025 = vadd.xlane.f32.xlu0 %v3024_v21  ;;  %3022 = vadd.xlane.f32.xlu1 %v3021_v37  ;;  %v2984_v59 = vpop.xlane.xlu0 %2983 }
0x12f2   : > { %v3003_v60 = vmul.f32 0.03125, %v2993_v58  ;;  %v3000_v47 = vmul.f32 0.03125, %v2984_v59  ;;  %v3015_v7 = vmul.f32 %v6030_v6, %v6030_v6  ;;  %v3017_v29 = vmul.f32 %v6028_v18, %v6028_v18 }
0x12f4   : > { %v6036_v61 = vsub.f32 %v2971_v22, %v3003_v60  ;;  %v6038_v55 = vsub.f32 %v2968_v46, %v3000_v47  ;;  %v3027_v41 = vsel %vm672_vm2, %v3015_v7, 0.0  ;;  %v3033_v36 = vsel %vm672_vm2, %v3017_v29, 0.0  ;;  %v3778_v47 = vld [vmem:[%s6353_s15 + $0xf] ss:$0 sm:$0xff] }
0x12f5   : > { %3028 = vadd.xlane.f32.xlu1 %v3027_v41  ;;  %v2990_v28 = vpop.xlane.xlu0 %2989 }
0x12f6   : > { %v3002_v62 = vmul.f32 0.03125, %v2990_v28  ;;  %v3016_v57 = vmul.f32 %v6038_v55, %v6038_v55  ;;  %v3019_v50 = vmul.f32 %v6036_v61, %v6036_v61 }
0x12f8   : > { %v6045_v34 = vsub.f32 %v2970_v43, %v3002_v62  ;;  %v3030_v39 = vsel %vm672_vm2, %v3016_v57, 0.0  ;;  %v3039_v25 = vsel %vm672_vm2, %v3019_v50, 0.0 }
0x12f9   : > { %3034 = vadd.xlane.f32.xlu1 %v3033_v36  ;;  %3031 = vadd.xlane.f32.xlu0 %v3030_v39  ;;  %v2996_v52 = vpop.xlane.xlu0 %2995 }
0x12fa   : > { %v3004_v53 = vmul.f32 0.03125, %v2996_v52  ;;  %v3018_v54 = vmul.f32 %v6045_v34, %v6045_v34 }
0x12fc   : > { %v6053_v56 = vsub.f32 %v2972_v5, %v3004_v53  ;;  %v3036_v16 = vsel %vm672_vm2, %v3018_v54, 0.0 }
0x12fd   : > { %3040 = vadd.xlane.f32.xlu1 %v3039_v25  ;;  %3037 = vadd.xlane.f32.xlu0 %v3036_v16 }
0x12fe   : > { %v3020_v1 = vmul.f32 %v6053_v56, %v6053_v56 }
0x1300   : > { %v3042_v48 = vsel %vm672_vm2, %v3020_v1, 0.0 }
0x1301   : > { %3043 = vadd.xlane.f32.xlu0 %v3042_v48 }
0x130e   : > { %3193 = vrot.lane.b32.xlu1 %v5969_v14, %s6389_s21  ;;  %s3641_s21 = sshll.u32 %s6256_s3, 4  ;;  %s6273_s21 = int_to_ptr.vmem [resolvable:$true] %s3641_s21 }
0x137e   : > { %v3023_v2 = vpop.xlane.xlu1 %3022  ;;  %v3026_v22 = vpop.xlane.xlu0 %3025 }
0x137f   : > { %v3045_v46 = vmul.f32 0.03125, %v3023_v2  ;;  %v3046_v15 = vmul.f32 0.03125, %v3026_v22 }
0x1381   : > { %v3053_v49 = vadd.f32 1e-05, %v3045_v46  ;;  %v3054_v24 = vadd.f32 1e-05, %v3046_v15 }
0x1382   : > { %v3029_v43 = vpop.xlane.xlu1 %3028 }
0x1383   : > { %4777 = vrsqrt.f32 %v3053_v49  ;;  %v3047_v8 = vmul.f32 0.03125, %v3029_v43 }
0x1384   : > { %4779 = vrsqrt.f32 %v3054_v24 }
0x1385   : > { %v3055_v4 = vadd.f32 1e-05, %v3047_v8 }
0x1386   : > { %v3035_v5 = vpop.xlane.xlu1 %3034  ;;  %v3032_v32 = vpop.xlane.xlu0 %3031 }
0x1387   : > { %4781 = vrsqrt.f32 %v3055_v4  ;;  %v3049_v23 = vmul.f32 0.03125, %v3035_v5  ;;  %v3048_v10 = vmul.f32 0.03125, %v3032_v32 }
0x1389   : > { %v3057_v11 = vadd.f32 1e-05, %v3049_v23  ;;  %v3056_v63 = vadd.f32 1e-05, %v3048_v10 }
0x138a   : > { %v3041_v20 = vpop.xlane.xlu1 %3040  ;;  %v3038_v33 = vpop.xlane.xlu0 %3037 }
0x138b   : > { %4783 = vrsqrt.f32 %v3057_v11  ;;  %v3051_v45 = vmul.f32 0.03125, %v3041_v20  ;;  %v3050_v40 = vmul.f32 0.03125, %v3038_v33 }
0x138c   : > { %4785 = vrsqrt.f32 %v3056_v63 }
0x138d   : > { %v4778_v26 = vpop.eup %4777  ;;  %v3059_v21 = vadd.f32 1e-05, %v3051_v45  ;;  %v3058_v37 = vadd.f32 1e-05, %v3050_v40 }
0x138e   : > { %v4780_v58 = vpop.eup %4779  ;;  %v3069_v59 = vmul.f32 %v4778_v26, %v6022_v31  ;;  %v3044_v60 = vpop.xlane.xlu0 %3043 }
0x138f   : > { %v3070_v7 = vmul.f32 %v4780_v58, %v6020_v12  ;;  %4787 = vrsqrt.f32 %v3059_v21  ;;  %v3052_v41 = vmul.f32 0.03125, %v3044_v60 }
0x1390   : > { %v3081_v29 = vmul.f32 %v3777_v30, %v3069_v59  ;;  %4789 = vrsqrt.f32 %v3058_v37 }
0x1391   : > { %v4782_v28 = vpop.eup %4781  ;;  %v3082_v62 = vmul.f32 %v3777_v30, %v3070_v7  ;;  %v3060_v57 = vadd.f32 1e-05, %v3052_v41 }
0x1392   : > { %v3093_v36 = vadd.f32 %v3778_v47, %v3081_v29  ;;  %v3071_v39 = vmul.f32 %v4782_v28, %v6030_v6 }
0x1393   : > { %v3094_v50 = vadd.f32 %v3778_v47, %v3082_v62  ;;  %4791 = vrsqrt.f32 %v3060_v57 }
0x1394   : > { %v3101_v31 = vmax.f32 %v3093_v36, 0.0  ;;  %v3083_v52 = vmul.f32 %v3777_v30, %v3071_v39 }
0x1395   : > { %v4784_v53 = vpop.eup %4783  ;;  %v3102_v54 = vmax.f32 %v3094_v50, 0.0 }
0x1396   : > { %v4786_v25 = vpop.eup %4785  ;;  %v3109_v16 = vadd.f32 %v3101_v31, %v5789_v17  ;;  %v3095_v12 = vadd.f32 %v3778_v47, %v3083_v52  ;;  %v3073_v1 = vmul.f32 %v4784_v53, %v6028_v18 }
0x1397   : > { %v3110_v48 = vadd.f32 %v3102_v54, %v5783_v9  ;;  %v3072_v2 = vmul.f32 %v4786_v25, %v6038_v55 }
0x1398   : > { %v3117_v22 = vsub.f32 0.0, %v3109_v16  ;;  %v3103_v46 = vmax.f32 %v3095_v12, 0.0  ;;  %v3085_v15 = vmul.f32 %v3777_v30, %v3073_v1 }
0x1399   : > { %v4788_v6 = vpop.eup %4787  ;;  %v3118_v49 = vsub.f32 0.0, %v3110_v48  ;;  %v3084_v24 = vmul.f32 %v3777_v30, %v3072_v2 }
0x139a   : > { %v4790_v43 = vpop.eup %4789  ;;  %v3125_v8 = vmul.f32 1.442695, %v3117_v22  ;;  %v3111_v4 = vadd.f32 %v3103_v46, %v5807_v38  ;;  %v3097_v5 = vadd.f32 %v3778_v47, %v3085_v15  ;;  %v3075_v17 = vmul.f32 %v4788_v6, %v6036_v61 }
0x139b   : > { %v3127_v32 = vmul.f32 1.442695, %v3118_v49  ;;  %v3096_v23 = vadd.f32 %v3778_v47, %v3084_v24  ;;  %v3074_v18 = vmul.f32 %v4790_v43, %v6045_v34 }
0x139c   : > { %4793 = vpow2.f32 %v3125_v8  ;;  %v3119_v9 = vsub.f32 0.0, %v3111_v4  ;;  %v3105_v55 = vmax.f32 %v3097_v5, 0.0  ;;  %v3087_v10 = vmul.f32 %v3777_v30, %v3075_v17 }
0x139d   : > { %v4792_v11 = vpop.eup %4791  ;;  %4795 = vpow2.f32 %v3127_v32  ;;  %v3104_v63 = vmax.f32 %v3096_v23, 0.0  ;;  %v3086_v20 = vmul.f32 %v3777_v30, %v3074_v18 }
0x139e   : > { %v3129_v33 = vmul.f32 1.442695, %v3119_v9  ;;  %v3113_v45 = vadd.f32 %v3105_v55, %v5826_v51  ;;  %v3099_v40 = vadd.f32 %v3778_v47, %v3087_v10  ;;  %v3076_v38 = vmul.f32 %v4792_v11, %v6053_v56 }
0x139f   : > { %v3112_v61 = vadd.f32 %v3104_v63, %v5801_v27  ;;  %v3098_v26 = vadd.f32 %v3778_v47, %v3086_v20 }
0x13a0   : > { %4797 = vpow2.f32 %v3129_v33  ;;  %v3121_v21 = vsub.f32 0.0, %v3113_v45  ;;  %v3107_v34 = vmax.f32 %v3099_v40, 0.0  ;;  %v3088_v37 = vmul.f32 %v3777_v30, %v3076_v38 }
0x13a1   : > { %v3120_v58 = vsub.f32 0.0, %v3112_v61  ;;  %v3106_v59 = vmax.f32 %v3098_v26, 0.0 }
0x13a2   : > { %v3133_v60 = vmul.f32 1.442695, %v3121_v21  ;;  %v3115_v7 = vadd.f32 %v3107_v34, %v5836_v35  ;;  %v3100_v41 = vadd.f32 %v3778_v47, %v3088_v37 }
0x13a3   : > { %v3131_v29 = vmul.f32 1.442695, %v3120_v58  ;;  %v3114_v28 = vadd.f32 %v3106_v59, %v5819_v42 }
0x13a4   : > { %4799 = vpow2.f32 %v3133_v60  ;;  %v3123_v51 = vsub.f32 0.0, %v3115_v7  ;;  %v3108_v62 = vmax.f32 %v3100_v41, 0.0 }
0x13a5   : > { %4801 = vpow2.f32 %v3131_v29  ;;  %v3122_v56 = vsub.f32 0.0, %v3114_v28 }
0x13a6   : > { %v4794_v27 = vpop.eup %4793  ;;  %v3137_v57 = vmul.f32 1.442695, %v3123_v51  ;;  %v3116_v36 = vadd.f32 %v3108_v62, %v5839_v44 }
0x13a7   : > { %v4796_v39 = vpop.eup %4795  ;;  %v3141_v30 = vadd.f32 1.0, %v4794_v27  ;;  %v3135_v50 = vmul.f32 1.442695, %v3122_v56 }
0x13a8   : > { %v3142_v31 = vadd.f32 1.0, %v4796_v39  ;;  %4803 = vpow2.f32 %v3137_v57  ;;  %v3124_v52 = vsub.f32 0.0, %v3116_v36 }
0x13a9   : > { %4805 = vrcp.f32 %v3141_v30 }
0x13aa   : > { %v4798_v35 = vpop.eup %4797  ;;  %4807 = vrcp.f32 %v3142_v31  ;;  %v3139_v47 = vmul.f32 1.442695, %v3124_v52 }
0x13ab   : > { %v3143_v42 = vadd.f32 1.0, %v4798_v35  ;;  %4809 = vpow2.f32 %v3135_v50 }
0x13ac   : > { %4811 = vpow2.f32 %v3139_v47 }
0x13ad   : > { %4813 = vrcp.f32 %v3143_v42 }
0x13ae   : > { %v4800_v53 = vpop.eup %4799 }
0x13af   : > { %v4802_v54 = vpop.eup %4801  ;;  %v3145_v25 = vadd.f32 1.0, %v4800_v53 }
0x13b0   : > { %v3144_v16 = vadd.f32 1.0, %v4802_v54 }
0x13b1   : > { %4815 = vrcp.f32 %v3145_v25 }
0x13b2   : > { %v4804_v44 = vpop.eup %4803  ;;  %4817 = vrcp.f32 %v3144_v16 }
0x13b3   : > { %v4806_v12 = vpop.eup %4805  ;;  %v3147_v1 = vadd.f32 1.0, %v4804_v44 }
0x13b4   : > { %v4808_v48 = vpop.eup %4807  ;;  %v3165_v2 = vmul.f32 1.442695, %v4806_v12 }
0x13b5   : > { %v4810_v22 = vpop.eup %4809  ;;  %v3167_v46 = vmul.f32 1.442695, %v4808_v48  ;;  %4819 = vrcp.f32 %v3147_v1 }
0x13b6   : > { %v4812_v15 = vpop.eup %4811  ;;  %4821 = vpow2.f32 %v3165_v2  ;;  %v3146_v6 = vadd.f32 1.0, %v4810_v22 }
0x13b7   : > { %v4814_v49 = vpop.eup %4813  ;;  %4823 = vpow2.f32 %v3167_v46  ;;  %v3148_v24 = vadd.f32 1.0, %v4812_v15 }
0x13b8   : > { %v3169_v43 = vmul.f32 1.442695, %v4814_v49  ;;  %4825 = vrcp.f32 %v3146_v6 }
0x13b9   : > { %4827 = vrcp.f32 %v3148_v24 }
0x13ba   : > { %4829 = vpow2.f32 %v3169_v43 }
0x13bb   : > { %v4816_v8 = vpop.eup %4815 }
0x13bc   : > { %v4818_v4 = vpop.eup %4817  ;;  %v3173_v5 = vmul.f32 1.442695, %v4816_v8 }
0x13bd   : > { %v3171_v17 = vmul.f32 1.442695, %v4818_v4 }
0x13be   : > { %4831 = vpow2.f32 %v3173_v5 }
0x13bf   : > { %v4820_v32 = vpop.eup %4819  ;;  %4833 = vpow2.f32 %v3171_v17 }
0x13c0   : > { %v6084_v23 = vpop.eup %4821  ;;  %v3177_v18 = vmul.f32 1.442695, %v4820_v32 }
0x13c1   : > { %v6086_v9 = vpop.eup %4823  ;;  %v3181_v55 = vsel %vm672_vm2, %v6084_v23, 0.0 }
0x13c2   : > { %v4826_v10 = vpop.eup %4825  ;;  %4835 = vpow2.f32 %v3177_v18  ;;  %v3182_v11 = vrot.slane %v3181_v55, 4  ;;  %v3205_v63 = vsel %vm672_vm2, %v6086_v9, 0.0 }
0x13c3   : > { %v4828_v20 = vpop.eup %4827  ;;  %v3175_v33 = vmul.f32 1.442695, %v4826_v10  ;;  %v3206_v45 = vrot.slane %v3205_v63, 4 }
0x13c4   : > { %v6092_v40 = vpop.eup %4829  ;;  %v3183_v38 = vadd.f32 %v3182_v11, %v3181_v55  ;;  %v3179_v61 = vmul.f32 1.442695, %v4828_v20 }
0x13c5   : > { %4837 = vpow2.f32 %v3175_v33  ;;  %v3226_v26 = vsel %vm672_vm2, %v6092_v40, 0.0  ;;  %v3207_v21 = vadd.f32 %v3206_v45, %v3205_v63 }
0x13c6   : > { %v3184_v34 = vrot.slane %v3183_v38, 2  ;;  %v3227_v37 = vrot.slane %v3226_v26, 4  ;;  %4839 = vpow2.f32 %v3179_v61 }
0x13c7   : > { %v3208_v58 = vrot.slane %v3207_v21, 2 }
0x13c8   : > { %v6096_v59 = vpop.eup %4831  ;;  %v3185_v60 = vadd.f32 %v3184_v34, %v3183_v38  ;;  %v3228_v7 = vadd.f32 %v3227_v37, %v3226_v26 }
0x13c9   : > { %v6098_v41 = vpop.eup %4833  ;;  %v3268_v29 = vsel %vm672_vm2, %v6096_v59, 0.0  ;;  %v3209_v28 = vadd.f32 %v3208_v58, %v3207_v21 }
0x13ca   : > { %v3186_v51 = vrot.slane %v3185_v60, 1  ;;  %v3229_v62 = vrot.slane %v3228_v7, 2  ;;  %v3269_v56 = vrot.slane %v3268_v29, 4  ;;  %v3247_v27 = vsel %vm672_vm2, %v6098_v41, 0.0 }
0x13cb   : > { %v3210_v57 = vrot.slane %v3209_v28, 1  ;;  %v3248_v36 = vrot.slane %v3247_v27, 4 }
0x13cc   : > { %v6104_v39 = vpop.eup %4835  ;;  %v3187_v30 = vadd.f32 %v3186_v51, %v3185_v60  ;;  %v3230_v50 = vadd.f32 %v3229_v62, %v3228_v7  ;;  %v3270_v31 = vadd.f32 %v3269_v56, %v3268_v29 }
0x13cd   : > { %v3310_v52 = vsel %vm672_vm2, %v6104_v39, 0.0  ;;  %v3211_v35 = vadd.f32 %v3210_v57, %v3209_v28  ;;  %v3249_v47 = vadd.f32 %v3248_v36, %v3247_v27  ;;  %v6117_v57 = vpop.permute.xlu1 %3193 }
0x13ce   : > { %4841 = vrcp.f32 %v3187_v30  ;;  %v3231_v42 = vrot.slane %v3230_v50, 1  ;;  %v3271_v53 = vrot.slane %v3270_v31, 2  ;;  %v3311_v54 = vrot.slane %v3310_v52, 4 }
0x13cf   : > { %v6108_v25 = vpop.eup %4837  ;;  %4843 = vrcp.f32 %v3211_v35  ;;  %v3250_v16 = vrot.slane %v3249_v47, 2 }
0x13d0   : > { %v6110_v44 = vpop.eup %4839  ;;  %v3232_v12 = vadd.f32 %v3231_v42, %v3230_v50  ;;  %v3272_v1 = vadd.f32 %v3271_v53, %v3270_v31  ;;  %v3312_v48 = vadd.f32 %v3311_v54, %v3310_v52  ;;  %v3289_v2 = vsel %vm672_vm2, %v6108_v25, 0.0 }
0x13d1   : > { %v3251_v22 = vadd.f32 %v3250_v16, %v3249_v47  ;;  %v3290_v46 = vrot.slane %v3289_v2, 4  ;;  %v3331_v15 = vsel %vm672_vm2, %v6110_v44, 0.0 }
0x13d2   : > { %4845 = vrcp.f32 %v3232_v12  ;;  %v3273_v6 = vrot.slane %v3272_v1, 1  ;;  %v3313_v49 = vrot.slane %v3312_v48, 2  ;;  %v3332_v24 = vrot.slane %v3331_v15, 4 }
0x13d3   : > { %v3252_v43 = vrot.slane %v3251_v22, 1  ;;  %v3291_v8 = vadd.f32 %v3290_v46, %v3289_v2 }
0x13d4   : > { %v3274_v4 = vadd.f32 %v3273_v6, %v3272_v1  ;;  %v3314_v5 = vadd.f32 %v3313_v49, %v3312_v48  ;;  %v3333_v17 = vadd.f32 %v3332_v24, %v3331_v15 }
0x13d5   : > { %v3253_v32 = vadd.f32 %v3252_v43, %v3251_v22  ;;  %v3292_v18 = vrot.slane %v3291_v8, 2 }
0x13d6   : > { %4847 = vrcp.f32 %v3274_v4  ;;  %v3315_v55 = vrot.slane %v3314_v5, 1  ;;  %v3334_v10 = vrot.slane %v3333_v17, 2 }
0x13d7   : > { %4849 = vrcp.f32 %v3253_v32  ;;  %v3293_v11 = vadd.f32 %v3292_v18, %v3291_v8 }
0x13d8   : > { %v4842_v63 = vpop.eup %4841  ;;  %v3316_v20 = vadd.f32 %v3315_v55, %v3314_v5  ;;  %v3335_v33 = vadd.f32 %v3334_v10, %v3333_v17 }
0x13d9   : > { %v4844_v45 = vpop.eup %4843  ;;  %v3189_v38 = vmul.f32 %v4842_v63, %v3187_v30  ;;  %v3294_v61 = vrot.slane %v3293_v11, 1 }
0x13da   : > { %4851 = vrcp.f32 %v3316_v20  ;;  %v3213_v26 = vmul.f32 %v4844_v45, %v3211_v35  ;;  %v3336_v21 = vrot.slane %v3335_v33, 1 }
0x13db   : > { %v3190_v34 = vsub.f32 2.0, %v3189_v38  ;;  %v3295_v37 = vadd.f32 %v3294_v61, %v3293_v11 }
0x13dc   : > { %v4846_v58 = vpop.eup %4845  ;;  %v3214_v60 = vsub.f32 2.0, %v3213_v26  ;;  %v3337_v7 = vadd.f32 %v3336_v21, %v3335_v33 }
0x13dd   : > { %v3191_v29 = vmul.f32 %v4842_v63, %v3190_v34  ;;  %v3234_v28 = vmul.f32 %v4846_v58, %v3232_v12  ;;  %4853 = vrcp.f32 %v3295_v37 }
0x13de   : > { %v3215_v51 = vmul.f32 %v4844_v45, %v3214_v60  ;;  %4855 = vrcp.f32 %v3337_v7 }
0x13df   : > { %v3192_v62 = vmul.f32 %v6084_v23, %v3191_v29  ;;  %v3235_v56 = vsub.f32 2.0, %v3234_v28 }
0x13e0   : > { %v4848_v27 = vpop.eup %4847  ;;  %v3216_v36 = vmul.f32 %v6086_v9, %v3215_v51 }
0x13e1   : > { %v4850_v30 = vpop.eup %4849  ;;  %v3236_v50 = vmul.f32 %v4846_v58, %v3235_v56  ;;  %v3276_v31 = vmul.f32 %v4848_v27, %v3274_v4  ;;  %v3196_v52 = vmul.f32 %v6117_v57, %v3192_v62 }
0x13e2   : > { %v3217_v35 = vmul.f32 %v3216_v36, %v6117_v57  ;;  %v3255_v47 = vmul.f32 %v4850_v30, %v3253_v32 }
0x13e3   : > { %v3237_v42 = vmul.f32 %v6092_v40, %v3236_v50  ;;  %v3277_v53 = vsub.f32 2.0, %v3276_v31  ;;  %v3197_v54 = vsel %vm672_vm2, %v3196_v52, 0.0 }
0x13e4   : > { %v4852_v23 = vpop.eup %4851  ;;  %v3198_v16 = vrot.slane %v3197_v54, 4  ;;  %v3218_v12 = vsel %vm672_vm2, %v3217_v35, 0.0  ;;  %v3256_v1 = vsub.f32 2.0, %v3255_v47 }
0x13e5   : > { %v3278_v48 = vmul.f32 %v4848_v27, %v3277_v53  ;;  %v3318_v9 = vmul.f32 %v4852_v23, %v3316_v20  ;;  %v3219_v2 = vrot.slane %v3218_v12, 4  ;;  %v3238_v22 = vmul.f32 %v3237_v42, %v6117_v57 }
0x13e6   : > { %v3199_v46 = vadd.f32 %v3198_v16, %v3197_v54  ;;  %v3257_v15 = vmul.f32 %v4850_v30, %v3256_v1 }
0x13e7   : > { %v4854_v6 = vpop.eup %4853  ;;  %v3279_v49 = vmul.f32 %v6096_v59, %v3278_v48  ;;  %v3319_v24 = vsub.f32 2.0, %v3318_v9  ;;  %v3220_v40 = vadd.f32 %v3219_v2, %v3218_v12  ;;  %v3239_v43 = vsel %vm672_vm2, %v3238_v22, 0.0 }
0x13e8   : > { %v4856_v8 = vpop.eup %4855  ;;  %v3200_v4 = vrot.slane %v3199_v46, 2  ;;  %v3240_v5 = vrot.slane %v3239_v43, 4  ;;  %v3258_v17 = vmul.f32 %v6098_v41, %v3257_v15  ;;  %v3297_v32 = vmul.f32 %v4854_v6, %v3295_v37 }
0x13e9   : > { %v3320_v18 = vmul.f32 %v4852_v23, %v3319_v24  ;;  %v3221_v55 = vrot.slane %v3220_v40, 2  ;;  %v3280_v10 = vmul.f32 %v3279_v49, %v6117_v57  ;;  %v3339_v11 = vmul.f32 %v4856_v8, %v3337_v7 }
0x13ea   : > { %v3201_v63 = vadd.f32 %v3200_v4, %v3199_v46  ;;  %v3241_v20 = vadd.f32 %v3240_v5, %v3239_v43  ;;  %v3259_v33 = vmul.f32 %v3258_v17, %v6117_v57  ;;  %v3298_v59 = vsub.f32 2.0, %v3297_v32 }
0x13eb   : > { %v3321_v45 = vmul.f32 %v6104_v39, %v3320_v18  ;;  %v3222_v38 = vadd.f32 %v3221_v55, %v3220_v40  ;;  %v3281_v61 = vsel %vm672_vm2, %v3280_v10, 0.0  ;;  %v3340_v26 = vsub.f32 2.0, %v3339_v11 }
0x13ec   : > { %v3202_v21 = vrot.slane %v3201_v63, 1  ;;  %v3242_v34 = vrot.slane %v3241_v20, 2  ;;  %v3260_v41 = vsel %vm672_vm2, %v3259_v33, 0.0  ;;  %v3282_v37 = vrot.slane %v3281_v61, 4 }
0x13ed   : > { %v3223_v58 = vrot.slane %v3222_v38, 1  ;;  %v3261_v60 = vrot.slane %v3260_v41, 4  ;;  %v3299_v29 = vmul.f32 %v4854_v6, %v3298_v59  ;;  %v3322_v7 = vmul.f32 %v3321_v45, %v6117_v57  ;;  %v3779_v45 = vld [vmem:[%s6353_s15 + $0x10] ss:$0 sm:$0xff] }
0x13ee   : > { %v3203_v28 = vadd.f32 %v3202_v21, %v3201_v63  ;;  %v3243_v51 = vadd.f32 %v3242_v34, %v3241_v20  ;;  %v3283_v62 = vadd.f32 %v3282_v37, %v3281_v61  ;;  %v3341_v56 = vmul.f32 %v4856_v8, %v3340_v26  ;;  %v3405_v37 = vld [vmem:[%s6351_s13] sm:$0xff] }
0x13ef   : > { %v3224_v27 = vadd.f32 %v3223_v58, %v3222_v38  ;;  %v3262_v39 = vadd.f32 %v3261_v60, %v3260_v41  ;;  %v3300_v36 = vmul.f32 %v6108_v25, %v3299_v29  ;;  %v3323_v30 = vsel %vm672_vm2, %v3322_v7, 0.0  ;;  %v3780_v41 = vld [vmem:[%s6353_s15 + $0x11] ss:$0 sm:$0xff]  ;;  %v3406_v58 = vld [vmem:[%s6351_s13 + $0x8] sm:$0xff] }
0x13f0   : > { %3204 = vst.msk [vmem:[#allocation3] sm:$0x1] %vm1982_vm3, %v3203_v28  ;;  %v3244_v50 = vrot.slane %v3243_v51, 1  ;;  %v3284_v31 = vrot.slane %v3283_v62, 2  ;;  %v3324_v52 = vrot.slane %v3323_v30, 4  ;;  %v3342_v35 = vmul.f32 %v6110_v44, %v3341_v56 }
0x13f1   : > { %3225 = vst.msk [vmem:[#allocation3 + $0x1] sm:$0x1] %vm1982_vm3, %v3224_v27  ;;  %v3263_v47 = vrot.slane %v3262_v39, 2  ;;  %v3301_v42 = vmul.f32 %v3300_v36, %v6117_v57  ;;  %v4593_v60 = vpack.c.bf16 %v3406_v58, %v3405_v37  ;;  %v3488_v36 = vld [vmem:[%s6352_s14] sm:$0xff]  ;;  %v3784_v37 = vld [vmem:[%s6353_s15 + $0x13] ss:$0 sm:$0xff] }
0x13f2   : > { %v3245_v53 = vadd.f32 %v3244_v50, %v3243_v51  ;;  %v3285_v54 = vadd.f32 %v3284_v31, %v3283_v62  ;;  %v3325_v23 = vadd.f32 %v3324_v52, %v3323_v30  ;;  %v3343_v16 = vmul.f32 %v3342_v35, %v6117_v57  ;;  %v3407_v51 = vld [vmem:[%s6351_s13 + $0x10] sm:$0xff]  ;;  %v3408_v62 = vld [vmem:[%s6351_s13 + $0x18] sm:$0xff]  ;;  %v3489_v30 = vld [vmem:[%s6352_s14 + $0x8] sm:$0xff] }
0x13f3   : > { %v3264_v25 = vadd.f32 %v3263_v47, %v3262_v39  ;;  %v3302_v12 = vsel %vm672_vm2, %v3301_v42, 0.0  ;;  %4594 = vmatpush3.bf16.msra.mxu1 %v4593_v60  ;;  %v4596_v56 = vpack.c.bf16 %v3408_v62, %v3407_v51  ;;  %v3490_v50 = vld [vmem:[%s6352_s14 + $0x10] sm:$0xff]  ;;  %v4599_v52 = vpack.c.bf16 %v3489_v30, %v3488_v36  ;;  %v3491_v35 = vld [vmem:[%s6352_s14 + $0x18] sm:$0xff] }
0x13f4   : > { %3246 = vst.msk [vmem:[#allocation3 + $0x2] sm:$0x1] %vm1982_vm3, %v3245_v53  ;;  %v3286_v1 = vrot.slane %v3285_v54, 1  ;;  %v3303_v48 = vrot.slane %v3302_v12, 4  ;;  %v3326_v9 = vrot.slane %v3325_v23, 2  ;;  %v3344_v44 = vsel %vm672_vm2, %v3343_v16, 0.0  ;;  %4595 = vmatprep.subr.bf16.mxu1 %v4957_v3 }
0x13f5   : > { %v3265_v2 = vrot.slane %v3264_v25, 1  ;;  %v3345_v22 = vrot.slane %v3344_v44, 4  ;;  %4600 = vmatpush3.bf16.msra.mxu0 %v4599_v52  ;;  %v4602_v53 = vpack.c.bf16 %v3491_v35, %v3490_v50  ;;  %v3785_v60 = vld [vmem:[%s6353_s15 + $0x14] ss:$0 sm:$0xff] }
0x13f6   : > { %v3287_v46 = vadd.f32 %v3286_v1, %v3285_v54  ;;  %v3304_v15 = vadd.f32 %v3303_v48, %v3302_v12  ;;  %v3327_v6 = vadd.f32 %v3326_v9, %v3325_v23  ;;  %4601 = vmatprep.subr.bf16.mxu0 %v4957_v3  ;;  %v3492_v54 = vld [vmem:[%s6352_s14 + $0x20] sm:$0xff]  ;;  %v3493_v23 = vld [vmem:[%s6352_s14 + $0x28] sm:$0xff]  ;;  %v3494_v12 = vld [vmem:[%s6352_s14 + $0x30] sm:$0xff] }
0x13f7   : > { %v3266_v49 = vadd.f32 %v3265_v2, %v3264_v25  ;;  %v3346_v24 = vadd.f32 %v3345_v22, %v3344_v44  ;;  %4597 = vmatpush3.bf16.msra.mxu1 %v4596_v56  ;;  %v4605_v25 = vpack.c.bf16 %v3493_v23, %v3492_v54  ;;  %v3495_v1 = vld [vmem:[%s6352_s14 + $0x38] sm:$0xff]  ;;  %v3496_v9 = vld [vmem:[%s6352_s14 + $0x40] sm:$0xff]  ;;  %v3497_v44 = vld [vmem:[%s6352_s14 + $0x48] sm:$0xff] }
0x13f8   : > { %3288 = vst.msk [vmem:[#allocation3 + $0x4] sm:$0x1] %vm1982_vm3, %v3287_v46  ;;  %v3305_v57 = vrot.slane %v3304_v15, 2  ;;  %v3328_v40 = vrot.slane %v3327_v6, 1  ;;  %v4608_v48 = vpack.c.bf16 %v3495_v1, %v3494_v12  ;;  %v4611_v2 = vpack.c.bf16 %v3497_v44, %v3496_v9  ;;  %v3498_v22 = vld [vmem:[%s6352_s14 + $0x50] sm:$0xff]  ;;  %v3499_v46 = vld [vmem:[%s6352_s14 + $0x58] sm:$0xff] }
0x13f9   : > { %3267 = vst.msk [vmem:[#allocation3 + $0x3] sm:$0x1] %vm1982_vm3, %v3266_v49  ;;  %v3347_v43 = vrot.slane %v3346_v24, 2  ;;  %4603 = vmatpush3.bf16.msra.mxu0 %v4602_v53  ;;  %v3501_v49 = vld [vmem:[%s6352_s14 + $0x68] sm:$0xff] }
0x13fa   : > { %v3306_v8 = vadd.f32 %v3305_v57, %v3304_v15  ;;  %v3329_v4 = vadd.f32 %v3328_v40, %v3327_v6  ;;  %4604 = vmatprep.subr.bf16.mxu0 %v4957_v3  ;;  %v4614_v15 = vpack.c.bf16 %v3499_v46, %v3498_v22  ;;  %v3500_v6 = vld [vmem:[%s6352_s14 + $0x60] sm:$0xff] }
0x13fb   : > { %v3348_v5 = vadd.f32 %v3347_v43, %v3346_v24  ;;  %v4617_v24 = vpack.c.bf16 %v3501_v49, %v3500_v6 }
0x13fc   : > { %v3307_v17 = vrot.slane %v3306_v8, 1  ;;  %3330 = vst.msk [vmem:[#allocation3 + $0x6] sm:$0x1] %vm1982_vm3, %v3329_v4  ;;  %v3502_v4 = vld [vmem:[%s6352_s14 + $0x70] sm:$0xff] }
0x13fd   : > { %v3349_v32 = vrot.slane %v3348_v5, 1  ;;  %4606 = vmatpush3.bf16.msra.mxu0 %v4605_v25 }
0x13fe   : > { %v3308_v18 = vadd.f32 %v3307_v17, %v3306_v8  ;;  %4607 = vmatprep.subr.bf16.mxu0 %v4957_v3 }
0x13ff   : > { %v3350_v55 = vadd.f32 %v3349_v32, %v3348_v5  ;;  %v3503_v5 = vld [vmem:[%s6352_s14 + $0x78] sm:$0xff] }
0x1400   : > { %3309 = vst.msk [vmem:[#allocation3 + $0x5] sm:$0x1] %vm1982_vm3, %v3308_v18  ;;  %v4620_v17 = vpack.c.bf16 %v3503_v5, %v3502_v4 }
0x1401   : > { %3351 = vst.msk [vmem:[#allocation3 + $0x7] sm:$0x1] %vm1982_vm3, %v3350_v55  ;;  %4609 = vmatpush3.bf16.msra.mxu0 %v4608_v48 }
0x1402   : > { %4610 = vmatprep.subr.bf16.mxu0 %v4957_v3 }
0x1405   : > { %4612 = vmatpush3.bf16.msra.mxu0 %v4611_v2 }
0x1406   : > { %4613 = vmatprep.subr.bf16.mxu0 %v4957_v3 }
0x1408   : > { %v3352_v10 = vld [vmem:[#allocation3] sm:$0xff] }
0x1409   : > { %v3353_v11 = vmul.f32 0.125, %v3352_v10  ;;  %4615 = vmatpush3.bf16.msra.mxu0 %v4614_v15  ;;  %v3783_v10 = vld [vmem:[%s6353_s15 + $0x12] ss:$0 sm:$0xff] }
0x140a   : > { %4616 = vmatprep.subr.bf16.mxu0 %v4957_v3 }
0x140b   : > { %3355 = vrot.lane.b32.xlu0 %v3353_v11, %s4962_s22 }
0x140d   : > { %4618 = vmatpush3.bf16.msra.mxu0 %v4617_v24 }
0x140e   : > { %4619 = vmatprep.subr.bf16.mxu0 %v4957_v3  ;;  %v3781_v3 = vld [vmem:[%s6354_s16 + $0x4] ss:$0 sm:$0xff] }
0x1411   : > { %4621 = vmatpush3.bf16.msra.mxu0 %v4620_v17 }
0x147d   : > { %v3356_v63 = vpop.permute.xlu0 %3355 }
0x147e   : > { %v3358_v20 = vadd.f32 %v3356_v63, %v5969_v14 }
0x1480   : > { %3360 = vrot.lane.b32.xlu1 %v3358_v20, %s4962_s22 }
0x14f2   : > { %v3361_v33 = vpop.permute.xlu1 %3360 }
0x14f3   : > { %v3363_v59 = vsel %vm672_vm2, %v3361_v33, 0.0 }
0x14f4   : > { %3364 = vadd.xlane.f32.xlu1 %v3363_v59 }
0x1505   : > { %3385 = vrot.lane.b32.xlu1 %v3779_v45, %s4962_s22 }
0x1581   : > { %v3365_v38 = vpop.xlane.xlu1 %3364 }
0x1582   : > { %v3366_v61 = vmul.f32 0.03125, %v3365_v38 }
0x1584   : > { %v3367_v26 = vsub.f32 %v3358_v20, %v3366_v61 }
0x1585   : > { %v3386_v39 = vpop.permute.xlu1 %3385 }
0x1586   : > { %v3368_v21 = vmul.f32 %v3367_v26, %v3367_v26 }
0x1588   : > { %3370 = vrot.lane.b32.xlu0 %v3368_v21, %s4962_s22 }
0x15fa   : > { %v3371_v34 = vpop.permute.xlu0 %3370 }
0x15fb   : > { %v3373_v14 = vsel %vm672_vm2, %v3371_v34, 0.0 }
0x15fc   : > { %3374 = vadd.xlane.f32.xlu0 %v3373_v14 }
0x1612   : > { %3394 = vrot.lane.b32.xlu0 %v3780_v41, %s4962_s22 }
0x1689   : > { %v3375_v29 = vpop.xlane.xlu0 %3374 }
0x168a   : > { %v3376_v7 = vmul.f32 0.03125, %v3375_v29 }
0x168c   : > { %v3377_v28 = vadd.f32 1e-05, %v3376_v7 }
0x168d   : > { %v3395_v47 = vpop.permute.xlu0 %3394 }
0x168e   : > { %4857 = vrsqrt.f32 %v3377_v28 }
0x1698   : > { %v4858_v27 = vpop.eup %4857 }
0x1699   : > { %v3379_v31 = vmul.f32 %v4858_v27, %v3367_v26 }
0x169b   : > { %v3388_v42 = vmul.f32 %v3386_v39, %v3379_v31 }
0x169d   : > { %v3397_v16 = vadd.f32 %v3395_v47, %v3388_v42 }
0x169f   : > { %3399 = vrot.lane.b32.xlu1 %v3397_v16, %s4962_s22  ;;  %s3610_s22 = scalar_lea.sflag [#allocation5], %s6246_s23 }
0x1711   : > { %v3400_v57 = vpop.permute.xlu1 %3399 }
0x1712   : > { %v3402_v40 = vadd.f32 %v3400_v57, %v2690_v19 }
0x1714   : > { %v3403_v43 = vmax.f32 %v3402_v40, 0.0 }
0x1716   : > { %v3404_v8 = vadd.f32 %v3403_v43, %v5250_v0 }
0x1718   : > { %4347 = vmatmul.mubr.msk.f32.vlgmr.msra.gmra.mrb[20].mxu1 %vm672_vm2, %v3404_v8 }
0x17eb   : > { %v3483_v13 = vpop.f32.mrb[20].mxu1 }
0x17ec   : > { %v3484_v19 = vadd.f32 %v3781_v3, %v3483_v13  ;;  %v4348_v32 = vpop.f32.mrb[21].mxu1 }
0x17ee   : > { %v3487_v18 = vmax.f32 %v3484_v19, 0.0 }
0x17f0   : > { %4382 = vmatmul.mubr.f32.vlgmr.msra.gmra.mrb[20].mxu0 %v3487_v18 }
0x18c3   : > { %v3570_v55 = vpop.f32.mrb[20].mxu0 }
0x18c4   : > { %v3574_v11 = vadd.f32 %v3570_v55, %v3404_v8  ;;  %v4383_v63 = vpop.f32.mrb[21].mxu0 }
0x18c6   : > { %v3580_v20 = vadd.f32 %v3783_v10, %v3574_v11 }
0x18c8   : > { %v3583_v33 = vsel %vm672_vm2, %v3580_v20, 0.0 }
0x18c9   : > { %3584 = vadd.xlane.f32.xlu1 %v3583_v33 }
0x1956   : > { %v3585_v59 = vpop.xlane.xlu1 %3584 }
0x1957   : > { %v3586_v45 = vmul.f32 0.03125, %v3585_v59 }
0x1959   : > { %v3587_v38 = vsub.f32 %v3580_v20, %v3586_v45 }
0x195b   : > { %v3588_v61 = vmul.f32 %v3587_v38, %v3587_v38 }
0x195d   : > { %v3589_v26 = vsel %vm672_vm2, %v3588_v61, 0.0 }
0x195e   : > { %3590 = vadd.xlane.f32.xlu0 %v3589_v26 }
0x19eb   : > { %v3591_v21 = vpop.xlane.xlu0 %3590 }
0x19ec   : > { %v3592_v34 = vmul.f32 0.03125, %v3591_v21 }
0x19ee   : > { %v3593_v14 = vadd.f32 1e-05, %v3592_v34 }
0x19f0   : > { %4859 = vrsqrt.f32 %v3593_v14 }
0x19fa   : > { %v4860_v41 = vpop.eup %4859 }
0x19fb   : > { %v3595_v58 = vmul.f32 %v4860_v41, %v3587_v38 }
0x19fd   : > { %v3600_v29 = vmul.f32 %v3784_v37, %v3595_v58 }
0x19ff   : > { %v3605_v7 = vadd.f32 %v3785_v60, %v3600_v29 }
0x1a01   : > { %3606 = vst.msk [vmem:[%s570_s24] sm:$0xff] %vm672_vm2, %v3605_v7  ;;  %v3607_v28 = vsub.f32 %v5250_v0, %v3605_v7 }
0x1a02   : > { %4874 = shalt.err (!%p4871_p3)
}
0x1a03   : > { %s4875_s25 = scalar_lea.hbm %s6262_s19, 128  ;;  %s4879_s1 = scalar_lea.hbm %s6355_s17, 256 }
0x1a04   : > { %p4876_p4 = scmp.ne.s32.totalorder %s6262_s19, %s4875_s25  ;;  %p4880_p9 = scmp.lt.u32.totalorder %s6262_s19, %s6355_s17 }
0x1a05   : > { %p4881_p10 = scmp.lt.u32.totalorder %s4879_s1, %s4875_s25  ;;  %p4883_p12 = scmp.lt.u32.totalorder %s4875_s25, %s6262_s19 }
0x1a06   : > { %p4877_p7 = pnand %p4876_p4, %p5098_p5 }
0x1a07   : > { %p4882_p11 = por %p4881_p10, %p4880_p9 }
0x1a08   : > { %p4878_p8 = pneg %p4877_p7 }
0x1a09   : > { %p4884_p13 = por %p4883_p12, %p4882_p11 }
0x1a0b   : > { %p4885_p0 = pnand %p4884_p13, %p4878_p8 }
0x1a0d   : > { %4888 = shalt.err (!%p4885_p0)
}
0x1a0e   : > { %4637 = dma.vmem_to_hbm [thread:$0]  (%p5098_p5), %s6264_s29, 128, %s6262_s19, %s3610_s22   ;;  %3608 = vst.msk [vmem:[%s6256_s3] sm:$0xff] %vm672_vm2, %v3607_v28 }
0x1a0f   : > { %s3615_s6 = scalar_lea.sflag [#allocation7], %s6246_s23  ;;  %s4889_s4 = scalar_lea.vmem %s6273_s21, 128 }
0x1a10   : > { %p4890_p1 = scmp.ne.s32.totalorder %s6273_s21, %s4889_s4  ;;  %s4964_s25 = smov [#allocation6]  }
0x1a11   : > { %s4893_s24 = sshll.u32 %s4964_s25, 4  ;;  %s4894_s24 = int_to_ptr.vmem [resolvable:$false] %s4893_s24 }
0x1a12   : > { %p4891_p2 = pnand %p4890_p1, %p5098_p5  ;;  %s4895_s0 = scalar_lea.vmem %s4894_s24, 256 }
0x1a13   : > { %p4896_p4 = scmp.lt.s32.totalorder %s6273_s21, %s4894_s24  ;;  %p4897_p7 = scmp.lt.s32.totalorder %s4895_s0, %s4889_s4 }
0x1a14   : > { %p4892_p3 = pneg %p4891_p2 }
0x1a15   : > { %p4898_p8 = por %p4897_p7, %p4896_p4 }
0x1a17   : > { %p4899_p9 = pnand %p4898_p8, %p4892_p3 }
0x1a19   : > { %4902 = shalt.err (!%p4899_p9)
}
0x1a1a   : > { %s4903_s23 = scalar_lea.hbm %s6271_s27, 128  ;;  %s4907_s19 = scalar_lea.hbm %s6356_s18, 256 }
0x1a1b   : > { %p4904_p10 = scmp.ne.s32.totalorder %s6271_s27, %s4903_s23  ;;  %p4908_p13 = scmp.lt.u32.totalorder %s6271_s27, %s6356_s18 }
0x1a1c   : > { %p4909_p0 = scmp.lt.u32.totalorder %s4907_s19, %s4903_s23  ;;  %p4911_p2 = scmp.lt.u32.totalorder %s4903_s23, %s6271_s27 }
0x1a1d   : > { %p4905_p11 = pnand %p4904_p10, %p5098_p5 }
0x1a1e   : > { %p4910_p1 = por %p4909_p0, %p4908_p13 }
0x1a1f   : > { %p4906_p12 = pneg %p4905_p11 }
0x1a20   : > { %p4912_p3 = por %p4911_p2, %p4910_p1 }
0x1a22   : > { %p4913_p4 = pnand %p4912_p3, %p4906_p12 }
0x1a24   : > { %4916 = shalt.err (!%p4913_p4)
}
0x1a25   : > { %4638 = dma.vmem_to_hbm [thread:$0]  (%p5098_p5), %s6273_s21, 128, %s6271_s27, %s3615_s6  }
0x1a26 PF: > { %s6390_s5 = sld [smem:[#allocation10_spill]]  ;;  %p4648_p7 = scmp.ge.s32.totalorder %s4955_s30, 2 }
0x1a28   : > { %p4642_p8 = pnand %p4648_p7, %p5102_p6 }
0x1a2c   : > { %s3653_s4 = sand.u32 1, %s6390_s5  }
0x1a2d   : > { %s3654_s25 = scalar_lea.sflag [#allocation5], %s3653_s4 }
0x1a2e   : > { %4934 = dma.done.wait (!%p4642_p8), %s3654_s25, 128  }
0x1a2f   : > { %4936 = vsyncadd (!%p4642_p8), %s3654_s25, 4294967168  ;;  %s3663_s24 = scalar_lea.sflag [#allocation7], %s3653_s4 }
0x1a30   : > { %4938 = dma.done.wait (!%p4642_p8), %s3663_s24, 128  }
0x1a31   : > { %4940 = vsyncadd (!%p4642_p8), %s3663_s24, 4294967168  ;;  %s6392_s30 = sld [smem:[#allocation12_spill]]  ;;  %s6393_s2 = sld [smem:[#allocation11_spill]] }
0x1a32   : > { %s6394_s29 = sld [smem:[#allocation13_spill]]  ;;  %s6395_s27 = smov %s4947_s28 }
0x1a37   : > { %p32_p5 = scmp.ge.s32.totalorder %s6392_s30, 4   ;;  %s6396_s28 = smov %s6393_s2 }
0x1a39   :  { %34 = sbr.rel (!%p32_p5) target bundleno = 13 (0xd), region = 140 }
0x1a40   :  { %3668 = vsyncpa [#allocation5], 1 }
0x1a41   :  { %3670 = vsyncpa [#allocation5 + $0x1], 1 }
0x1a42   :  { %3671 = vsyncpa [#allocation7], 1 }
0x1a43   :  { %3673 = vsyncpa [#allocation7 + $0x1], 1 }

</bundles_post_ra>
